<compile_context>
chip_gen: v7x
topology: tpu7x:2x2x1
jax: 0.10.0
libtpu: 0.0.40
codegen_flags: <defaults>
</compile_context>

<pallas_src>
import functools
from types import SimpleNamespace

import numpy as np
import jax
import jax.numpy as jnp
from jax import lax
from jax.experimental import pallas as pl
from jax.experimental.pallas import tpu as pltpu

NUM = 256      # hidden width of the MLP (matches `num` in the PyTorch module)
LANES = 256    # lane width of the packed weight buffer / wide intermediates
HALF = 128     # lane width of pooled intermediates (one vreg of lanes)
PH_BLK = 8     # sublane block per pooled-height index in the pool-2 output layout


# --------------------------- glue: banded conv weights (params only) ---------------------------

def _banded_conv_weights(w_oihw, in_w, out_w):
    """Conv weight (OIHW) -> stack of banded matrices, one per kernel row ky.

    Returns (kh, in_w*cin, out_w*cout) with
      W[ky, w*cin + ci, ow*cout + co] = w[co, ci, ky, w - ow]   (0 if w-ow not in [0, kw))
    so that conv(row=oh) = sum_ky  x2d[row oh+ky] @ W[ky].
    """
    cout, cin, kh, kw = w_oihw.shape
    w_t = jnp.transpose(w_oihw, (2, 3, 1, 0))            # (ky, kx, cin, cout)
    shift = np.zeros((kw, in_w, out_w), np.float32)      # shift[kx, w, ow] = [w == ow + kx]
    for kx in range(kw):
        for ow in range(out_w):
            shift[kx, ow + kx, ow] = 1.0
    wk = jnp.einsum('kwo,ykcf->ywcof', jnp.asarray(shift), w_t)   # (ky, w, cin, ow, cout)
    return wk.reshape(kh, in_w * cin, out_w * cout)


# --------------------------------------- fused kernel ------------------------------------------

def _actor_fused_kernel(x3_ref, spack_ref, wpack_ref, out_ref, *, lay, max_action):
    f32, bf16 = jnp.float32, jnp.bfloat16
    wp, sp = wpack_ref, spack_ref
    dot = functools.partial(jnp.dot, preferred_element_type=f32)

    def bias_row(i):                                  # (1, 256) broadcast row from the pack
        return wp[lay.bias + i:lay.bias + i + 1, :].astype(f32)

    # conv1 (+bias, ReLU): single K-concatenated banded matmul (K = 3*W*Cin, zero padded).
    y = dot(x3_ref[...], wp[lay.w1s:lay.w1s + LANES, :])
    y = jnp.maximum(y + bias_row(0), 0.0).astype(bf16)

    # pool #1: even/odd (and the 3 conv2 row-shifts) concatenated row selector -> one matmul
    # + max of aligned halves; then the even/odd concatenated column selector the same way.
    r = dot(sp[lay.s1r:lay.s1r + lay.s1r_rows, :], y)
    rh = lay.s1r_rows // 2
    rmax = jnp.maximum(r[:rh], r[rh:]).astype(bf16)
    c = dot(rmax, wp[lay.s1c:lay.s1c + LANES, :])
    p1 = jnp.maximum(c[:, :HALF], c[:, HALF:])        # (3*BH, 128): shift-major 128-lane blocks

    # conv2 (+bias, ReLU): lane-concatenate the three aligned 128-lane blocks -> one K=384 matmul.
    bh = lay.bh
    p1cat = jnp.concatenate([p1[:bh], p1[bh:2 * bh], p1[2 * bh:3 * bh]],
                            axis=-1).astype(bf16)     # (BH, 384)
    z = dot(p1cat, wp[lay.w2s:lay.w2s + 3 * HALF, :])
    z = jnp.maximum(z + bias_row(1), 0.0).astype(bf16)

    # pool #2: same trick; output rows land in 8-row blocks per pooled-height index.
    r2 = dot(sp[lay.s2r:lay.s2r + lay.s2r_rows, :], z)
    r2h = lay.s2r_rows // 2
    rmax2 = jnp.maximum(r2[:r2h], r2[r2h:]).astype(bf16)
    c2 = dot(rmax2, wp[lay.s2c:lay.s2c + LANES, :])
    p2 = jnp.maximum(c2[:, :HALF], c2[:, HALF:])      # (n_ph*8, 128)

    # MLP head: channel-mean + flatten + concat([global_state, feat]) are folded into the
    # packed l1 weights (FCW blocks / WL1A), so this is plain dense matmuls.
    hf = dot(p2[0:PH_BLK].astype(bf16), wp[lay.fcw:lay.fcw + HALF, :])
    for ph in range(1, lay.n_ph):
        hf = hf + dot(p2[ph * PH_BLK:(ph + 1) * PH_BLK].astype(bf16),
                      wp[lay.fcw + ph * HALF:lay.fcw + (ph + 1) * HALF, :])
    hgs = dot(sp[lay.gs:lay.gs + 16, :],
              wp[lay.wl1a:lay.wl1a + lay.wl1a_rows, :])[:PH_BLK]
    h = jnp.maximum(hgs + hf + bias_row(2), 0.0).astype(bf16)
    h = jnp.maximum(dot(h, wp[lay.wl2:lay.wl2 + NUM, :]) + bias_row(3), 0.0).astype(bf16)
    o = dot(h, wp[lay.wl3:lay.wl3 + NUM, :]) + bias_row(4)
    out_ref[...] = max_action * jnp.tanh(o)


# ------------------------------------------ forward --------------------------------------------

def actor_forward(params, global_state, local_state, max_action):
    B, Cin, H, W = local_state.shape
    C1 = params['conv1_w'].shape[0]
    C2 = params['conv2_w'].shape[0]
    OH1, OW1 = H - 2, W - 2
    P1h, P1w = OH1 // 2, OW1 // 2
    OH2, OW2 = P1h - 2, P1w - 2
    P2h, P2w = OH2 // 2, OW2 // 2
    state_dim = global_state.shape[1]
    action_dim = params['l3_w'].shape[1]
    num = params['l2_w'].shape[0]
    BH = B * H
    f32, bf16 = jnp.float32, jnp.bfloat16

    assert num == NUM and 3 * W * Cin <= LANES and OW1 * C1 <= LANES
    assert OW2 * C2 <= LANES and P1w * C1 <= HALF and P2w * C2 <= HALF
    assert state_dim <= BH and B <= PH_BLK and action_dim <= LANES
    assert BH % 16 == 0 and P1h + 2 <= H

    # ---- activation prep: NCHW -> rows=(b,h), lanes=(w,ci); K-concatenate the 3 kernel rows ----
    x2d = jnp.transpose(local_state, (0, 2, 3, 1)).astype(f32).reshape(BH, W * Cin)
    xp = jnp.pad(x2d, ((0, 2), (0, 0)))
    x3 = jnp.concatenate([xp[0:BH], xp[1:BH + 1], xp[2:BH + 2]], axis=1)    # (BH, 3*W*Cin)
    x3p = jnp.pad(x3, ((0, 0), (0, LANES - 3 * W * Cin))).astype(bf16)

    # ---- selector pack (lanes = BH): pool row selectors (even/odd/shift) + padded global state
    s1r = np.zeros((2 * 3 * BH, BH), np.float32)
    for par in range(2):
        for k in range(3):
            for b in range(B):
                for oh in range(P1h - k):            # pool row (oh + k) of batch b
                    s1r[par * 3 * BH + k * BH + b * H + oh,
                        b * H + 2 * (oh + k) + par] = 1.0
    s2r = np.zeros((2 * P2h * PH_BLK, BH), np.float32)
    for par in range(2):
        for ph in range(P2h):
            for b in range(B):
                s2r[par * P2h * PH_BLK + ph * PH_BLK + b, b * H + 2 * ph + par] = 1.0
    gsblk = jnp.zeros((16, BH), f32).at[:B, :state_dim].set(global_state.astype(f32))
    spack = jnp.concatenate([jnp.asarray(s1r), jnp.asarray(s2r), gsblk], axis=0).astype(bf16)

    # ---- weight pack (lanes = 256): everything the MXU touches, one contiguous DMA ----
    def pad2(a, rows, cols=LANES):
        return jnp.pad(a, ((0, rows - a.shape[0]), (0, cols - a.shape[1])))

    w1b = _banded_conv_weights(params['conv1_w'], in_w=W, out_w=OW1)     # (3, W*Cin,  OW1*C1)
    w1s = pad2(w1b.reshape(3 * W * Cin, OW1 * C1), LANES)
    w2b = _banded_conv_weights(params['conv2_w'], in_w=P1w, out_w=OW2)   # (3, P1w*C1, OW2*C2)
    w2s = jnp.concatenate([pad2(w2b[ky], HALF) for ky in range(3)], axis=0)

    s1c = np.zeros((LANES, LANES), np.float32)       # pool1 column selector, even || odd
    for dx in range(2):
        for pw in range(P1w):
            for cc in range(C1):
                s1c[(2 * pw + dx) * C1 + cc, dx * HALF + pw * C1 + cc] = 1.0
    s2c = np.zeros((LANES, LANES), np.float32)       # pool2 column selector, even || odd
    for dx in range(2):
        for pw in range(P2w):
            for cc in range(C2):
                s2c[(2 * pw + dx) * C2 + cc, dx * HALF + pw * C2 + cc] = 1.0

    # channel-mean + flatten + l1(feature part) folded into one weight block per pooled row ph.
    wl1b = params['l1_w'][state_dim:]                                    # (P2h*P2w, num)
    fsel = np.zeros((P2h, HALF, P2h * P2w), np.float32)
    for ph in range(P2h):
        for pw in range(P2w):
            for cc in range(C2):
                fsel[ph, pw * C2 + cc, ph * P2w + pw] = 1.0 / C2
    fcw = jnp.concatenate([jnp.asarray(fsel[ph]) @ wl1b for ph in range(P2h)], axis=0)

    wl1a = pad2(params['l1_w'][:state_dim], BH)
    wl3 = pad2(params['l3_w'], num)
    bias = jnp.zeros((16, LANES), f32)
    bias = bias.at[0, :OW1 * C1].set(jnp.tile(params['conv1_b'], OW1))
    bias = bias.at[1, :OW2 * C2].set(jnp.tile(params['conv2_b'], OW2))
    bias = bias.at[2, :num].set(params['l1_b'])
    bias = bias.at[3, :num].set(params['l2_b'])
    bias = bias.at[4, :action_dim].set(params['l3_b'])

    wblocks = [('w1s', w1s), ('s1c', jnp.asarray(s1c)), ('w2s', w2s),
               ('s2c', jnp.asarray(s2c)), ('fcw', fcw), ('wl1a', wl1a),
               ('wl2', params['l2_w']), ('wl3', wl3), ('bias', bias)]
    offs, row0 = {}, 0
    for name, blk in wblocks:
        assert blk.shape[0] % 16 == 0 and blk.shape[1] == LANES, (name, blk.shape)
        offs[name] = row0
        row0 += blk.shape[0]
    wpack = jnp.concatenate([blk for _, blk in wblocks], axis=0).astype(bf16)

    lay = SimpleNamespace(
        bh=BH, n_ph=P2h, wl1a_rows=BH,
        s1r=0, s1r_rows=2 * 3 * BH,
        s2r=2 * 3 * BH, s2r_rows=2 * P2h * PH_BLK,
        gs=2 * 3 * BH + 2 * P2h * PH_BLK,
        **offs)

    macs = (BH * LANES * LANES                          # conv1
            + lay.s1r_rows * BH * LANES                 # pool1 row-select
            + (lay.s1r_rows // 2) * LANES * LANES       # pool1 col-select
            + BH * (3 * HALF) * LANES                   # conv2
            + lay.s2r_rows * BH * LANES                 # pool2 row-select
            + (lay.s2r_rows // 2) * LANES * LANES       # pool2 col-select
            + P2h * PH_BLK * HALF * NUM                 # feature -> l1
            + 16 * BH * NUM                             # global state -> l1
            + 2 * PH_BLK * NUM * NUM)                   # l2, l3
    nbytes = 2 * (x3p.size + spack.size + wpack.size) + 4 * PH_BLK * LANES
    cost = pl.CostEstimate(flops=2 * macs, transcendentals=PH_BLK * NUM,
                           bytes_accessed=int(nbytes))

    kernel = functools.partial(_actor_fused_kernel, lay=lay, max_action=float(max_action))
    out = pl.pallas_call(
        kernel,
        out_shape=jax.ShapeDtypeStruct((PH_BLK, LANES), jnp.float32),
        in_specs=[pl.BlockSpec(memory_space=pltpu.MemorySpace.VMEM)] * 3,
        out_specs=pl.BlockSpec(memory_space=pltpu.MemorySpace.VMEM),
        cost_estimate=cost,
    )(x3p, spack, wpack)
    return out[:B, :action_dim]


# ------------------------------------------- params --------------------------------------------

def init_params(key, state_dim, in_channels, action_dim, out_channels):
    ks = iter(jax.random.split(key, 12))

    def u(k, shape, fan_in):
        bound = 1.0 / float(fan_in) ** 0.5
        return jax.random.uniform(k, shape, jnp.float32, -bound, bound)

    p = {}
    p['conv1_w'] = u(next(ks), (16, in_channels, 3, 3), in_channels * 9)   # OIHW
    p['conv1_b'] = u(next(ks), (16,), in_channels * 9)
    p['conv2_w'] = u(next(ks), (32, 16, 3, 3), 16 * 9)                      # OIHW
    p['conv2_b'] = u(next(ks), (32,), 16 * 9)
    dims = dict(l1=(state_dim + out_channels, NUM), l2=(NUM, NUM), l3=(NUM, action_dim))
    for name, (din, dout) in dims.items():
        p[name + '_w'] = u(next(ks), (din, dout), din)   # (in, out) layout
        p[name + '_b'] = u(next(ks), (dout,), din)
    return p


# --------------------------------------- pure-JAX reference ------------------------------------

def ref_forward(params, global_state, local_state, max_action):
    x = local_state.astype(jnp.float32)
    y = lax.conv_general_dilated(x, params['conv1_w'], (1, 1), 'VALID',
                                 dimension_numbers=('NCHW', 'OIHW', 'NCHW'))
    y = jnp.maximum(y + params['conv1_b'][None, :, None, None], 0.0)
    y = lax.reduce_window(y, -jnp.inf, lax.max, (1, 1, 2, 2), (1, 1, 2, 2), 'VALID')
    y = lax.conv_general_dilated(y, params['conv2_w'], (1, 1), 'VALID',
                                 dimension_numbers=('NCHW', 'OIHW', 'NCHW'))
    y = jnp.maximum(y + params['conv2_b'][None, :, None, None], 0.0)
    y = lax.reduce_window(y, -jnp.inf, lax.max, (1, 1, 2, 2), (1, 1, 2, 2), 'VALID')
    y = jnp.mean(y, axis=1, keepdims=True)
    feat = y.reshape(y.shape[0], -1)
    sa = jnp.concatenate([global_state, feat], axis=1)
    h = jnp.maximum(sa @ params['l1_w'] + params['l1_b'], 0.0)
    h = jnp.maximum(h @ params['l2_w'] + params['l2_b'], 0.0)
    return max_action * jnp.tanh(h @ params['l3_w'] + params['l3_b'])


# --------------------------------------------- main --------------------------------------------

if __name__ == "__main__":
    state_dim, in_channels, action_dim = 8, 4, 3
    B, H, W = 2, 16, 16
    MAX_ACTION = 2.0
    # conv1(3x3) -> 14, pool -> 7, conv2(3x3) -> 5, pool -> 2  => out_channels = 2*2 = 4
    sp_dim = ((H - 2) // 2 - 2) // 2
    out_channels = sp_dim * sp_dim

    key = jax.random.PRNGKey(0)
    kp, kg, kl = jax.random.split(key, 3)
    params = init_params(kp, state_dim, in_channels, action_dim, out_channels)
    global_state = jax.random.normal(kg, (B, state_dim), jnp.float32)
    local_state = jax.random.normal(kl, (B, in_channels, H, W), jnp.float32)   # NCHW

    # Keep parameters / inputs bf16-representable (standard TPU practice) so the kernel's
    # bf16 matmul operands (with f32 accumulation) stay tight against the f32 reference.
    rt = lambda a: a.astype(jnp.bfloat16).astype(jnp.float32)
    params = jax.tree_util.tree_map(rt, params)
    global_state, local_state = rt(global_state), rt(local_state)

    fwd = jax.jit(lambda p, g, l: actor_forward(p, g, l, MAX_ACTION))
    act = fwd(params, global_state, local_state)
    jax.block_until_ready(act)

    ref = jax.jit(lambda p, g, l: ref_forward(p, g, l, MAX_ACTION))(params, global_state, local_state)
    assert act.shape == (B, action_dim)
    assert bool(jnp.all(jnp.abs(act) <= MAX_ACTION + 1e-5))
    # bf16 matmul operands (f32 accumulation / f32 elementwise); typical max |err| ~ 1e-3.
    assert jnp.allclose(act, ref, atol=1e-2, rtol=1e-2), (act, ref)

    print("KERNEL_OK")
</pallas_src>

<mosaic_0001>
module attributes {stable_mosaic.version = 11 : i64} {
  func.func @_actor_fused_kernel(%arg0: memref<32x256xbf16, #tpu.memory_space<vmem>>, %arg1: memref<240x32xbf16, #tpu.memory_space<vmem>>, %arg2: memref<1968x256xbf16, #tpu.memory_space<vmem>>, %arg3: memref<8x256xf32, #tpu.memory_space<vmem>>) attributes {dimension_semantics = [], scalar_prefetch = 0 : i64, scratch_operands = 0 : i64, tpu.core_type = #tpu.core_type<tc>} {
    %c0 = arith.constant 0 : index
    %c0_0 = arith.constant 0 : index
    %0 = vector.load %arg0[%c0, %c0_0] : memref<32x256xbf16, #tpu.memory_space<vmem>>, vector<32x256xbf16>
    %c0_1 = arith.constant 0 : index
    %c0_2 = arith.constant 0 : index
    %1 = vector.load %arg2[%c0_1, %c0_2] : memref<1968x256xbf16, #tpu.memory_space<vmem>>, vector<256x256xbf16>
    %cst = arith.constant dense<0.000000e+00> : vector<32x256xf32>
    %2 = tpu.matmul %0, %1, %cst {dimension_numbers = #tpu.dot_dimension_numbers<[1], [0], [0], [1], [0, 0, 1, 1], [], []>} : vector<32x256xbf16>, vector<256x256xbf16>, vector<32x256xf32> -> vector<32x256xf32>
    %c1952 = arith.constant 1952 : index
    %c0_3 = arith.constant 0 : index
    %3 = vector.load %arg2[%c1952, %c0_3] : memref<1968x256xbf16, #tpu.memory_space<vmem>>, vector<1x256xbf16>
    %4 = arith.extf %3 : vector<1x256xbf16> to vector<1x256xf32>
    %5 = vector.broadcast %4 : vector<1x256xf32> to vector<32x256xf32>
    %6 = arith.addf %2, %5 : vector<32x256xf32>
    %cst_4 = arith.constant 0.000000e+00 : f32
    %7 = vector.broadcast %cst_4 : f32 to vector<32x256xf32>
    %8 = arith.maximumf %6, %7 : vector<32x256xf32>
    %9 = arith.truncf %8 : vector<32x256xf32> to vector<32x256xbf16>
    %c0_5 = arith.constant 0 : index
    %c0_6 = arith.constant 0 : index
    %10 = vector.load %arg1[%c0_5, %c0_6] : memref<240x32xbf16, #tpu.memory_space<vmem>>, vector<192x32xbf16>
    %cst_7 = arith.constant dense<0.000000e+00> : vector<192x256xf32>
    %11 = tpu.matmul %10, %9, %cst_7 {dimension_numbers = #tpu.dot_dimension_numbers<[1], [0], [0], [1], [0, 0, 1, 1], [], []>} : vector<192x32xbf16>, vector<32x256xbf16>, vector<192x256xf32> -> vector<192x256xf32>
    %12 = vector.extract_strided_slice %11 {offsets = [0, 0], sizes = [96, 256], strides = [1, 1]} : vector<192x256xf32> to vector<96x256xf32>
    %13 = vector.extract_strided_slice %11 {offsets = [96, 0], sizes = [96, 256], strides = [1, 1]} : vector<192x256xf32> to vector<96x256xf32>
    %14 = arith.maximumf %12, %13 : vector<96x256xf32>
    %15 = arith.truncf %14 : vector<96x256xf32> to vector<96x256xbf16>
    %c256 = arith.constant 256 : index
    %c0_8 = arith.constant 0 : index
    %16 = vector.load %arg2[%c256, %c0_8] : memref<1968x256xbf16, #tpu.memory_space<vmem>>, vector<256x256xbf16>
    %cst_9 = arith.constant dense<0.000000e+00> : vector<96x256xf32>
    %17 = tpu.matmul %15, %16, %cst_9 {dimension_numbers = #tpu.dot_dimension_numbers<[1], [0], [0], [1], [0, 0, 1, 1], [], []>} : vector<96x256xbf16>, vector<256x256xbf16>, vector<96x256xf32> -> vector<96x256xf32>
    %18 = vector.extract_strided_slice %17 {offsets = [0, 0], sizes = [96, 128], strides = [1, 1]} : vector<96x256xf32> to vector<96x128xf32>
    %19 = vector.extract_strided_slice %17 {offsets = [0, 128], sizes = [96, 128], strides = [1, 1]} : vector<96x256xf32> to vector<96x128xf32>
    %20 = arith.maximumf %18, %19 : vector<96x128xf32>
    %21 = vector.extract_strided_slice %20 {offsets = [0, 0], sizes = [32, 128], strides = [1, 1]} : vector<96x128xf32> to vector<32x128xf32>
    %22 = vector.extract_strided_slice %20 {offsets = [32, 0], sizes = [32, 128], strides = [1, 1]} : vector<96x128xf32> to vector<32x128xf32>
    %23 = vector.extract_strided_slice %20 {offsets = [64, 0], sizes = [32, 128], strides = [1, 1]} : vector<96x128xf32> to vector<32x128xf32>
    %24 = tpu.concatenate %21, %22, %23 in 1 : vector<32x128xf32>, vector<32x128xf32>, vector<32x128xf32> -> vector<32x384xf32>
    %25 = arith.truncf %24 : vector<32x384xf32> to vector<32x384xbf16>
    %c512 = arith.constant 512 : index
    %c0_10 = arith.constant 0 : index
    %26 = vector.load %arg2[%c512, %c0_10] : memref<1968x256xbf16, #tpu.memory_space<vmem>>, vector<384x256xbf16>
    %cst_11 = arith.constant dense<0.000000e+00> : vector<32x256xf32>
    %27 = tpu.matmul %25, %26, %cst_11 {dimension_numbers = #tpu.dot_dimension_numbers<[1], [0], [0], [1], [0, 0, 1, 1], [], []>} : vector<32x384xbf16>, vector<384x256xbf16>, vector<32x256xf32> -> vector<32x256xf32>
    %c1953 = arith.constant 1953 : index
    %c0_12 = arith.constant 0 : index
    %28 = vector.load %arg2[%c1953, %c0_12] : memref<1968x256xbf16, #tpu.memory_space<vmem>>, vector<1x256xbf16>
    %29 = arith.extf %28 : vector<1x256xbf16> to vector<1x256xf32>
    %30 = vector.broadcast %29 : vector<1x256xf32> to vector<32x256xf32>
    %31 = arith.addf %27, %30 : vector<32x256xf32>
    %cst_13 = arith.constant 0.000000e+00 : f32
    %32 = vector.broadcast %cst_13 : f32 to vector<32x256xf32>
    %33 = arith.maximumf %31, %32 : vector<32x256xf32>
    %34 = arith.truncf %33 : vector<32x256xf32> to vector<32x256xbf16>
    %c192 = arith.constant 192 : index
    %c0_14 = arith.constant 0 : index
    %35 = vector.load %arg1[%c192, %c0_14] : memref<240x32xbf16, #tpu.memory_space<vmem>>, vector<32x32xbf16>
    %cst_15 = arith.constant dense<0.000000e+00> : vector<32x256xf32>
    %36 = tpu.matmul %35, %34, %cst_15 {dimension_numbers = #tpu.dot_dimension_numbers<[1], [0], [0], [1], [0, 0, 1, 1], [], []>} : vector<32x32xbf16>, vector<32x256xbf16>, vector<32x256xf32> -> vector<32x256xf32>
    %37 = vector.extract_strided_slice %36 {offsets = [0, 0], sizes = [16, 256], strides = [1, 1]} : vector<32x256xf32> to vector<16x256xf32>
    %38 = vector.extract_strided_slice %36 {offsets = [16, 0], sizes = [16, 256], strides = [1, 1]} : vector<32x256xf32> to vector<16x256xf32>
    %39 = arith.maximumf %37, %38 : vector<16x256xf32>
    %40 = arith.truncf %39 : vector<16x256xf32> to vector<16x256xbf16>
    %c896 = arith.constant 896 : index
    %c0_16 = arith.constant 0 : index
    %41 = vector.load %arg2[%c896, %c0_16] : memref<1968x256xbf16, #tpu.memory_space<vmem>>, vector<256x256xbf16>
    %cst_17 = arith.constant dense<0.000000e+00> : vector<16x256xf32>
    %42 = tpu.matmul %40, %41, %cst_17 {dimension_numbers = #tpu.dot_dimension_numbers<[1], [0], [0], [1], [0, 0, 1, 1], [], []>} : vector<16x256xbf16>, vector<256x256xbf16>, vector<16x256xf32> -> vector<16x256xf32>
    %43 = vector.extract_strided_slice %42 {offsets = [0, 0], sizes = [16, 128], strides = [1, 1]} : vector<16x256xf32> to vector<16x128xf32>
    %44 = vector.extract_strided_slice %42 {offsets = [0, 128], sizes = [16, 128], strides = [1, 1]} : vector<16x256xf32> to vector<16x128xf32>
    %45 = arith.maximumf %43, %44 : vector<16x128xf32>
    %46 = vector.extract_strided_slice %45 {offsets = [0, 0], sizes = [8, 128], strides = [1, 1]} : vector<16x128xf32> to vector<8x128xf32>
    %47 = arith.truncf %46 : vector<8x128xf32> to vector<8x128xbf16>
    %c1152 = arith.constant 1152 : index
    %c0_18 = arith.constant 0 : index
    %48 = vector.load %arg2[%c1152, %c0_18] : memref<1968x256xbf16, #tpu.memory_space<vmem>>, vector<128x256xbf16>
    %cst_19 = arith.constant dense<0.000000e+00> : vector<8x256xf32>
    %49 = tpu.matmul %47, %48, %cst_19 {dimension_numbers = #tpu.dot_dimension_numbers<[1], [0], [0], [1], [0, 0, 1, 1], [], []>} : vector<8x128xbf16>, vector<128x256xbf16>, vector<8x256xf32> -> vector<8x256xf32>
    %50 = vector.extract_strided_slice %45 {offsets = [8, 0], sizes = [8, 128], strides = [1, 1]} : vector<16x128xf32> to vector<8x128xf32>
    %51 = arith.truncf %50 : vector<8x128xf32> to vector<8x128xbf16>
    %c1280 = arith.constant 1280 : index
    %c0_20 = arith.constant 0 : index
    %52 = vector.load %arg2[%c1280, %c0_20] : memref<1968x256xbf16, #tpu.memory_space<vmem>>, vector<128x256xbf16>
    %cst_21 = arith.constant dense<0.000000e+00> : vector<8x256xf32>
    %53 = tpu.matmul %51, %52, %cst_21 {dimension_numbers = #tpu.dot_dimension_numbers<[1], [0], [0], [1], [0, 0, 1, 1], [], []>} : vector<8x128xbf16>, vector<128x256xbf16>, vector<8x256xf32> -> vector<8x256xf32>
    %54 = arith.addf %49, %53 : vector<8x256xf32>
    %c224 = arith.constant 224 : index
    %c0_22 = arith.constant 0 : index
    %55 = vector.load %arg1[%c224, %c0_22] : memref<240x32xbf16, #tpu.memory_space<vmem>>, vector<16x32xbf16>
    %c1408 = arith.constant 1408 : index
    %c0_23 = arith.constant 0 : index
    %56 = vector.load %arg2[%c1408, %c0_23] : memref<1968x256xbf16, #tpu.memory_space<vmem>>, vector<32x256xbf16>
    %cst_24 = arith.constant dense<0.000000e+00> : vector<16x256xf32>
    %57 = tpu.matmul %55, %56, %cst_24 {dimension_numbers = #tpu.dot_dimension_numbers<[1], [0], [0], [1], [0, 0, 1, 1], [], []>} : vector<16x32xbf16>, vector<32x256xbf16>, vector<16x256xf32> -> vector<16x256xf32>
    %58 = vector.extract_strided_slice %57 {offsets = [0, 0], sizes = [8, 256], strides = [1, 1]} : vector<16x256xf32> to vector<8x256xf32>
    %59 = arith.addf %58, %54 : vector<8x256xf32>
    %c1954 = arith.constant 1954 : index
    %c0_25 = arith.constant 0 : index
    %60 = vector.load %arg2[%c1954, %c0_25] : memref<1968x256xbf16, #tpu.memory_space<vmem>>, vector<1x256xbf16>
    %61 = arith.extf %60 : vector<1x256xbf16> to vector<1x256xf32>
    %62 = vector.broadcast %61 : vector<1x256xf32> to vector<8x256xf32>
    %63 = arith.addf %59, %62 : vector<8x256xf32>
    %cst_26 = arith.constant 0.000000e+00 : f32
    %64 = vector.broadcast %cst_26 : f32 to vector<8x256xf32>
    %65 = arith.maximumf %63, %64 : vector<8x256xf32>
    %66 = arith.truncf %65 : vector<8x256xf32> to vector<8x256xbf16>
    %c1440 = arith.constant 1440 : index
    %c0_27 = arith.constant 0 : index
    %67 = vector.load %arg2[%c1440, %c0_27] : memref<1968x256xbf16, #tpu.memory_space<vmem>>, vector<256x256xbf16>
    %cst_28 = arith.constant dense<0.000000e+00> : vector<8x256xf32>
    %68 = tpu.matmul %66, %67, %cst_28 {dimension_numbers = #tpu.dot_dimension_numbers<[1], [0], [0], [1], [0, 0, 1, 1], [], []>} : vector<8x256xbf16>, vector<256x256xbf16>, vector<8x256xf32> -> vector<8x256xf32>
    %c1955 = arith.constant 1955 : index
    %c0_29 = arith.constant 0 : index
    %69 = vector.load %arg2[%c1955, %c0_29] : memref<1968x256xbf16, #tpu.memory_space<vmem>>, vector<1x256xbf16>
    %70 = arith.extf %69 : vector<1x256xbf16> to vector<1x256xf32>
    %71 = vector.broadcast %70 : vector<1x256xf32> to vector<8x256xf32>
    %72 = arith.addf %68, %71 : vector<8x256xf32>
    %cst_30 = arith.constant 0.000000e+00 : f32
    %73 = vector.broadcast %cst_30 : f32 to vector<8x256xf32>
    %74 = arith.maximumf %72, %73 : vector<8x256xf32>
    %75 = arith.truncf %74 : vector<8x256xf32> to vector<8x256xbf16>
    %c1696 = arith.constant 1696 : index
    %c0_31 = arith.constant 0 : index
    %76 = vector.load %arg2[%c1696, %c0_31] : memref<1968x256xbf16, #tpu.memory_space<vmem>>, vector<256x256xbf16>
    %cst_32 = arith.constant dense<0.000000e+00> : vector<8x256xf32>
    %77 = tpu.matmul %75, %76, %cst_32 {dimension_numbers = #tpu.dot_dimension_numbers<[1], [0], [0], [1], [0, 0, 1, 1], [], []>} : vector<8x256xbf16>, vector<256x256xbf16>, vector<8x256xf32> -> vector<8x256xf32>
    %c1956 = arith.constant 1956 : index
    %c0_33 = arith.constant 0 : index
    %78 = vector.load %arg2[%c1956, %c0_33] : memref<1968x256xbf16, #tpu.memory_space<vmem>>, vector<1x256xbf16>
    %79 = arith.extf %78 : vector<1x256xbf16> to vector<1x256xf32>
    %80 = vector.broadcast %79 : vector<1x256xf32> to vector<8x256xf32>
    %81 = arith.addf %77, %80 : vector<8x256xf32>
    %82 = math.tanh %81 : vector<8x256xf32>
    %cst_34 = arith.constant 2.000000e+00 : f32
    %83 = vector.broadcast %cst_34 : f32 to vector<8x256xf32>
    %84 = arith.mulf %83, %82 : vector<8x256xf32>
    %c0_35 = arith.constant 0 : index
    %c0_36 = arith.constant 0 : index
    %85 = vector.load %arg3[%c0_35, %c0_36] : memref<8x256xf32, #tpu.memory_space<vmem>>, vector<8x256xf32>
    tpu.vector_store %arg3[%c0_35, %c0_36], %84 {strides = array<i32>} : memref<8x256xf32, #tpu.memory_space<vmem>>, vector<8x256xf32>,
    return
  }
}

</mosaic_0001>

<bundles_post_ra>
// kernel: squeeze.2
= control target key start
LH: loop header
LB: loop body
LE: loop exit
PB: predicated region body
PF: predicated region fallthrough
CT: control target
= control target key end

     0   :  { %vm2103_vm0 = vcmask 1047556   ;;  %s3498_s18 = smov 96   ;;  %vm1794_vm1 = vcmask 261120   ;;  %vm2107_vm2 = vcmask 1048320   ;;  %vm2260_vm3 = vcmask 785920   ;;  %s4075_s0 = inlined_call_operand.vmem [shape: bf16[1,7,16,5,32], index: 0, kind: input, shape index: {}]   ;;  %s4076_s1 = inlined_call_operand.vmem [shape: bf16[112,160], index: 1, kind: output, shape index: {}]  }
   0x1   :  { %v3366_v0 = vld [vmem:[%s4075_s0 + $0x58] sm:$0xff]   ;;  %v3367_v1 = vld [vmem:[%s4075_s0 + $0x50] sm:$0xff]   ;;  %v3368_v2 = vld [vmem:[%s4075_s0 + $0x48] sm:$0xff]   ;;  %vm2413_vm4 = vcmask 523520  }
   0x2   :  { %v3206_v3 = vunpack.c.l.bf16 %v3366_v0  ;;  %v3207_v4 = vunpack.c.h.bf16 %v3366_v0  ;;  %v3210_v5 = vunpack.c.l.bf16 %v3367_v1  ;;  %v3211_v6 = vunpack.c.h.bf16 %v3367_v1  ;;  %v3369_v7 = vld [vmem:[%s4075_s0 + $0x40] sm:$0xff]   ;;  %v3374_v8 = vld [vmem:[%s4075_s0 + $0x18] sm:$0xff]   ;;  %v3375_v9 = vld [vmem:[%s4075_s0 + $0x10] sm:$0xff]  }
   0x3   :  { %v3214_v10 = vunpack.c.l.bf16 %v3368_v2  ;;  %v3215_v11 = vunpack.c.h.bf16 %v3368_v2  ;;  %v3218_v12 = vunpack.c.l.bf16 %v3369_v7  ;;  %v3219_v13 = vunpack.c.h.bf16 %v3369_v7  ;;  %v3376_v14 = vld [vmem:[%s4075_s0 + $0x8] sm:$0xff]   ;;  %v3249_v15 = vld [vmem:[%s4075_s0] sm:$0xff]   ;;  %v3334_v16 = vld [vmem:[%s4075_s0 + $0x158] sm:$0xff]  }
   0x4   :  { %1428 = vst [vmem:[#allocation1 + $0xb8] sm:$0xff] %v3207_v4  ;;  %1444 = vst [vmem:[#allocation1 + $0xb0] sm:$0xff] %v3206_v3  ;;  %v3238_v17 = vunpack.c.l.bf16 %v3374_v8  ;;  %v3239_v18 = vunpack.c.h.bf16 %v3374_v8  ;;  %v3242_v19 = vunpack.c.l.bf16 %v3375_v9  ;;  %v3243_v20 = vunpack.c.h.bf16 %v3375_v9  ;;  %v3335_v21 = vld [vmem:[%s4075_s0 + $0x150] sm:$0xff]   ;;  %v3336_v22 = vld [vmem:[%s4075_s0 + $0x148] sm:$0xff]  }
   0x5   :  { %1460 = vst [vmem:[#allocation1 + $0xa8] sm:$0xff] %v3211_v6  ;;  %1476 = vst [vmem:[#allocation1 + $0xa0] sm:$0xff] %v3210_v5  ;;  %v3337_v23 = vld [vmem:[%s4075_s0 + $0x140] sm:$0xff]   ;;  %v3246_v24 = vunpack.c.l.bf16 %v3376_v14  ;;  %v3247_v25 = vunpack.c.h.bf16 %v3376_v14  ;;  %v3250_v26 = vunpack.c.l.bf16 %v3249_v15  ;;  %v3251_v27 = vunpack.c.h.bf16 %v3249_v15  ;;  %v3342_v28 = vld [vmem:[%s4075_s0 + $0x118] sm:$0xff]  }
   0x6   :  { %1492 = vst [vmem:[#allocation1 + $0x98] sm:$0xff] %v3215_v11  ;;  %1508 = vst [vmem:[#allocation1 + $0x90] sm:$0xff] %v3214_v10  ;;  %v3343_v29 = vld [vmem:[%s4075_s0 + $0x110] sm:$0xff]   ;;  %v3078_v30 = vunpack.c.l.bf16 %v3334_v16  ;;  %v3079_v31 = vunpack.c.h.bf16 %v3334_v16  ;;  %v3082_v32 = vunpack.c.l.bf16 %v3335_v21  ;;  %v3083_v33 = vunpack.c.h.bf16 %v3335_v21  ;;  %v3344_v34 = vld [vmem:[%s4075_s0 + $0x108] sm:$0xff]  }
   0x7   :  { %1524 = vst [vmem:[#allocation1 + $0x88] sm:$0xff] %v3219_v13  ;;  %1540 = vst [vmem:[#allocation1 + $0x80] sm:$0xff] %v3218_v12  ;;  %v3345_v35 = vld [vmem:[%s4075_s0 + $0x100] sm:$0xff]   ;;  %v3086_v36 = vunpack.c.l.bf16 %v3336_v22  ;;  %v3087_v37 = vunpack.c.h.bf16 %v3336_v22  ;;  %v3090_v38 = vunpack.c.l.bf16 %v3337_v23  ;;  %v3091_v39 = vunpack.c.h.bf16 %v3337_v23  ;;  %v3350_v40 = vld [vmem:[%s4075_s0 + $0xd8] sm:$0xff]  }
   0x8   :  { %1684 = vst [vmem:[#allocation1 + $0x38] sm:$0xff] %v3239_v18  ;;  %1700 = vst [vmem:[#allocation1 + $0x30] sm:$0xff] %v3238_v17  ;;  %v3351_v41 = vld [vmem:[%s4075_s0 + $0xd0] sm:$0xff]   ;;  %v3110_v42 = vunpack.c.l.bf16 %v3342_v28  ;;  %v3111_v43 = vunpack.c.h.bf16 %v3342_v28  ;;  %v3114_v44 = vunpack.c.l.bf16 %v3343_v29  ;;  %v3115_v45 = vunpack.c.h.bf16 %v3343_v29  ;;  %v3352_v46 = vld [vmem:[%s4075_s0 + $0xc8] sm:$0xff]  }
   0x9   :  { %1716 = vst [vmem:[#allocation1 + $0x28] sm:$0xff] %v3243_v20  ;;  %1732 = vst [vmem:[#allocation1 + $0x20] sm:$0xff] %v3242_v19  ;;  %v3353_v47 = vld [vmem:[%s4075_s0 + $0xc0] sm:$0xff]   ;;  %v3118_v48 = vunpack.c.l.bf16 %v3344_v34  ;;  %v3119_v49 = vunpack.c.h.bf16 %v3344_v34  ;;  %v3122_v50 = vunpack.c.l.bf16 %v3345_v35  ;;  %v3123_v51 = vunpack.c.h.bf16 %v3345_v35  ;;  %v3358_v52 = vld [vmem:[%s4075_s0 + $0x98] sm:$0xff]  }
   0xa   :  { %1748 = vst [vmem:[#allocation1 + $0x18] sm:$0xff] %v3247_v25  ;;  %1764 = vst [vmem:[#allocation1 + $0x10] sm:$0xff] %v3246_v24  ;;  %v3359_v53 = vld [vmem:[%s4075_s0 + $0x90] sm:$0xff]   ;;  %v3142_v54 = vunpack.c.l.bf16 %v3350_v40  ;;  %v3143_v55 = vunpack.c.h.bf16 %v3350_v40  ;;  %v3146_v56 = vunpack.c.l.bf16 %v3351_v41  ;;  %v3147_v57 = vunpack.c.h.bf16 %v3351_v41  ;;  %v3360_v58 = vld [vmem:[%s4075_s0 + $0x88] sm:$0xff]  }
   0xb   :  { %1779 = vst [vmem:[#allocation1 + $0x8] sm:$0xff] %v3251_v27  ;;  %1792 = vst [vmem:[#allocation1] sm:$0xff] %v3250_v26  ;;  %v3361_v59 = vld [vmem:[%s4075_s0 + $0x80] sm:$0xff]   ;;  %v3150_v61 = vunpack.c.l.bf16 %v3352_v46  ;;  %v3151_v62 = vunpack.c.h.bf16 %v3352_v46  ;;  %v3154_v63 = vunpack.c.l.bf16 %v3353_v47  ;;  %v3155_v0 = vunpack.c.h.bf16 %v3353_v47  ;;  %v3326_v1 = vld [vmem:[%s4075_s0 + $0x198] sm:$0xff]  }
   0xc   :  { %404 = vst [vmem:[#allocation1 + $0x2b8] sm:$0xff] %v3079_v31  ;;  %420 = vst [vmem:[#allocation1 + $0x2b0] sm:$0xff] %v3078_v30  ;;  %v2112_v60 = vld [vmem:[#allocation1 + $0x83] ss:$8 sm:$0xf0]   ;;  %v3174_v4 = vunpack.c.l.bf16 %v3358_v52  ;;  %v3175_v5 = vunpack.c.h.bf16 %v3358_v52  ;;  %v3178_v6 = vunpack.c.l.bf16 %v3359_v53  ;;  %v3179_v7 = vunpack.c.h.bf16 %v3359_v53 }
   0xd   :  { %436 = vst [vmem:[#allocation1 + $0x2a8] sm:$0xff] %v3083_v33  ;;  %452 = vst [vmem:[#allocation1 + $0x2a0] sm:$0xff] %v3082_v32  ;;  %v3327_v2 = vld [vmem:[%s4075_s0 + $0x190] sm:$0xff]   ;;  %v3328_v8 = vld [vmem:[%s4075_s0 + $0x188] sm:$0xff]   ;;  %v3182_v11 = vunpack.c.l.bf16 %v3360_v58  ;;  %v3183_v12 = vunpack.c.h.bf16 %v3360_v58  ;;  %v3186_v13 = vunpack.c.l.bf16 %v3361_v59  ;;  %v3187_v17 = vunpack.c.h.bf16 %v3361_v59 }
   0xe   :  { %468 = vst [vmem:[#allocation1 + $0x298] sm:$0xff] %v3087_v37  ;;  %484 = vst [vmem:[#allocation1 + $0x290] sm:$0xff] %v3086_v36  ;;  %v2110_v3 = vld [vmem:[#allocation1 + $0x83] ss:$8 sm:$0xf]   ;;  %v3046_v18 = vunpack.c.l.bf16 %v3326_v1  ;;  %v3047_v19 = vunpack.c.h.bf16 %v3326_v1  ;;  %v3050_v20 = vunpack.c.l.bf16 %v3327_v2  ;;  %v3051_v24 = vunpack.c.h.bf16 %v3327_v2 }
   0xf   :  { %500 = vst [vmem:[#allocation1 + $0x288] sm:$0xff] %v3091_v39  ;;  %516 = vst [vmem:[#allocation1 + $0x280] sm:$0xff] %v3090_v38  ;;  %v2114_v10 = vsel %vm2103_vm0, %v2112_v60, %v2110_v3  ;;  %v3329_v14 = vld [vmem:[%s4075_s0 + $0x180] sm:$0xff]   ;;  %v3370_v15 = vld [vmem:[%s4075_s0 + $0x38] sm:$0xff]   ;;  %v3054_v25 = vunpack.c.l.bf16 %v3328_v8  ;;  %v3055_v26 = vunpack.c.h.bf16 %v3328_v8 }
  0x10   :  { %660 = vst [vmem:[#allocation1 + $0x238] sm:$0xff] %v3111_v43  ;;  %676 = vst [vmem:[#allocation1 + $0x230] sm:$0xff] %v3110_v42  ;;  %v2102_v9 = vld [vmem:[#allocation1 + $0x3] ss:$8 sm:$0xf0]   ;;  %v3058_v31 = vunpack.c.l.bf16 %v3329_v14  ;;  %v3059_v32 = vunpack.c.h.bf16 %v3329_v14  ;;  %v3222_v33 = vunpack.c.l.bf16 %v3370_v15  ;;  %v3223_v38 = vunpack.c.h.bf16 %v3370_v15 }
  0x11   :  { %692 = vst [vmem:[#allocation1 + $0x228] sm:$0xff] %v3115_v45  ;;  %708 = vst [vmem:[#allocation1 + $0x220] sm:$0xff] %v3114_v44  ;;  %v3371_v21 = vld [vmem:[%s4075_s0 + $0x30] sm:$0xff]   ;;  %v3372_v27 = vld [vmem:[%s4075_s0 + $0x28] sm:$0xff]  }
  0x12   :  { %724 = vst [vmem:[#allocation1 + $0x218] sm:$0xff] %v3119_v49  ;;  %740 = vst [vmem:[#allocation1 + $0x210] sm:$0xff] %v3118_v48  ;;  %v2100_v16 = vld [vmem:[#allocation1 + $0x3] ss:$8 sm:$0xf]   ;;  %v3226_v39 = vunpack.c.l.bf16 %v3371_v21  ;;  %v3227_v40 = vunpack.c.h.bf16 %v3371_v21  ;;  %v3230_v43 = vunpack.c.l.bf16 %v3372_v27  ;;  %v3231_v44 = vunpack.c.h.bf16 %v3372_v27 }
  0x13   :  { %756 = vst [vmem:[#allocation1 + $0x208] sm:$0xff] %v3123_v51  ;;  %772 = vst [vmem:[#allocation1 + $0x200] sm:$0xff] %v3122_v50  ;;  %v2104_v22 = vsel %vm2103_vm0, %v2102_v9, %v2100_v16  ;;  %v3373_v28 = vld [vmem:[%s4075_s0 + $0x20] sm:$0xff]   ;;  %v3354_v34 = vld [vmem:[%s4075_s0 + $0xb8] sm:$0xff]  }
  0x14   :  { %916 = vst [vmem:[#allocation1 + $0x1b8] sm:$0xff] %v3143_v55  ;;  %932 = vst [vmem:[#allocation1 + $0x1b0] sm:$0xff] %v3142_v54  ;;  %v2156_v23 = vld [vmem:[#allocation1 + $0x283] ss:$8 sm:$0xf0]   ;;  %v3393_v29 = vpack.i.bf16 %v2114_v10, %v2104_v22  ;;  %v3234_v45 = vunpack.c.l.bf16 %v3373_v28  ;;  %v3235_v46 = vunpack.c.h.bf16 %v3373_v28  ;;  %v3158_v51 = vunpack.c.l.bf16 %v3354_v34 }
  0x15   :  { %948 = vst [vmem:[#allocation1 + $0x1a8] sm:$0xff] %v3147_v57  ;;  %964 = vst [vmem:[#allocation1 + $0x1a0] sm:$0xff] %v3146_v56  ;;  %v3355_v35 = vld [vmem:[%s4075_s0 + $0xb0] sm:$0xff]   ;;  %v3356_v41 = vld [vmem:[%s4075_s0 + $0xa8] sm:$0xff]   ;;  %v3159_v52 = vunpack.c.h.bf16 %v3354_v34 }
  0x16   :  { %980 = vst [vmem:[#allocation1 + $0x198] sm:$0xff] %v3151_v62  ;;  %996 = vst [vmem:[#allocation1 + $0x190] sm:$0xff] %v3150_v61  ;;  %v2154_v30 = vld [vmem:[#allocation1 + $0x283] ss:$8 sm:$0xf]   ;;  %3394 = vrot.lane.b32.xlu0 %v3393_v29, %s3498_s18  ;;  %v3162_v53 = vunpack.c.l.bf16 %v3355_v35  ;;  %v3163_v58 = vunpack.c.h.bf16 %v3355_v35  ;;  %v3166_v59 = vunpack.c.l.bf16 %v3356_v41  ;;  %v3167_v60 = vunpack.c.h.bf16 %v3356_v41 }
  0x17   :  { %1012 = vst [vmem:[#allocation1 + $0x188] sm:$0xff] %v3155_v0  ;;  %1028 = vst [vmem:[#allocation1 + $0x180] sm:$0xff] %v3154_v63  ;;  %v2158_v37 = vsel %vm2103_vm0, %v2156_v23, %v2154_v30  ;;  %v3357_v47 = vld [vmem:[%s4075_s0 + $0xa0] sm:$0xff]   ;;  %v3362_v48 = vld [vmem:[%s4075_s0 + $0x78] sm:$0xff]  }
  0x18   :  { %1172 = vst [vmem:[#allocation1 + $0x138] sm:$0xff] %v3175_v5  ;;  %1188 = vst [vmem:[#allocation1 + $0x130] sm:$0xff] %v3174_v4  ;;  %v2145_v36 = vld [vmem:[#allocation1 + $0x203] ss:$8 sm:$0xf0]   ;;  %v3170_v0 = vunpack.c.l.bf16 %v3357_v47  ;;  %v3171_v1 = vunpack.c.h.bf16 %v3357_v47  ;;  %v3190_v2 = vunpack.c.l.bf16 %v3362_v48  ;;  %v3191_v4 = vunpack.c.h.bf16 %v3362_v48 }
  0x19   :  { %1204 = vst [vmem:[#allocation1 + $0x128] sm:$0xff] %v3179_v7  ;;  %1220 = vst [vmem:[#allocation1 + $0x120] sm:$0xff] %v3178_v6  ;;  %v3363_v54 = vld [vmem:[%s4075_s0 + $0x70] sm:$0xff]   ;;  %v3364_v55 = vld [vmem:[%s4075_s0 + $0x68] sm:$0xff]  }
  0x1a   :  { %1236 = vst [vmem:[#allocation1 + $0x118] sm:$0xff] %v3183_v12  ;;  %1252 = vst [vmem:[#allocation1 + $0x110] sm:$0xff] %v3182_v11  ;;  %v2143_v42 = vld [vmem:[#allocation1 + $0x203] ss:$8 sm:$0xf]   ;;  %v3194_v5 = vunpack.c.l.bf16 %v3363_v54  ;;  %v3195_v6 = vunpack.c.h.bf16 %v3363_v54  ;;  %v3198_v7 = vunpack.c.l.bf16 %v3364_v55  ;;  %v3199_v12 = vunpack.c.h.bf16 %v3364_v55 }
  0x1b   :  { %1284 = vst [vmem:[#allocation1 + $0x100] sm:$0xff] %v3186_v13  ;;  %1268 = vst [vmem:[#allocation1 + $0x108] sm:$0xff] %v3187_v17  ;;  %v2147_v49 = vsel %vm2103_vm0, %v2145_v36, %v2143_v42  ;;  %v3365_v61 = vld [vmem:[%s4075_s0 + $0x60] sm:$0xff]   ;;  %v3338_v3 = vld [vmem:[%s4075_s0 + $0x138] sm:$0xff]  }
  0x1c   :  { %148 = vst [vmem:[#allocation1 + $0x338] sm:$0xff] %v3047_v19  ;;  %164 = vst [vmem:[#allocation1 + $0x330] sm:$0xff] %v3046_v18  ;;  %v2134_v50 = vld [vmem:[#allocation1 + $0x183] ss:$8 sm:$0xf0]   ;;  %v3403_v56 = vpack.i.bf16 %v2158_v37, %v2147_v49  ;;  %v3202_v13 = vunpack.c.l.bf16 %v3365_v61  ;;  %v3203_v14 = vunpack.c.h.bf16 %v3365_v61  ;;  %v3094_v15 = vunpack.c.l.bf16 %v3338_v3 }
  0x1d   :  { %196 = vst [vmem:[#allocation1 + $0x320] sm:$0xff] %v3050_v20  ;;  %180 = vst [vmem:[#allocation1 + $0x328] sm:$0xff] %v3051_v24  ;;  %v3339_v8 = vld [vmem:[%s4075_s0 + $0x130] sm:$0xff]   ;;  %v3340_v9 = vld [vmem:[%s4075_s0 + $0x128] sm:$0xff]   ;;  %v3095_v19 = vunpack.c.h.bf16 %v3338_v3 }
  0x1e   :  { %212 = vst [vmem:[#allocation1 + $0x318] sm:$0xff] %v3055_v26  ;;  %228 = vst [vmem:[#allocation1 + $0x310] sm:$0xff] %v3054_v25  ;;  %v2132_v57 = vld [vmem:[#allocation1 + $0x183] ss:$8 sm:$0xf]   ;;  %3404 = vrot.lane.b32.xlu1 %v3403_v56, %s3498_s18  ;;  %v3098_v20 = vunpack.c.l.bf16 %v3339_v8  ;;  %v3099_v21 = vunpack.c.h.bf16 %v3339_v8  ;;  %v3102_v26 = vunpack.c.l.bf16 %v3340_v9  ;;  %v3103_v27 = vunpack.c.h.bf16 %v3340_v9 }
  0x1f   :  { %244 = vst [vmem:[#allocation1 + $0x308] sm:$0xff] %v3059_v32  ;;  %260 = vst [vmem:[#allocation1 + $0x300] sm:$0xff] %v3058_v31  ;;  %v2136_v63 = vsel %vm2103_vm0, %v2134_v50, %v2132_v57  ;;  %v3341_v10 = vld [vmem:[%s4075_s0 + $0x120] sm:$0xff]   ;;  %v3346_v16 = vld [vmem:[%s4075_s0 + $0xf8] sm:$0xff]  }
  0x20   :  { %1572 = vst [vmem:[#allocation1 + $0x70] sm:$0xff] %v3222_v33  ;;  %1556 = vst [vmem:[#allocation1 + $0x78] sm:$0xff] %v3223_v38  ;;  %v2123_v62 = vld [vmem:[#allocation1 + $0x103] ss:$8 sm:$0xf0]   ;;  %v3106_v28 = vunpack.c.l.bf16 %v3341_v10  ;;  %v3107_v33 = vunpack.c.h.bf16 %v3341_v10  ;;  %v3126_v34 = vunpack.c.l.bf16 %v3346_v16  ;;  %v3127_v35 = vunpack.c.h.bf16 %v3346_v16 }
  0x21   :  { %1588 = vst [vmem:[#allocation1 + $0x68] sm:$0xff] %v3227_v40  ;;  %1604 = vst [vmem:[#allocation1 + $0x60] sm:$0xff] %v3226_v39  ;;  %v3347_v22 = vld [vmem:[%s4075_s0 + $0xf0] sm:$0xff]   ;;  %v3348_v23 = vld [vmem:[%s4075_s0 + $0xe8] sm:$0xff]  }
  0x22   :  { %1620 = vst [vmem:[#allocation1 + $0x58] sm:$0xff] %v3231_v44  ;;  %1636 = vst [vmem:[#allocation1 + $0x50] sm:$0xff] %v3230_v43  ;;  %v2121_v11 = vld [vmem:[#allocation1 + $0x103] ss:$8 sm:$0xf]   ;;  %v3130_v38 = vunpack.c.l.bf16 %v3347_v22  ;;  %v3131_v39 = vunpack.c.h.bf16 %v3347_v22  ;;  %v3134_v40 = vunpack.c.l.bf16 %v3348_v23  ;;  %v3135_v41 = vunpack.c.h.bf16 %v3348_v23 }
  0x23   :  { %1652 = vst [vmem:[#allocation1 + $0x48] sm:$0xff] %v3235_v46  ;;  %1668 = vst [vmem:[#allocation1 + $0x40] sm:$0xff] %v3234_v45  ;;  %v2125_v17 = vsel %vm2103_vm0, %v2123_v62, %v2121_v11  ;;  %v3349_v29 = vld [vmem:[%s4075_s0 + $0xe0] sm:$0xff]   ;;  %v3322_v30 = vld [vmem:[%s4075_s0 + $0x1b8] sm:$0xff]  }
  0x24   :  { %1044 = vst [vmem:[#allocation1 + $0x178] sm:$0xff] %v3159_v52  ;;  %1060 = vst [vmem:[#allocation1 + $0x170] sm:$0xff] %v3158_v51  ;;  %v2167_v18 = vld [vmem:[#allocation1 + $0x303] ss:$8 sm:$0xf0]   ;;  %v3398_v24 = vpack.i.bf16 %v2136_v63, %v2125_v17  ;;  %v3138_v44 = vunpack.c.l.bf16 %v3349_v29  ;;  %v3139_v45 = vunpack.c.h.bf16 %v3349_v29  ;;  %v3030_v46 = vunpack.c.l.bf16 %v3322_v30 }
  0x25   :  { %1092 = vst [vmem:[#allocation1 + $0x160] sm:$0xff] %v3162_v53  ;;  %1076 = vst [vmem:[#allocation1 + $0x168] sm:$0xff] %v3163_v58  ;;  %v3323_v36 = vld [vmem:[%s4075_s0 + $0x1b0] sm:$0xff]   ;;  %v3324_v42 = vld [vmem:[%s4075_s0 + $0x1a8] sm:$0xff]   ;;  %v3031_v62 = vunpack.c.h.bf16 %v3322_v30 }
  0x26   :  { %1108 = vst [vmem:[#allocation1 + $0x158] sm:$0xff] %v3167_v60  ;;  %1124 = vst [vmem:[#allocation1 + $0x150] sm:$0xff] %v3166_v59  ;;  %v2165_v25 = vld [vmem:[#allocation1 + $0x303] ss:$8 sm:$0xf]   ;;  %3399 = vrot.lane.b32.xlu0 %v3398_v24, %s3498_s18  ;;  %v3034_v63 = vunpack.c.l.bf16 %v3323_v36  ;;  %v3038_v3 = vunpack.c.l.bf16 %v3324_v42 }
  0x27   :  { %1140 = vst [vmem:[#allocation1 + $0x148] sm:$0xff] %v3171_v1  ;;  %1156 = vst [vmem:[#allocation1 + $0x140] sm:$0xff] %v3170_v0  ;;  %v2169_v31 = vsel %vm2103_vm0, %v2167_v18, %v2165_v25  ;;  %v3675_v47 = vld [vmem:[#allocation1] ss:$4 sm:$0xff]  }
  0x28   :  { %1316 = vst [vmem:[#allocation1 + $0xf0] sm:$0xff] %v3190_v2  ;;  %1300 = vst [vmem:[#allocation1 + $0xf8] sm:$0xff] %v3191_v4  ;;  %v2178_v32 = vld [vmem:[#allocation1 + $0x43] ss:$8 sm:$0xf0]   ;;  %v3035_v2 = vunpack.c.h.bf16 %v3323_v36  ;;  %v3039_v4 = vunpack.c.h.bf16 %v3324_v42 }
  0x29   :  { %1332 = vst [vmem:[#allocation1 + $0xe8] sm:$0xff] %v3195_v6  ;;  %1348 = vst [vmem:[#allocation1 + $0xe0] sm:$0xff] %v3194_v5  ;;  %v3677_v48 = vld [vmem:[#allocation1 + $0x20] ss:$4 sm:$0xff]  }
  0x2a   :  { %1380 = vst [vmem:[#allocation1 + $0xd0] sm:$0xff] %v3198_v7  ;;  %1364 = vst [vmem:[#allocation1 + $0xd8] sm:$0xff] %v3199_v12  ;;  %v2176_v37 = vld [vmem:[#allocation1 + $0x43] ss:$8 sm:$0xf]  }
  0x2b   :  { %1396 = vst [vmem:[#allocation1 + $0xc8] sm:$0xff] %v3203_v14  ;;  %1412 = vst [vmem:[#allocation1 + $0xc0] sm:$0xff] %v3202_v13  ;;  %v2180_v43 = vsel %vm2103_vm0, %v2178_v32, %v2176_v37  ;;  %v3679_v49 = vld [vmem:[#allocation1 + $0x80] ss:$4 sm:$0xff]  }
  0x2c   :  { %548 = vst [vmem:[#allocation1 + $0x270] sm:$0xff] %v3094_v15  ;;  %532 = vst [vmem:[#allocation1 + $0x278] sm:$0xff] %v3095_v19  ;;  %v3681_v50 = vld [vmem:[#allocation1 + $0xa0] ss:$4 sm:$0xff]   ;;  %v3408_v60 = vpack.i.bf16 %v2180_v43, %v2169_v31 }
  0x2d   :  { %564 = vst [vmem:[#allocation1 + $0x268] sm:$0xff] %v3099_v21  ;;  %580 = vst [vmem:[#allocation1 + $0x260] sm:$0xff] %v3098_v20  ;;  %v3683_v51 = vld [vmem:[#allocation1 + $0x200] ss:$4 sm:$0xff]  }
  0x2e   :  { %596 = vst [vmem:[#allocation1 + $0x258] sm:$0xff] %v3103_v27  ;;  %612 = vst [vmem:[#allocation1 + $0x250] sm:$0xff] %v3102_v26  ;;  %v3685_v52 = vld [vmem:[#allocation1 + $0x220] ss:$4 sm:$0xff]   ;;  %3409 = vrot.lane.b32.xlu1 %v3408_v60, %s3498_s18 }
  0x2f   :  { %644 = vst [vmem:[#allocation1 + $0x240] sm:$0xff] %v3106_v28  ;;  %628 = vst [vmem:[#allocation1 + $0x248] sm:$0xff] %v3107_v33  ;;  %v3687_v53 = vld [vmem:[#allocation1 + $0x280] ss:$4 sm:$0xff]  }
  0x30   :  { %788 = vst [vmem:[#allocation1 + $0x1f8] sm:$0xff] %v3127_v35  ;;  %804 = vst [vmem:[#allocation1 + $0x1f0] sm:$0xff] %v3126_v34  ;;  %v3689_v54 = vld [vmem:[#allocation1 + $0x2a0] ss:$4 sm:$0xff]  }
  0x31   :  { %v3691_v55 = vld [vmem:[#allocation1 + $0x100] ss:$4 sm:$0xff]   ;;  %v2200_v61 = vld [vmem:[#allocation1 + $0x143] ss:$8 sm:$0xf0]   ;;  %820 = vst [vmem:[#allocation1 + $0x1e8] sm:$0xff] %v3131_v39 }
  0x32   :  { %v3693_v56 = vld [vmem:[#allocation1 + $0x120] ss:$4 sm:$0xff]   ;;  %836 = vst [vmem:[#allocation1 + $0x1e0] sm:$0xff] %v3130_v38  ;;  %852 = vst [vmem:[#allocation1 + $0x1d8] sm:$0xff] %v3135_v41 }
  0x33   :  { %v3695_v57 = vld [vmem:[#allocation1 + $0x180] ss:$4 sm:$0xff]   ;;  %868 = vst [vmem:[#allocation1 + $0x1d0] sm:$0xff] %v3134_v40  ;;  %v2198_v1 = vld [vmem:[#allocation1 + $0x143] ss:$8 sm:$0xf]  }
  0x34   :  { %v3697_v58 = vld [vmem:[#allocation1 + $0x1a0] ss:$4 sm:$0xff]   ;;  %884 = vst [vmem:[#allocation1 + $0x1c8] sm:$0xff] %v3139_v45  ;;  %900 = vst [vmem:[#allocation1 + $0x1c0] sm:$0xff] %v3138_v44  ;;  %v3705_v7 = vsel %vm2103_vm0, %v2200_v61, %v2198_v1 }
  0x35   :  { %v3699_v59 = vld [vmem:[#allocation1 + $0x60] ss:$4 sm:$0xff]   ;;  %36 = vst [vmem:[#allocation1 + $0x370] sm:$0xff] %v3030_v46  ;;  %v2189_v6 = vld [vmem:[#allocation1 + $0xc3] ss:$8 sm:$0xf0]  }
  0x36   :  { %v1814_v0 = vld [vmem:[#allocation1 + $0x40] ss:$4 sm:$0xff]   ;;  %20 = vst [vmem:[#allocation1 + $0x378] sm:$0xff] %v3031_v62  ;;  %68 = vst [vmem:[#allocation1 + $0x360] sm:$0xff] %v3034_v63 }
  0x37   :  { %v3702_v5 = vld [vmem:[#allocation1 + $0xe0] ss:$4 sm:$0xff]   ;;  %v2187_v10 = vld [vmem:[#allocation1 + $0xc3] ss:$8 sm:$0xf]   ;;  %52 = vst [vmem:[#allocation1 + $0x368] sm:$0xff] %v3035_v2 }
  0x38   :  { %v3325_v8 = vld [vmem:[%s4075_s0 + $0x1a0] sm:$0xff]   ;;  %84 = vst [vmem:[#allocation1 + $0x358] sm:$0xff] %v3039_v4  ;;  %100 = vst [vmem:[#allocation1 + $0x350] sm:$0xff] %v3038_v3  ;;  %v3713_v13 = vld [vmem:[%s4075_s0 + $0x178] sm:$0xff]   ;;  %v3716_v14 = vsel %vm2103_vm0, %v2189_v6, %v2187_v10 }
  0x39   :  { %v1858_v9 = vld [vmem:[#allocation1 + $0xc0] ss:$4 sm:$0xff]   ;;  %v3042_v11 = vunpack.c.l.bf16 %v3325_v8  ;;  %v3043_v12 = vunpack.c.h.bf16 %v3325_v8  ;;  %v3718_v15 = vld [vmem:[#allocation1 + $0x243] ss:$8 sm:$0xf0]   ;;  %v3062_v18 = vunpack.c.l.bf16 %v3713_v13  ;;  %v3063_v19 = vunpack.c.h.bf16 %v3713_v13 }
  0x3a   :  { %v3720_v16 = vld [vmem:[#allocation1 + $0x2] ss:$8 sm:$0xf]   ;;  %v3413_v22 = vpack.i.bf16 %v3705_v7, %v3716_v14  ;;  %v3748_v28 = vld [vmem:[#allocation1 + $0x140] ss:$4 sm:$0xff]  }
  0x3b   :  { %v3722_v17 = vld [vmem:[#allocation1 + $0x2] ss:$8 sm:$0xf0]   ;;  %116 = vst [vmem:[#allocation1 + $0x348] sm:$0xff] %v3043_v12  ;;  %132 = vst [vmem:[#allocation1 + $0x340] sm:$0xff] %v3042_v11 }
  0x3c   :  { %v3729_v20 = vld [vmem:[%s4075_s0 + $0x170] sm:$0xff]   ;;  %v3734_v21 = vld [vmem:[%s4075_s0 + $0x168] sm:$0xff]   ;;  %v3746_v27 = vld [vmem:[%s4075_s0 + $0x160] sm:$0xff]   ;;  %1795 = vst.msk [vmem:[#allocation0] ss:$16 sm:$0x3] %vm1794_vm1, %v3675_v47   ;;  %3414 = vrot.lane.b32.xlu0 %v3413_v22, %s3498_s18  ;;  %v2257_v40 = vsel %vm2103_vm0, %v3722_v17, %v3720_v16 }
  0x3d   :  { %v3738_v23 = vld [vmem:[#allocation1 + $0x82] ss:$8 sm:$0xf]   ;;  %v3066_v24 = vunpack.c.l.bf16 %v3729_v20  ;;  %v3067_v25 = vunpack.c.h.bf16 %v3729_v20  ;;  %v3070_v26 = vunpack.c.l.bf16 %v3734_v21  ;;  %1797 = vst.msk [vmem:[#allocation0 - $0x1f] ss:$16 sm:$0xc] %vm1794_vm1, %v3675_v47   ;;  %v3071_v31 = vunpack.c.h.bf16 %v3734_v21 }
  0x3e   :  { %1799 = vst.msk [vmem:[#allocation0 - $0x3e] ss:$16 sm:$0x30] %vm1794_vm1, %v3675_v47   ;;  %1801 = vst.msk [vmem:[#allocation0 - $0x5d] ss:$16 sm:$0xc0] %vm1794_vm1, %v3675_v47   ;;  %v3074_v32 = vunpack.c.l.bf16 %v3746_v27  ;;  %v3075_v33 = vunpack.c.h.bf16 %v3746_v27 }
  0x3f   :  { %1806 = vst.msk [vmem:[#allocation0 + $0x4] ss:$16 sm:$0x3] %vm1794_vm1, %v3677_v48   ;;  %1808 = vst.msk [vmem:[#allocation0 - $0x1b] ss:$16 sm:$0xc] %vm1794_vm1, %v3677_v48  }
  0x40   :  { %1810 = vst.msk [vmem:[#allocation0 - $0x3a] ss:$16 sm:$0x30] %vm1794_vm1, %v3677_v48   ;;  %1812 = vst.msk [vmem:[#allocation0 - $0x59] ss:$16 sm:$0xc0] %vm1794_vm1, %v3677_v48  }
  0x41   :  { %1839 = vst.msk [vmem:[#allocation0 + $0x20] ss:$16 sm:$0x3] %vm1794_vm1, %v3679_v49   ;;  %1841 = vst.msk [vmem:[#allocation0 + $0x1] ss:$16 sm:$0xc] %vm1794_vm1, %v3679_v49  }
  0x42   :  { %1843 = vst.msk [vmem:[#allocation0 - $0x1e] ss:$16 sm:$0x30] %vm1794_vm1, %v3679_v49   ;;  %1845 = vst.msk [vmem:[#allocation0 - $0x3d] ss:$16 sm:$0xc0] %vm1794_vm1, %v3679_v49  }
  0x43   :  { %1850 = vst.msk [vmem:[#allocation0 + $0x24] ss:$16 sm:$0x3] %vm1794_vm1, %v3681_v50   ;;  %1852 = vst.msk [vmem:[#allocation0 + $0x5] ss:$16 sm:$0xc] %vm1794_vm1, %v3681_v50  }
  0x44   :  { %1854 = vst.msk [vmem:[#allocation0 - $0x1a] ss:$16 sm:$0x30] %vm1794_vm1, %v3681_v50   ;;  %1856 = vst.msk [vmem:[#allocation0 - $0x39] ss:$16 sm:$0xc0] %vm1794_vm1, %v3681_v50  }
  0x45   :  { %1817 = vst.msk [vmem:[#allocation0 + $0x8] ss:$16 sm:$0x3] %vm1794_vm1, %v1814_v0   ;;  %1819 = vst.msk [vmem:[#allocation0 - $0x17] ss:$16 sm:$0xc] %vm1794_vm1, %v1814_v0  }
  0x46   :  { %1821 = vst.msk [vmem:[#allocation0 - $0x36] ss:$16 sm:$0x30] %vm1794_vm1, %v1814_v0   ;;  %1823 = vst.msk [vmem:[#allocation0 - $0x55] ss:$16 sm:$0xc0] %vm1794_vm1, %v1814_v0  }
  0x47   :  { %1828 = vst.msk [vmem:[#allocation0 + $0xc] ss:$16 sm:$0x3] %vm1794_vm1, %v3699_v59   ;;  %1830 = vst.msk [vmem:[#allocation0 - $0x13] ss:$16 sm:$0xc] %vm1794_vm1, %v3699_v59  }
  0x48   :  { %1832 = vst.msk [vmem:[#allocation0 - $0x32] ss:$16 sm:$0x30] %vm1794_vm1, %v3699_v59   ;;  %1834 = vst.msk [vmem:[#allocation0 - $0x51] ss:$16 sm:$0xc0] %vm1794_vm1, %v3699_v59  }
  0x49   :  { %1861 = vst.msk [vmem:[#allocation0 + $0x28] ss:$16 sm:$0x3] %vm1794_vm1, %v1858_v9   ;;  %1863 = vst.msk [vmem:[#allocation0 + $0x9] ss:$16 sm:$0xc] %vm1794_vm1, %v1858_v9  }
  0x4a   :  { %1865 = vst.msk [vmem:[#allocation0 - $0x16] ss:$16 sm:$0x30] %vm1794_vm1, %v1858_v9   ;;  %1867 = vst.msk [vmem:[#allocation0 - $0x35] ss:$16 sm:$0xc0] %vm1794_vm1, %v1858_v9  }
  0x4b   :  { %1872 = vst.msk [vmem:[#allocation0 + $0x2c] ss:$16 sm:$0x3] %vm1794_vm1, %v3702_v5   ;;  %1874 = vst.msk [vmem:[#allocation0 + $0xd] ss:$16 sm:$0xc] %vm1794_vm1, %v3702_v5  }
  0x4c   :  { %1876 = vst.msk [vmem:[#allocation0 - $0x12] ss:$16 sm:$0x30] %vm1794_vm1, %v3702_v5   ;;  %1878 = vst.msk [vmem:[#allocation0 - $0x31] ss:$16 sm:$0xc0] %vm1794_vm1, %v3702_v5  }
  0x4d   :  { %1883 = vst.msk [vmem:[#allocation0 + $0x40] ss:$16 sm:$0x3] %vm1794_vm1, %v3691_v55   ;;  %1885 = vst.msk [vmem:[#allocation0 + $0x21] ss:$16 sm:$0xc] %vm1794_vm1, %v3691_v55  }
  0x4e   :  { %1887 = vst.msk [vmem:[#allocation0 + $0x2] ss:$16 sm:$0x30] %vm1794_vm1, %v3691_v55   ;;  %1889 = vst.msk [vmem:[#allocation0 - $0x1d] ss:$16 sm:$0xc0] %vm1794_vm1, %v3691_v55  }
  0x4f   :  { %1894 = vst.msk [vmem:[#allocation0 + $0x44] ss:$16 sm:$0x3] %vm1794_vm1, %v3693_v56   ;;  %1896 = vst.msk [vmem:[#allocation0 + $0x25] ss:$16 sm:$0xc] %vm1794_vm1, %v3693_v56  }
  0x50   :  { %1898 = vst.msk [vmem:[#allocation0 + $0x6] ss:$16 sm:$0x30] %vm1794_vm1, %v3693_v56   ;;  %1900 = vst.msk [vmem:[#allocation0 - $0x19] ss:$16 sm:$0xc0] %vm1794_vm1, %v3693_v56  }
  0x51   :  { %1927 = vst.msk [vmem:[#allocation0 + $0x60] ss:$16 sm:$0x3] %vm1794_vm1, %v3695_v57   ;;  %1929 = vst.msk [vmem:[#allocation0 + $0x41] ss:$16 sm:$0xc] %vm1794_vm1, %v3695_v57  }
  0x52   :  { %1931 = vst.msk [vmem:[#allocation0 + $0x22] ss:$16 sm:$0x30] %vm1794_vm1, %v3695_v57   ;;  %1933 = vst.msk [vmem:[#allocation0 + $0x3] ss:$16 sm:$0xc0] %vm1794_vm1, %v3695_v57  }
  0x53   :  { %1938 = vst.msk [vmem:[#allocation0 + $0x64] ss:$16 sm:$0x3] %vm1794_vm1, %v3697_v58   ;;  %1940 = vst.msk [vmem:[#allocation0 + $0x45] ss:$16 sm:$0xc] %vm1794_vm1, %v3697_v58  }
  0x54   :  { %1942 = vst.msk [vmem:[#allocation0 + $0x26] ss:$16 sm:$0x30] %vm1794_vm1, %v3697_v58   ;;  %1944 = vst.msk [vmem:[#allocation0 + $0x7] ss:$16 sm:$0xc0] %vm1794_vm1, %v3697_v58  }
  0x55   :  { %1971 = vst.msk [vmem:[#allocation0 + $0x80] ss:$16 sm:$0x3] %vm1794_vm1, %v3683_v51   ;;  %1973 = vst.msk [vmem:[#allocation0 + $0x61] ss:$16 sm:$0xc] %vm1794_vm1, %v3683_v51  }
  0x56   :  { %1975 = vst.msk [vmem:[#allocation0 + $0x42] ss:$16 sm:$0x30] %vm1794_vm1, %v3683_v51   ;;  %1977 = vst.msk [vmem:[#allocation0 + $0x23] ss:$16 sm:$0xc0] %vm1794_vm1, %v3683_v51  }
  0x57   :  { %1982 = vst.msk [vmem:[#allocation0 + $0x84] ss:$16 sm:$0x3] %vm1794_vm1, %v3685_v52   ;;  %1984 = vst.msk [vmem:[#allocation0 + $0x65] ss:$16 sm:$0xc] %vm1794_vm1, %v3685_v52  }
  0x58   :  { %1986 = vst.msk [vmem:[#allocation0 + $0x46] ss:$16 sm:$0x30] %vm1794_vm1, %v3685_v52   ;;  %1988 = vst.msk [vmem:[#allocation0 + $0x27] ss:$16 sm:$0xc0] %vm1794_vm1, %v3685_v52  }
  0x59   :  { %2015 = vst.msk [vmem:[#allocation0 + $0xa0] ss:$16 sm:$0x3] %vm1794_vm1, %v3687_v53   ;;  %2017 = vst.msk [vmem:[#allocation0 + $0x81] ss:$16 sm:$0xc] %vm1794_vm1, %v3687_v53  }
  0x5a   :  { %2019 = vst.msk [vmem:[#allocation0 + $0x62] ss:$16 sm:$0x30] %vm1794_vm1, %v3687_v53   ;;  %2021 = vst.msk [vmem:[#allocation0 + $0x43] ss:$16 sm:$0xc0] %vm1794_vm1, %v3687_v53  }
  0x5b   :  { %2026 = vst.msk [vmem:[#allocation0 + $0xa4] ss:$16 sm:$0x3] %vm1794_vm1, %v3689_v54   ;;  %2028 = vst.msk [vmem:[#allocation0 + $0x85] ss:$16 sm:$0xc] %vm1794_vm1, %v3689_v54  }
  0x5c   :  { %2030 = vst.msk [vmem:[#allocation0 + $0x66] ss:$16 sm:$0x30] %vm1794_vm1, %v3689_v54   ;;  %2032 = vst.msk [vmem:[#allocation0 + $0x47] ss:$16 sm:$0xc0] %vm1794_vm1, %v3689_v54  }
  0x5d   :  { %v2220_v29 = vld [vmem:[#allocation1 + $0x243] ss:$8 sm:$0xf]   ;;  %v2265_v30 = vld [vmem:[#allocation1 + $0x82] ss:$8 sm:$0xf0]  }
  0x5e   :  { %276 = vst [vmem:[#allocation1 + $0x2f8] sm:$0xff] %v3063_v19  ;;  %292 = vst [vmem:[#allocation1 + $0x2f0] sm:$0xff] %v3062_v18  ;;  %v2211_v34 = vld [vmem:[#allocation1 + $0x1c3] ss:$8 sm:$0xf0]   ;;  %v2224_v35 = vsel %vm2103_vm0, %v3718_v15, %v2220_v29  ;;  %v2267_v41 = vsel %vm2103_vm0, %v2265_v30, %v3738_v23  ;;  %s3499_s0 = smov 64  }
  0x5f   :  { %1905 = vst.msk [vmem:[#allocation0 + $0x48] ss:$16 sm:$0x3] %vm1794_vm1, %v3748_v28   ;;  %1907 = vst.msk [vmem:[#allocation0 + $0x29] ss:$16 sm:$0xc] %vm1794_vm1, %v3748_v28   ;;  %v3428_v51 = vpack.i.bf16 %v2267_v41, %v2257_v40 }
  0x60   :  { %1909 = vst.msk [vmem:[#allocation0 + $0xa] ss:$16 sm:$0x30] %vm1794_vm1, %v3748_v28   ;;  %1911 = vst.msk [vmem:[#allocation0 - $0x15] ss:$16 sm:$0xc0] %vm1794_vm1, %v3748_v28  }
  0x61   :  { %308 = vst [vmem:[#allocation1 + $0x2e8] sm:$0xff] %v3067_v25  ;;  %324 = vst [vmem:[#allocation1 + $0x2e0] sm:$0xff] %v3066_v24  ;;  %v1946_v36 = vld [vmem:[#allocation1 + $0x1c0] ss:$4 sm:$0xff]  }
  0x62   :  { %356 = vst [vmem:[#allocation1 + $0x2d0] sm:$0xff] %v3070_v26  ;;  %v2209_v37 = vld [vmem:[#allocation1 + $0x1c3] ss:$8 sm:$0xf]   ;;  %340 = vst [vmem:[#allocation1 + $0x2d8] sm:$0xff] %v3071_v31 }
  0x63   :  { %372 = vst [vmem:[#allocation1 + $0x2c8] sm:$0xff] %v3075_v33  ;;  %388 = vst [vmem:[#allocation1 + $0x2c0] sm:$0xff] %v3074_v32  ;;  %v2296_v38 = vld [vmem:[#allocation1 + $0x202] ss:$8 sm:$0xf]   ;;  %v2213_v39 = vsel %vm2103_vm0, %v2211_v34, %v2209_v37 }
  0x64   :  { %v2298_v42 = vld [vmem:[#allocation1 + $0x202] ss:$8 sm:$0xf0]   ;;  %1949 = vst.msk [vmem:[#allocation0 + $0x68] ss:$16 sm:$0x3] %vm1794_vm1, %v1946_v36   ;;  %v3418_v44 = vpack.i.bf16 %v2224_v35, %v2213_v39 }
  0x65   :  { %v2307_v43 = vld [vmem:[#allocation1 + $0x282] ss:$8 sm:$0xf]   ;;  %1951 = vst.msk [vmem:[#allocation0 + $0x49] ss:$16 sm:$0xc] %vm1794_vm1, %v1946_v36   ;;  %v2300_v54 = vsel %vm2103_vm0, %v2298_v42, %v2296_v38 }
  0x66   :  { %1953 = vst.msk [vmem:[#allocation0 + $0x2a] ss:$16 sm:$0x30] %vm1794_vm1, %v1946_v36   ;;  %1955 = vst.msk [vmem:[#allocation0 + $0xb] ss:$16 sm:$0xc0] %vm1794_vm1, %v1946_v36   ;;  %3419 = vrot.lane.b32.xlu1 %v3418_v44, %s3498_s18 }
  0x67   :  { %v2244_v45 = vld [vmem:[#allocation1 + $0x343] ss:$8 sm:$0xf0]   ;;  %v2309_v46 = vld [vmem:[#allocation1 + $0x282] ss:$8 sm:$0xf0]  }
  0x68   :  { %v2274_v47 = vld [vmem:[#allocation1 + $0x102] ss:$8 sm:$0xf]   ;;  %v2242_v52 = vld [vmem:[#allocation1 + $0x343] ss:$8 sm:$0xf]   ;;  %v2311_v55 = vsel %vm2103_vm0, %v2309_v46, %v2307_v43 }
  0x69   :  { %v2276_v48 = vld [vmem:[#allocation1 + $0x102] ss:$8 sm:$0xf0]   ;;  %v2233_v58 = vld [vmem:[#allocation1 + $0x2c3] ss:$8 sm:$0xf0]   ;;  %v2246_v59 = vsel %vm2103_vm0, %v2244_v45, %v2242_v52  ;;  %v3438_v0 = vpack.i.bf16 %v2311_v55, %v2300_v54 }
  0x6a   :  { %v2285_v49 = vld [vmem:[#allocation1 + $0x182] ss:$8 sm:$0xf]   ;;  %v2231_v61 = vld [vmem:[#allocation1 + $0x2c3] ss:$8 sm:$0xf]   ;;  %3429 = vrot.lane.b32.xlu1 %v3428_v51, %s3499_s0  ;;  %v2278_v1 = vsel %vm2103_vm0, %v2276_v48, %v2274_v47 }
  0x6b   :  { %v2287_v50 = vld [vmem:[#allocation1 + $0x182] ss:$8 sm:$0xf0]   ;;  %v1913_v62 = vld [vmem:[#allocation1 + $0x160] ss:$4 sm:$0xff]   ;;  %v2235_v63 = vsel %vm2103_vm0, %v2233_v58, %v2231_v61 }
  0x6c   :  { %v2340_v53 = vld [vmem:[#allocation1 + $0xc2] ss:$8 sm:$0xf]   ;;  %v2289_v2 = vsel %vm2103_vm0, %v2287_v50, %v2285_v49  ;;  %v2056_v3 = vld [vmem:[#allocation1 + $0x300] ss:$4 sm:$0xff]   ;;  %v3423_v5 = vpack.i.bf16 %v2246_v59, %v2235_v63 }
  0x6d   :  { %v2342_v56 = vld [vmem:[#allocation1 + $0xc2] ss:$8 sm:$0xf0]   ;;  %1916 = vst.msk [vmem:[#allocation0 + $0x4c] ss:$16 sm:$0x3] %vm1794_vm1, %v1913_v62   ;;  %v3433_v12 = vpack.i.bf16 %v2289_v2, %v2278_v1 }
  0x6e   :  { %v2351_v57 = vld [vmem:[#allocation1 + $0x142] ss:$8 sm:$0xf]   ;;  %1918 = vst.msk [vmem:[#allocation0 + $0x2d] ss:$16 sm:$0xc] %vm1794_vm1, %v1913_v62   ;;  %v2344_v6 = vsel %vm2103_vm0, %v2342_v56, %v2340_v53  ;;  %3424 = vrot.lane.b32.xlu0 %v3423_v5, %s3498_s18  ;;  %3439 = vrot.lane.b32.xlu1 %v3438_v0, %s3499_s0 }
  0x6f   :  { %v2353_v60 = vld [vmem:[#allocation1 + $0x142] ss:$8 sm:$0xf0]   ;;  %1920 = vst.msk [vmem:[#allocation0 + $0xe] ss:$16 sm:$0x30] %vm1794_vm1, %v1913_v62  }
  0x70   :  { %v2318_v4 = vld [vmem:[#allocation1 + $0x302] ss:$8 sm:$0xf]   ;;  %1922 = vst.msk [vmem:[#allocation0 - $0x11] ss:$16 sm:$0xc0] %vm1794_vm1, %v1913_v62   ;;  %v2355_v7 = vsel %vm2103_vm0, %v2353_v60, %v2351_v57 }
  0x71   :  { %v2320_v8 = vld [vmem:[#allocation1 + $0x302] ss:$8 sm:$0xf0]   ;;  %2059 = vst.msk [vmem:[#allocation0 + $0xc0] ss:$16 sm:$0x3] %vm1794_vm1, %v2056_v3   ;;  %v3448_v15 = vpack.i.bf16 %v2355_v7, %v2344_v6 }
  0x72   :  { %v2329_v9 = vld [vmem:[#allocation1 + $0x42] ss:$8 sm:$0xf]   ;;  %2061 = vst.msk [vmem:[#allocation0 + $0xa1] ss:$16 sm:$0xc] %vm1794_vm1, %v2056_v3   ;;  %v2322_v16 = vsel %vm2103_vm0, %v2320_v8, %v2318_v4  ;;  %3434 = vrot.lane.b32.xlu0 %v3433_v12, %s3499_s0 }
  0x73   :  { %2063 = vst.msk [vmem:[#allocation0 + $0x82] ss:$16 sm:$0x30] %vm1794_vm1, %v2056_v3   ;;  %2065 = vst.msk [vmem:[#allocation0 + $0x63] ss:$16 sm:$0xc0] %vm1794_vm1, %v2056_v3   ;;  %3449 = vrot.lane.b32.xlu1 %v3448_v15, %s3499_s0 }
  0x74   :  { %v2331_v10 = vld [vmem:[#allocation1 + $0x42] ss:$8 sm:$0xf0]   ;;  %v2067_v11 = vld [vmem:[#allocation1 + $0x320] ss:$4 sm:$0xff]   ;;  %s3500_s18 = smov 32  }
  0x75   :  { %v2045_v13 = vld [vmem:[#allocation1 + $0x2e0] ss:$4 sm:$0xff]   ;;  %v2384_v14 = vld [vmem:[#allocation1 + $0x2c2] ss:$8 sm:$0xf]   ;;  %v2333_v17 = vsel %vm2103_vm0, %v2331_v10, %v2329_v9 }
  0x76   :  { %2070 = vst.msk [vmem:[#allocation0 + $0xc4] ss:$16 sm:$0x3] %vm1794_vm1, %v2067_v11   ;;  %2072 = vst.msk [vmem:[#allocation0 + $0xa5] ss:$16 sm:$0xc] %vm1794_vm1, %v2067_v11   ;;  %v3443_v26 = vpack.i.bf16 %v2333_v17, %v2322_v16 }
  0x77   :  { %2074 = vst.msk [vmem:[#allocation0 + $0x86] ss:$16 sm:$0x30] %vm1794_vm1, %v2067_v11   ;;  %2076 = vst.msk [vmem:[#allocation0 + $0x67] ss:$16 sm:$0xc0] %vm1794_vm1, %v2067_v11  }
  0x78   :  { %v2386_v18 = vld [vmem:[#allocation1 + $0x2c2] ss:$8 sm:$0xf0]   ;;  %2048 = vst.msk [vmem:[#allocation0 + $0xac] ss:$16 sm:$0x3] %vm1794_vm1, %v2045_v13   ;;  %3444 = vrot.lane.b32.xlu0 %v3443_v26, %s3499_s0 }
  0x79   :  { %v2395_v19 = vld [vmem:[#allocation1 + $0x342] ss:$8 sm:$0xf]   ;;  %2050 = vst.msk [vmem:[#allocation0 + $0x8d] ss:$16 sm:$0xc] %vm1794_vm1, %v2045_v13   ;;  %v2388_v20 = vsel %vm2103_vm0, %v2386_v18, %v2384_v14 }
  0x7a   :  { %2052 = vst.msk [vmem:[#allocation0 + $0x6e] ss:$16 sm:$0x30] %vm1794_vm1, %v2045_v13   ;;  %2054 = vst.msk [vmem:[#allocation0 + $0x4f] ss:$16 sm:$0xc0] %vm1794_vm1, %v2045_v13  }
  0x7b   :  { %v2397_v21 = vld [vmem:[#allocation1 + $0x342] ss:$8 sm:$0xf0]   ;;  %v1957_v22 = vld [vmem:[#allocation1 + $0x1e0] ss:$4 sm:$0xff]  }
  0x7c   :  { %v2399_v23 = vsel %vm2103_vm0, %v2397_v21, %v2395_v19  ;;  %v2362_v24 = vld [vmem:[#allocation1 + $0x1c2] ss:$8 sm:$0xf]   ;;  %1960 = vst.msk [vmem:[#allocation0 + $0x6c] ss:$16 sm:$0x3] %vm1794_vm1, %v1957_v22  }
  0x7d   :  { %v2364_v25 = vld [vmem:[#allocation1 + $0x1c2] ss:$8 sm:$0xf0]   ;;  %1962 = vst.msk [vmem:[#allocation0 + $0x4d] ss:$16 sm:$0xc] %vm1794_vm1, %v1957_v22   ;;  %v3458_v29 = vpack.i.bf16 %v2399_v23, %v2388_v20 }
  0x7e   :  { %1964 = vst.msk [vmem:[#allocation0 + $0x2e] ss:$16 sm:$0x30] %vm1794_vm1, %v1957_v22   ;;  %1966 = vst.msk [vmem:[#allocation0 + $0xf] ss:$16 sm:$0xc0] %vm1794_vm1, %v1957_v22   ;;  %v2366_v30 = vsel %vm2103_vm0, %v2364_v25, %v2362_v24 }
  0x7f   :  { %v2373_v27 = vld [vmem:[#allocation1 + $0x242] ss:$8 sm:$0xf]   ;;  %v2427_v32 = vld [vmem:[#allocation1 + $0x101] ss:$8 sm:$0xf]   ;;  %3459 = vrot.lane.b32.xlu1 %v3458_v29, %s3499_s0 }
  0x80   :  { %v2375_v28 = vld [vmem:[#allocation1 + $0x242] ss:$8 sm:$0xf0]   ;;  %v2429_v33 = vld [vmem:[#allocation1 + $0x101] ss:$8 sm:$0xf0]  }
  0x81   :  { %v2377_v31 = vsel %vm2103_vm0, %v2375_v28, %v2373_v27  ;;  %v2431_v34 = vsel %vm2103_vm0, %v2429_v33, %v2427_v32  ;;  %v2438_v35 = vld [vmem:[#allocation1 + $0x181] ss:$8 sm:$0xf]   ;;  %v1990_v60 = vld [vmem:[#allocation1 + $0x240] ss:$4 sm:$0xff]  }
  0x82   :  { %v2440_v36 = vld [vmem:[#allocation1 + $0x181] ss:$8 sm:$0xf0]   ;;  %v3453_v40 = vpack.i.bf16 %v2377_v31, %v2366_v30  ;;  %1993 = vst.msk [vmem:[#allocation0 + $0x88] ss:$16 sm:$0x3] %vm1794_vm1, %v1990_v60  }
  0x83   :  { %v2442_v37 = vsel %vm2103_vm0, %v2440_v36, %v2438_v35  ;;  %v2406_v38 = vld [vmem:[#allocation1 + $0x1] ss:$8 sm:$0xf]   ;;  %1995 = vst.msk [vmem:[#allocation0 + $0x69] ss:$16 sm:$0xc] %vm1794_vm1, %v1990_v60  }
  0x84   :  { %v2408_v39 = vld [vmem:[#allocation1 + $0x1] ss:$8 sm:$0xf0]   ;;  %v3468_v43 = vpack.i.bf16 %v2442_v37, %v2431_v34  ;;  %3454 = vrot.lane.b32.xlu0 %v3453_v40, %s3499_s0  ;;  %1997 = vst.msk [vmem:[#allocation0 + $0x4a] ss:$16 sm:$0x30] %vm1794_vm1, %v1990_v60  }
  0x85   :  { %v2416_v41 = vld [vmem:[#allocation1 + $0x81] ss:$8 sm:$0xf]   ;;  %v2410_v44 = vsel %vm2103_vm0, %v2408_v39, %v2406_v38  ;;  %1999 = vst.msk [vmem:[#allocation0 + $0x2b] ss:$16 sm:$0xc0] %vm1794_vm1, %v1990_v60  }
  0x86   :  { %v2418_v42 = vld [vmem:[#allocation1 + $0x81] ss:$8 sm:$0xf0]   ;;  %3469 = vrot.lane.b32.xlu1 %v3468_v43, %s3500_s18  ;;  %v2001_v2 = vld [vmem:[#allocation1 + $0x260] ss:$4 sm:$0xff]  }
  0x87   :  { %v2420_v45 = vsel %vm2103_vm0, %v2418_v42, %v2416_v41  ;;  %v2471_v46 = vld [vmem:[#allocation1 + $0x301] ss:$8 sm:$0xf]   ;;  %2004 = vst.msk [vmem:[#allocation0 + $0x8c] ss:$16 sm:$0x3] %vm1794_vm1, %v2001_v2  }
  0x88   :  { %v2473_v47 = vld [vmem:[#allocation1 + $0x301] ss:$8 sm:$0xf0]   ;;  %v3463_v54 = vpack.i.bf16 %v2420_v45, %v2410_v44  ;;  %2006 = vst.msk [vmem:[#allocation0 + $0x6d] ss:$16 sm:$0xc] %vm1794_vm1, %v2001_v2   ;;  %v3395_v44 = vpop.permute.xlu0 %3394 }
  0x89   :  { %v2475_v48 = vsel %vm2103_vm0, %v2473_v47, %v2471_v46  ;;  %v2482_v49 = vld [vmem:[#allocation1 + $0x41] ss:$8 sm:$0xf]   ;;  %2008 = vst.msk [vmem:[#allocation0 + $0x4e] ss:$16 sm:$0x30] %vm1794_vm1, %v2001_v2   ;;  %v3397_v45 = vunpack.i.h.bf16 %v3395_v44  ;;  %v3396_v46 = vunpack.i.l.bf16 %v3395_v44 }
  0x8a   :  { %v2484_v50 = vld [vmem:[#allocation1 + $0x41] ss:$8 sm:$0xf0]   ;;  %3464 = vrot.lane.b32.xlu0 %v3463_v54, %s3500_s18  ;;  %2010 = vst.msk [vmem:[#allocation0 + $0x2f] ss:$16 sm:$0xc0] %vm1794_vm1, %v2001_v2  }
  0x8b   :  { %v2486_v51 = vsel %vm2103_vm0, %v2484_v50, %v2482_v49  ;;  %v2449_v52 = vld [vmem:[#allocation1 + $0x201] ss:$8 sm:$0xf]   ;;  %v2034_v12 = vld [vmem:[#allocation1 + $0x2c0] ss:$4 sm:$0xff]   ;;  %2108 = vst.msk [vmem:[#allocation0] sm:$0xff] %vm2107_vm2, %v3396_v46  }
  0x8c   :  { %v2451_v53 = vld [vmem:[#allocation1 + $0x201] ss:$8 sm:$0xf0]   ;;  %v3478_v57 = vpack.i.bf16 %v2486_v51, %v2475_v48  ;;  %v2078_v13 = vld [vmem:[#allocation1 + $0x340] ss:$4 sm:$0xff]   ;;  %2119 = vst.msk [vmem:[#allocation0 + $0x20] sm:$0xff] %vm2107_vm2, %v3397_v45  }
  0x8d   :  { %v2460_v55 = vld [vmem:[#allocation1 + $0x281] ss:$8 sm:$0xf]   ;;  %v2453_v58 = vsel %vm2103_vm0, %v2451_v53, %v2449_v52  ;;  %v2089_v14 = vld [vmem:[#allocation1 + $0x360] ss:$4 sm:$0xff]  }
  0x8e   :  { %v2462_v56 = vld [vmem:[#allocation1 + $0x281] ss:$8 sm:$0xf0]   ;;  %3479 = vrot.lane.b32.xlu1 %v3478_v57, %s3500_s18  ;;  %2037 = vst.msk [vmem:[#allocation0 + $0xa8] ss:$16 sm:$0x3] %vm1794_vm1, %v2034_v12  }
  0x8f   :  { %v2464_v59 = vsel %vm2103_vm0, %v2462_v56, %v2460_v55  ;;  %v2515_v61 = vld [vmem:[#allocation1 + $0x1c1] ss:$8 sm:$0xf]   ;;  %2039 = vst.msk [vmem:[#allocation0 + $0x89] ss:$16 sm:$0xc] %vm1794_vm1, %v2034_v12  }
  0x90   :  { %v2517_v62 = vld [vmem:[#allocation1 + $0x1c1] ss:$8 sm:$0xf0]   ;;  %v3473_v3 = vpack.i.bf16 %v2464_v59, %v2453_v58  ;;  %2041 = vst.msk [vmem:[#allocation0 + $0x6a] ss:$16 sm:$0x30] %vm1794_vm1, %v2034_v12   ;;  %v3405_v47 = vpop.permute.xlu1 %3404 }
  0x91   :  { %v2526_v63 = vld [vmem:[#allocation1 + $0x241] ss:$8 sm:$0xf]   ;;  %v2519_v0 = vsel %vm2103_vm0, %v2517_v62, %v2515_v61  ;;  %2043 = vst.msk [vmem:[#allocation0 + $0x4b] ss:$16 sm:$0xc0] %vm1794_vm1, %v2034_v12   ;;  %v3407_v48 = vunpack.i.h.bf16 %v3405_v47  ;;  %v3406_v49 = vunpack.i.l.bf16 %v3405_v47 }
  0x92   :  { %v2528_v1 = vld [vmem:[#allocation1 + $0x241] ss:$8 sm:$0xf0]   ;;  %2081 = vst.msk [vmem:[#allocation0 + $0xc8] ss:$16 sm:$0x3] %vm1794_vm1, %v2078_v13   ;;  %3474 = vrot.lane.b32.xlu0 %v3473_v3, %s3500_s18 }
  0x93   :  { %v2530_v4 = vsel %vm2103_vm0, %v2528_v1, %v2526_v63  ;;  %v2493_v5 = vld [vmem:[#allocation1 + $0xc1] ss:$8 sm:$0xf]   ;;  %2083 = vst.msk [vmem:[#allocation0 + $0xa9] ss:$16 sm:$0xc] %vm1794_vm1, %v2078_v13  }
  0x94   :  { %v2495_v6 = vld [vmem:[#allocation1 + $0xc1] ss:$8 sm:$0xf0]   ;;  %v3488_v7 = vpack.i.bf16 %v2530_v4, %v2519_v0  ;;  %2085 = vst.msk [vmem:[#allocation0 + $0x8a] ss:$16 sm:$0x30] %vm1794_vm1, %v2078_v13  }
  0x95   :  { %v2497_v8 = vsel %vm2103_vm0, %v2495_v6, %v2493_v5  ;;  %v2504_v9 = vld [vmem:[#allocation1 + $0x141] ss:$8 sm:$0xf]   ;;  %2087 = vst.msk [vmem:[#allocation0 + $0x6b] ss:$16 sm:$0xc0] %vm1794_vm1, %v2078_v13  }
  0x96   :  { %v2506_v10 = vld [vmem:[#allocation1 + $0x141] ss:$8 sm:$0xf0]   ;;  %2092 = vst.msk [vmem:[#allocation0 + $0xcc] ss:$16 sm:$0x3] %vm1794_vm1, %v2089_v14   ;;  %3489 = vrot.lane.b32.xlu1 %v3488_v7, %s3500_s18 }
  0x97   :  { %v2508_v11 = vsel %vm2103_vm0, %v2506_v10, %v2504_v9  ;;  %v2537_v15 = vld [vmem:[#allocation1 + $0x2c1] ss:$8 sm:$0xf]   ;;  %2094 = vst.msk [vmem:[#allocation0 + $0xad] ss:$16 sm:$0xc] %vm1794_vm1, %v2089_v14  }
  0x98   :  { %v2539_v16 = vld [vmem:[#allocation1 + $0x2c1] ss:$8 sm:$0xf0]   ;;  %2096 = vst.msk [vmem:[#allocation0 + $0x8e] ss:$16 sm:$0x30] %vm1794_vm1, %v2089_v14   ;;  %v3483_v17 = vpack.i.bf16 %v2508_v11, %v2497_v8  ;;  %v3400_v50 = vpop.permute.xlu0 %3399 }
  0x99   :  { %2098 = vst.msk [vmem:[#allocation0 + $0x6f] ss:$16 sm:$0xc0] %vm1794_vm1, %v2089_v14   ;;  %v2548_v18 = vld [vmem:[#allocation1 + $0x341] ss:$8 sm:$0xf]   ;;  %v2541_v20 = vsel %vm2103_vm0, %v2539_v16, %v2537_v15  ;;  %v3402_v51 = vunpack.i.h.bf16 %v3400_v50  ;;  %v3401_v52 = vunpack.i.l.bf16 %v3400_v50 }
  0x9a   :  { %v2550_v19 = vld [vmem:[#allocation1 + $0x341] ss:$8 sm:$0xf0]   ;;  %3484 = vrot.lane.b32.xlu0 %v3483_v17, %s3500_s18  ;;  %2152 = vst.msk [vmem:[#allocation0 + $0x80] sm:$0xff] %vm2107_vm2, %v3406_v49   ;;  %2163 = vst.msk [vmem:[#allocation0 + $0xa0] sm:$0xff] %vm2107_vm2, %v3407_v48  }
  0x9b   :  { %v2552_v21 = vsel %vm2103_vm0, %v2550_v19, %v2548_v18  ;;  %v2573_v23 = vld [vmem:[#allocation0 + $0x10] sm:$0xff]  ;;  %v2580_v24 = vld [vmem:[#allocation0 + $0x18] sm:$0xff]  ;;  %2130 = vst.msk [vmem:[#allocation0 + $0x40] sm:$0xff] %vm2107_vm2, %v3401_v52   ;;  %2141 = vst.msk [vmem:[#allocation0 + $0x60] sm:$0xff] %vm2107_vm2, %v3402_v51  }
  0x9c   :  { %v3493_v22 = vpack.i.bf16 %v2552_v21, %v2541_v20  ;;  %v2601_v25 = vld [vmem:[#allocation0 + $0x30] sm:$0xff]  ;;  %v3260_v26 = vpack.c.bf16 %v2580_v24, %v2573_v23  ;;  %v2608_v27 = vld [vmem:[#allocation0 + $0x38] sm:$0xff] }
  0x9d   :  { %v2629_v28 = vld [vmem:[#allocation0 + $0x50] sm:$0xff]  ;;  %v2636_v29 = vld [vmem:[#allocation0 + $0x58] sm:$0xff]  ;;  %v3270_v30 = vpack.c.bf16 %v2608_v27, %v2601_v25 }
  0x9e   :  { %v3280_v31 = vpack.c.bf16 %v2636_v29, %v2629_v28  ;;  %v2657_v32 = vld [vmem:[#allocation0 + $0x70] sm:$0xff]  ;;  %v2664_v33 = vld [vmem:[#allocation0 + $0x78] sm:$0xff]  ;;  %3377 = vst [vmem:[%s4076_s1 + $0x8] sm:$0xff] %v3260_v26   ;;  %3494 = vrot.lane.b32.xlu0 %v3493_v22, %s3500_s18 }
  0x9f   :  { %v2685_v34 = vld [vmem:[#allocation0 + $0x90] sm:$0xff]  ;;  %v3290_v35 = vpack.c.bf16 %v2664_v33, %v2657_v32  ;;  %v2692_v36 = vld [vmem:[#allocation0 + $0x98] sm:$0xff]  ;;  %3379 = vst [vmem:[%s4076_s1 + $0x18] sm:$0xff] %v3270_v30  }
  0xa0   :  { %v2713_v37 = vld [vmem:[#allocation0 + $0xb0] sm:$0xff]  ;;  %v2720_v38 = vld [vmem:[#allocation0 + $0xb8] sm:$0xff]  ;;  %3381 = vst [vmem:[%s4076_s1 + $0x28] sm:$0xff] %v3280_v31   ;;  %v3300_v39 = vpack.c.bf16 %v2692_v36, %v2685_v34  ;;  %v3410_v53 = vpop.permute.xlu1 %3409 }
  0xa1   :  { %v3310_v40 = vpack.c.bf16 %v2720_v38, %v2713_v37  ;;  %v2741_v41 = vld [vmem:[#allocation0 + $0xd0] sm:$0xff]  ;;  %v2748_v42 = vld [vmem:[#allocation0 + $0xd8] sm:$0xff]  ;;  %3383 = vst [vmem:[%s4076_s1 + $0x38] sm:$0xff] %v3290_v35   ;;  %v3412_v54 = vunpack.i.h.bf16 %v3410_v53  ;;  %v3411_v55 = vunpack.i.l.bf16 %v3410_v53 }
  0xa2   :  { %v3320_v43 = vpack.c.bf16 %v2748_v42, %v2741_v41  ;;  %3385 = vst [vmem:[%s4076_s1 + $0x48] sm:$0xff] %v3300_v39  }
  0xa3   :  { %3387 = vst [vmem:[%s4076_s1 + $0x58] sm:$0xff] %v3310_v40   ;;  %2174 = vst.msk [vmem:[#allocation0 + $0xc0] sm:$0xff] %vm2107_vm2, %v3411_v55  }
  0xa4   :  { %3389 = vst [vmem:[%s4076_s1 + $0x68] sm:$0xff] %v3320_v43   ;;  %2185 = vst.msk [vmem:[#allocation0 + $0x8] sm:$0xff] %vm2107_vm2, %v3412_v54  }
  0xae   :  { %v3415_v56 = vpop.permute.xlu0 %3414 }
  0xaf   :  { %v3417_v57 = vunpack.i.h.bf16 %v3415_v56  ;;  %v3416_v58 = vunpack.i.l.bf16 %v3415_v56 }
  0xb1   :  { %2196 = vst.msk [vmem:[#allocation0 + $0x28] sm:$0xff] %vm2107_vm2, %v3416_v58   ;;  %2207 = vst.msk [vmem:[#allocation0 + $0x48] sm:$0xff] %vm2107_vm2, %v3417_v57  }
  0xd8   :  { %v3420_v59 = vpop.permute.xlu1 %3419 }
  0xd9   :  { %v3422_v60 = vunpack.i.h.bf16 %v3420_v59  ;;  %v3421_v61 = vunpack.i.l.bf16 %v3420_v59 }
  0xdb   :  { %2218 = vst.msk [vmem:[#allocation0 + $0x68] sm:$0xff] %vm2107_vm2, %v3421_v61   ;;  %2229 = vst.msk [vmem:[#allocation0 + $0x88] sm:$0xff] %vm2107_vm2, %v3422_v60  }
  0xdc   :  { %v3430_v62 = vpop.permute.xlu1 %3429 }
  0xdd   :  { %v3432_v63 = vunpack.i.h.bf16 %v3430_v62  ;;  %v3431_v0 = vunpack.i.l.bf16 %v3430_v62 }
  0xdf   :  { %2272 = vst.msk [vmem:[#allocation0 + $0x20] sm:$0xff] %vm2260_vm3, %v3432_v63   ;;  %2261 = vst.msk [vmem:[#allocation0] sm:$0xff] %vm2260_vm3, %v3431_v0  }
  0xe0   :  { %v3425_v1 = vpop.permute.xlu0 %3424  ;;  %v3440_v4 = vpop.permute.xlu1 %3439 }
  0xe1   :  { %v3427_v2 = vunpack.i.h.bf16 %v3425_v1  ;;  %v3426_v3 = vunpack.i.l.bf16 %v3425_v1  ;;  %v3442_v5 = vunpack.i.h.bf16 %v3440_v4  ;;  %v3441_v6 = vunpack.i.l.bf16 %v3440_v4 }
  0xe3   :  { %2240 = vst.msk [vmem:[#allocation0 + $0xa8] sm:$0xff] %vm2107_vm2, %v3426_v3   ;;  %2251 = vst.msk [vmem:[#allocation0 + $0xc8] sm:$0xff] %vm2107_vm2, %v3427_v2  }
  0xe4   :  { %2316 = vst.msk [vmem:[#allocation0 + $0xa0] sm:$0xff] %vm2260_vm3, %v3442_v5   ;;  %2305 = vst.msk [vmem:[#allocation0 + $0x80] sm:$0xff] %vm2260_vm3, %v3441_v6   ;;  %v3435_v7 = vpop.permute.xlu0 %3434 }
  0xe5   :  { %v3437_v8 = vunpack.i.h.bf16 %v3435_v7  ;;  %v3436_v9 = vunpack.i.l.bf16 %v3435_v7  ;;  %v3450_v10 = vpop.permute.xlu1 %3449 }
  0xe6   :  { %v3452_v11 = vunpack.i.h.bf16 %v3450_v10  ;;  %v3451_v12 = vunpack.i.l.bf16 %v3450_v10 }
  0xe7   :  { %2294 = vst.msk [vmem:[#allocation0 + $0x60] sm:$0xff] %vm2260_vm3, %v3437_v8   ;;  %2283 = vst.msk [vmem:[#allocation0 + $0x40] sm:$0xff] %vm2260_vm3, %v3436_v9  }
  0xe8   :  { %2360 = vst.msk [vmem:[#allocation0 + $0x48] sm:$0xff] %vm2260_vm3, %v3452_v11   ;;  %2349 = vst.msk [vmem:[#allocation0 + $0x28] sm:$0xff] %vm2260_vm3, %v3451_v12  }
  0xea   :  { %v3445_v13 = vpop.permute.xlu0 %3444 }
  0xeb   :  { %v3447_v14 = vunpack.i.h.bf16 %v3445_v13  ;;  %v3446_v15 = vunpack.i.l.bf16 %v3445_v13 }
  0xed   :  { %2338 = vst.msk [vmem:[#allocation0 + $0x8] sm:$0xff] %vm2260_vm3, %v3447_v14   ;;  %2327 = vst.msk [vmem:[#allocation0 + $0xc0] sm:$0xff] %vm2260_vm3, %v3446_v15  }
  0xf1   :  { %v3460_v16 = vpop.permute.xlu1 %3459 }
  0xf2   :  { %v3462_v17 = vunpack.i.h.bf16 %v3460_v16  ;;  %v3461_v18 = vunpack.i.l.bf16 %v3460_v16 }
  0xf4   :  { %2393 = vst.msk [vmem:[#allocation0 + $0xa8] sm:$0xff] %vm2260_vm3, %v3461_v18   ;;  %2404 = vst.msk [vmem:[#allocation0 + $0xc8] sm:$0xff] %vm2260_vm3, %v3462_v17  }
  0xf6   :  { %v3455_v19 = vpop.permute.xlu0 %3454 }
  0xf7   :  { %v3457_v20 = vunpack.i.h.bf16 %v3455_v19  ;;  %v3456_v21 = vunpack.i.l.bf16 %v3455_v19 }
  0xf8   :  { %v3470_v22 = vpop.permute.xlu1 %3469 }
  0xf9   :  { %v3472_v23 = vunpack.i.h.bf16 %v3470_v22  ;;  %v3471_v24 = vunpack.i.l.bf16 %v3470_v22  ;;  %2382 = vst.msk [vmem:[#allocation0 + $0x88] sm:$0xff] %vm2260_vm3, %v3457_v20   ;;  %2371 = vst.msk [vmem:[#allocation0 + $0x68] sm:$0xff] %vm2260_vm3, %v3456_v21  }
  0xfb   :  { %2436 = vst.msk [vmem:[#allocation0 + $0x40] sm:$0xff] %vm2413_vm4, %v3471_v24   ;;  %2447 = vst.msk [vmem:[#allocation0 + $0x60] sm:$0xff] %vm2413_vm4, %v3472_v23  }
  0xfc   :  { %v3465_v25 = vpop.permute.xlu0 %3464 }
  0xfd   :  { %v3467_v26 = vunpack.i.h.bf16 %v3465_v25  ;;  %v3466_v27 = vunpack.i.l.bf16 %v3465_v25 }
  0xff   :  { %2425 = vst.msk [vmem:[#allocation0 + $0x20] sm:$0xff] %vm2413_vm4, %v3467_v26   ;;  %2414 = vst.msk [vmem:[#allocation0] sm:$0xff] %vm2413_vm4, %v3466_v27  }
 0x100   :  { %v3480_v28 = vpop.permute.xlu1 %3479 }
 0x101   :  { %v3482_v29 = vunpack.i.h.bf16 %v3480_v28  ;;  %v3481_v30 = vunpack.i.l.bf16 %v3480_v28 }
 0x102   :  { %v2643_v46 = vld [vmem:[#allocation0 + $0x60] sm:$0xff] }
 0x103   :  { %2480 = vst.msk [vmem:[#allocation0 + $0xc0] sm:$0xff] %vm2413_vm4, %v3481_v30   ;;  %2491 = vst.msk [vmem:[#allocation0 + $0x8] sm:$0xff] %vm2413_vm4, %v3482_v29   ;;  %v2615_v52 = vld [vmem:[#allocation0 + $0x40] sm:$0xff] }
 0x104   :  { %v3475_v31 = vpop.permute.xlu0 %3474 }
 0x105   :  { %v3477_v32 = vunpack.i.h.bf16 %v3475_v31  ;;  %v3476_v33 = vunpack.i.l.bf16 %v3475_v31 }
 0x106   :  { %v2562_v40 = vld [vmem:[#allocation0] sm:$0xff] }
 0x107   :  { %2469 = vst.msk [vmem:[#allocation0 + $0xa0] sm:$0xff] %vm2413_vm4, %v3477_v32   ;;  %2458 = vst.msk [vmem:[#allocation0 + $0x80] sm:$0xff] %vm2413_vm4, %v3476_v33   ;;  %v2587_v53 = vld [vmem:[#allocation0 + $0x20] sm:$0xff] }
 0x108   :  { %v3490_v34 = vpop.permute.xlu1 %3489 }
 0x109   :  { %v3492_v35 = vunpack.i.h.bf16 %v3490_v34  ;;  %v3491_v36 = vunpack.i.l.bf16 %v3490_v34 }
 0x10a   :  { %v2567_v41 = vld [vmem:[#allocation0 + $0x8] sm:$0xff]  ;;  %v2727_v58 = vld [vmem:[#allocation0 + $0xc0] sm:$0xff] }
 0x10b   :  { %2524 = vst.msk [vmem:[#allocation0 + $0x68] sm:$0xff] %vm2413_vm4, %v3491_v36   ;;  %2535 = vst.msk [vmem:[#allocation0 + $0x88] sm:$0xff] %vm2413_vm4, %v3492_v35   ;;  %v3255_v42 = vpack.c.bf16 %v2567_v41, %v2562_v40 }
 0x10c   :  { %v3485_v37 = vpop.permute.xlu0 %3484 }
 0x10d   :  { %v3487_v38 = vunpack.i.h.bf16 %v3485_v37  ;;  %v3486_v39 = vunpack.i.l.bf16 %v3485_v37  ;;  %3256 = vst [vmem:[%s4076_s1] sm:$0xff] %v3255_v42  }
 0x10e   :  { %v2671_v47 = vld [vmem:[#allocation0 + $0x80] sm:$0xff] }
 0x10f   :  { %2513 = vst.msk [vmem:[#allocation0 + $0x48] sm:$0xff] %vm2413_vm4, %v3487_v38   ;;  %2502 = vst.msk [vmem:[#allocation0 + $0x28] sm:$0xff] %vm2413_vm4, %v3486_v39   ;;  %v2699_v59 = vld [vmem:[#allocation0 + $0xa0] sm:$0xff] }
 0x110   :  { %v3495_v43 = vpop.permute.xlu0 %3494 }
 0x111   :  { %v3497_v44 = vunpack.i.h.bf16 %v3495_v43  ;;  %v3496_v45 = vunpack.i.l.bf16 %v3495_v43 }
 0x112   :  { %v2650_v48 = vld [vmem:[#allocation0 + $0x68] sm:$0xff] }
 0x113   :  { %v2678_v49 = vld [vmem:[#allocation0 + $0x88] sm:$0xff]  ;;  %2546 = vst.msk [vmem:[#allocation0 + $0xa8] sm:$0xff] %vm2413_vm4, %v3496_v45   ;;  %2557 = vst.msk [vmem:[#allocation0 + $0xc8] sm:$0xff] %vm2413_vm4, %v3497_v44   ;;  %v3285_v50 = vpack.c.bf16 %v2650_v48, %v2643_v46 }
 0x114   :  { %v3295_v51 = vpack.c.bf16 %v2678_v49, %v2671_v47 }
 0x115   :  { %3382 = vst [vmem:[%s4076_s1 + $0x30] sm:$0xff] %v3285_v50  }
 0x116   :  { %3384 = vst [vmem:[%s4076_s1 + $0x40] sm:$0xff] %v3295_v51   ;;  %v2622_v54 = vld [vmem:[#allocation0 + $0x48] sm:$0xff] }
 0x117   :  { %v2594_v55 = vld [vmem:[#allocation0 + $0x28] sm:$0xff]  ;;  %v3275_v57 = vpack.c.bf16 %v2622_v54, %v2615_v52 }
 0x118   :  { %v3265_v56 = vpack.c.bf16 %v2594_v55, %v2587_v53 }
 0x119   :  { %3380 = vst [vmem:[%s4076_s1 + $0x20] sm:$0xff] %v3275_v57  }
 0x11a   :  { %3378 = vst [vmem:[%s4076_s1 + $0x10] sm:$0xff] %v3265_v56   ;;  %v2706_v60 = vld [vmem:[#allocation0 + $0xa8] sm:$0xff] }
 0x11b   :  { %v2734_v61 = vld [vmem:[#allocation0 + $0xc8] sm:$0xff]  ;;  %v3305_v62 = vpack.c.bf16 %v2706_v60, %v2699_v59 }
 0x11c   :  { %v3315_v63 = vpack.c.bf16 %v2734_v61, %v2727_v58 }
 0x11d   :  { %3386 = vst [vmem:[%s4076_s1 + $0x50] sm:$0xff] %v3305_v62  }
 0x11e   :  { %3388 = vst [vmem:[%s4076_s1 + $0x60] sm:$0xff] %v3315_v63  }

// kernel: tile.13
= control target key start
LH: loop header
LB: loop body
LE: loop exit
PB: predicated region body
PF: predicated region fallthrough
CT: control target
= control target key end

     0   :  { %s32_s0 = inlined_call_operand.vmem [shape: f32[16], index: 0, kind: input, shape index: {}]   ;;  %s33_s1 = inlined_call_operand.vmem [shape: bf16[14,16], index: 1, kind: output, shape index: {}]  }
   0x1   :  { %v4_v0 = vld [vmem:[%s32_s0] ss:$0 sm:$0xff] }
   0x2   :  { %v14_v1 = vpack.c.bf16 %v4_v0, %v4_v0 }
   0x4   :  { %15 = vst [vmem:[%s33_s1] sm:$0xff] %v14_v1  }

// kernel: tile.18
= control target key start
LH: loop header
LB: loop body
LE: loop exit
PB: predicated region body
PF: predicated region fallthrough
CT: control target
= control target key end

     0   :  { %v8_v1 = vmov 0.0   ;;  %s25_s0 = inlined_call_operand.vmem [shape: f32[32], index: 0, kind: input, shape index: {}]   ;;  %s26_s1 = inlined_call_operand.vmem [shape: bf16[5,32], index: 1, kind: output, shape index: {}]  }
   0x1   :  { %v4_v0 = vld [vmem:[%s25_s0] ss:$0 sm:$0xff] }
   0x2   :  { %v5_v2 = vpack.c.bf16 %v8_v1, %v4_v0 }
   0x4   :  { %6 = vst [vmem:[%s26_s1] sm:$0xf] %v5_v2 }

// kernel: _lambda_.1
= control target key start
LH: loop header
LB: loop body
LE: loop exit
PB: predicated region body
PF: predicated region fallthrough
CT: control target
= control target key end

     0   :  { %v3205_v36 = vmov 0   ;;  %v54_v37 = vlaneseq  ;;  %vm391_vm0 = vcmask 261120   ;;  %s4113_s2 = inlined_call_operand.vmem [shape: bf16[1968,256], index: 2, kind: input, shape index: {}]   ;;  %s4114_s0 = inlined_call_operand.vmem [shape: bf16[32,256], index: 0, kind: input, shape index: {}]   ;;  %s4115_s1 = inlined_call_operand.vmem [shape: bf16[240,32], index: 1, kind: input, shape index: {}]   ;;  %s4116_s3 = inlined_call_operand.vmem [shape: f32[8,256], index: 3, kind: output, shape index: {}]  }
   0x1   :  { %v2814_v0 = vld [vmem:[%s4113_s2 + $0x4] ss:$8 sps:$4 sm:$0xff]   ;;  %v2816_v1 = vld [vmem:[%s4113_s2] ss:$8 sps:$4 sm:$0xff]   ;;  %v2817_v2 = vld [vmem:[%s4113_s2 + $0x14] ss:$8 sps:$4 sm:$0xff]   ;;  %460 = vmatprep.mubr.bf16.mxu1 %v3205_v36 }
   0x2   :  { %242 = vmatprep.subr.bf16.mxu0 %v2814_v0  ;;  %v2819_v3 = vld [vmem:[%s4113_s2 + $0x10] ss:$8 sps:$4 sm:$0xff]   ;;  %v2820_v4 = vld [vmem:[%s4113_s2 + $0x24] ss:$8 sps:$4 sm:$0xff]   ;;  %v2822_v5 = vld [vmem:[%s4113_s2 + $0x20] ss:$8 sps:$4 sm:$0xff]  }
   0x3   :  { %243 = vmatpush1.bf16.msra.mxu0 %v2816_v1  ;;  %v2823_v6 = vld [vmem:[%s4113_s2 + $0x34] ss:$8 sps:$4 sm:$0xff]   ;;  %v2825_v7 = vld [vmem:[%s4113_s2 + $0x30] ss:$8 sps:$4 sm:$0xff]   ;;  %v2826_v8 = vld [vmem:[%s4113_s2 + $0x44] ss:$8 sps:$4 sm:$0xff]  }
   0x4   :  { %244 = vmatprep.subr.bf16.mxu0 %v2817_v2  ;;  %v2828_v9 = vld [vmem:[%s4113_s2 + $0x40] ss:$8 sps:$4 sm:$0xff]   ;;  %v2829_v10 = vld [vmem:[%s4113_s2 + $0x54] ss:$8 sps:$4 sm:$0xff]   ;;  %v2831_v11 = vld [vmem:[%s4113_s2 + $0x50] ss:$8 sps:$4 sm:$0xff]  }
   0x5   :  { %v2832_v12 = vld [vmem:[%s4113_s2 + $0x64] ss:$8 sps:$4 sm:$0xff]   ;;  %v2834_v14 = vld [vmem:[%s4113_s2 + $0x60] ss:$8 sps:$4 sm:$0xff]   ;;  %v2835_v15 = vld [vmem:[%s4113_s2 + $0x74] ss:$8 sps:$4 sm:$0xff]  }
   0x6   :  { %v2864_v13 = vld [vmem:[%s4114_s0 + $0x4] ss:$8 sps:$4 sm:$0xff]   ;;  %v2837_v16 = vld [vmem:[%s4113_s2 + $0x70] ss:$8 sps:$4 sm:$0xff]   ;;  %v2840_v18 = vld [vmem:[%s4113_s2 + $0x80] ss:$8 sps:$4 sm:$0xff]  }
   0x7   :  { %245 = vmatpush1.bf16.msra.mxu0 %v2819_v3  ;;  %274 = vmatprep.mubr.bf16.mxu0 %v2864_v13  ;;  %v2838_v17 = vld [vmem:[%s4113_s2 + $0x84] ss:$8 sps:$4 sm:$0xff]   ;;  %v2841_v19 = vld [vmem:[%s4113_s2 + $0x94] ss:$8 sps:$4 sm:$0xff]   ;;  %v2843_v20 = vld [vmem:[%s4113_s2 + $0x90] ss:$8 sps:$4 sm:$0xff]  }
   0x8   :  { %246 = vmatprep.subr.bf16.mxu0 %v2820_v4  ;;  %v2844_v21 = vld [vmem:[%s4113_s2 + $0xa4] ss:$8 sps:$4 sm:$0xff]   ;;  %v2846_v22 = vld [vmem:[%s4113_s2 + $0xa0] ss:$8 sps:$4 sm:$0xff]   ;;  %v2847_v23 = vld [vmem:[%s4113_s2 + $0xb4] ss:$8 sps:$4 sm:$0xff]  }
   0x9   :  { %v2849_v24 = vld [vmem:[%s4113_s2 + $0xb0] ss:$8 sps:$4 sm:$0xff]   ;;  %v2850_v25 = vld [vmem:[%s4113_s2 + $0xc4] ss:$8 sps:$4 sm:$0xff]   ;;  %v2852_v26 = vld [vmem:[%s4113_s2 + $0xc0] ss:$8 sps:$4 sm:$0xff]  }
   0xa   :  { %v2853_v27 = vld [vmem:[%s4113_s2 + $0xd4] ss:$8 sps:$4 sm:$0xff]   ;;  %v2855_v28 = vld [vmem:[%s4113_s2 + $0xd0] ss:$8 sps:$4 sm:$0xff]   ;;  %v2856_v29 = vld [vmem:[%s4113_s2 + $0xe4] ss:$8 sps:$4 sm:$0xff]  }
   0xb   :  { %247 = vmatpush1.bf16.msra.mxu0 %v2822_v5  ;;  %v2858_v30 = vld [vmem:[%s4113_s2 + $0xe0] ss:$8 sps:$4 sm:$0xff]   ;;  %v2859_v31 = vld [vmem:[%s4113_s2 + $0xf4] ss:$8 sps:$4 sm:$0xff]   ;;  %v2861_v32 = vld [vmem:[%s4113_s2 + $0xf0] ss:$8 sps:$4 sm:$0xff]  }
   0xc   :  { %248 = vmatprep.subr.bf16.mxu0 %v2823_v6  ;;  %v2862_v33 = vld [vmem:[%s4114_s0] ss:$8 sps:$4 sm:$0xff]   ;;  %v2865_v34 = vld [vmem:[%s4114_s0 + $0x14] ss:$8 sps:$4 sm:$0xff]   ;;  %v2867_v35 = vld [vmem:[%s4114_s0 + $0x10] ss:$8 sps:$4 sm:$0xff]  }
   0xd   :  { %v3335_v38 = vshrl.u32 %v54_v37, 7  ;;  %v3340_v39 = vld [vmem:[%s4113_s2 + $0x7a0] sm:$0x11]  ;;  %v2883_v13 = vld [vmem:[%s4113_s2 + $0x110] ss:$8 sps:$4 sm:$0xff]  }
   0xe   :  { %v52_v40 = vunpack.c.l.bf16 %v3340_v39  ;;  %v53_v42 = vunpack.c.h.bf16 %v3340_v39  ;;  %v2903_v37 = vld [vmem:[%s4113_s2 + $0x174] ss:$8 sps:$4 sm:$0xff]  }
   0xf   :  { %249 = vmatpush1.bf16.msra.mxu0 %v2825_v7  ;;  %v56_v41 = vsub.s32 0, %v3335_v38 }
  0x10   :  { %250 = vmatprep.subr.bf16.mxu0 %v2826_v8 }
  0x11   :  { %v57_v43 = vrot.slane %v52_v40, %v56_v41  ;;  %v61_v44 = vrot.slane %v53_v42, %v56_v41  ;;  %v2906_v41 = vld [vmem:[%s4113_s2 + $0x184] ss:$8 sps:$4 sm:$0xff]  }
  0x13   :  { %251 = vmatpush1.bf16.msra.mxu0 %v2828_v9  ;;  %v2882_v9 = vld [vmem:[%s4113_s2 + $0x104] ss:$8 sps:$4 sm:$0xff]  }
  0x14   :  { %252 = vmatprep.subr.bf16.mxu0 %v2829_v10  ;;  %v2868_v10 = vld [vmem:[%s4115_s1] sm:$0xff]  }
  0x17   :  { %253 = vmatpush1.bf16.msra.mxu0 %v2831_v11  ;;  %v2880_v11 = vld [vmem:[%s4113_s2 + $0x100] ss:$8 sps:$4 sm:$0xff]  }
  0x18   :  { %254 = vmatprep.subr.bf16.mxu0 %v2832_v12  ;;  %v2885_v12 = vld [vmem:[%s4113_s2 + $0x114] ss:$8 sps:$4 sm:$0xff]  }
  0x1b   :  { %255 = vmatpush1.bf16.msra.mxu0 %v2834_v14  ;;  %v2869_v14 = vld [vmem:[%s4115_s1 + $0x8] sm:$0xff]  }
  0x1c   :  { %256 = vmatprep.subr.bf16.mxu0 %v2835_v15  ;;  %v2870_v15 = vld [vmem:[%s4115_s1 + $0x10] sm:$0xff]  }
  0x1f   :  { %257 = vmatpush1.bf16.msra.mxu0 %v2837_v16  ;;  %v2871_v16 = vld [vmem:[%s4115_s1 + $0x18] sm:$0xff]  }
  0x20   :  { %258 = vmatprep.subr.bf16.mxu0 %v2838_v17  ;;  %v2872_v17 = vld [vmem:[%s4115_s1 + $0x20] sm:$0xff]  }
  0x23   :  { %259 = vmatpush1.bf16.msra.mxu0 %v2840_v18  ;;  %v2873_v18 = vld [vmem:[%s4115_s1 + $0x28] sm:$0xff]  }
  0x24   :  { %260 = vmatprep.subr.bf16.mxu0 %v2841_v19  ;;  %v2874_v19 = vld [vmem:[%s4115_s1 + $0x30] sm:$0xff]  }
  0x27   :  { %261 = vmatpush1.bf16.msra.mxu0 %v2843_v20  ;;  %v2875_v20 = vld [vmem:[%s4115_s1 + $0x38] sm:$0xff]  }
  0x28   :  { %262 = vmatprep.subr.bf16.mxu0 %v2844_v21  ;;  %v2876_v21 = vld [vmem:[%s4115_s1 + $0x40] sm:$0xff]  }
  0x2b   :  { %263 = vmatpush1.bf16.msra.mxu0 %v2846_v22  ;;  %v2877_v22 = vld [vmem:[%s4115_s1 + $0x48] sm:$0xff]  }
  0x2c   :  { %264 = vmatprep.subr.bf16.mxu0 %v2847_v23  ;;  %v2878_v23 = vld [vmem:[%s4115_s1 + $0x50] sm:$0xff]  }
  0x2f   :  { %265 = vmatpush1.bf16.msra.mxu0 %v2849_v24  ;;  %v2888_v24 = vld [vmem:[%s4113_s2 + $0x124] ss:$8 sps:$4 sm:$0xff]  }
  0x30   :  { %266 = vmatprep.subr.bf16.mxu0 %v2850_v25  ;;  %v2886_v25 = vld [vmem:[%s4113_s2 + $0x120] ss:$8 sps:$4 sm:$0xff]  }
  0x33   :  { %267 = vmatpush1.bf16.msra.mxu0 %v2852_v26  ;;  %v2879_v26 = vld [vmem:[%s4115_s1 + $0x58] sm:$0xff]  }
  0x34   :  { %268 = vmatprep.subr.bf16.mxu0 %v2853_v27  ;;  %v2889_v27 = vld [vmem:[%s4113_s2 + $0x130] ss:$8 sps:$4 sm:$0xff]  }
  0x37   :  { %269 = vmatpush1.bf16.msra.mxu0 %v2855_v28  ;;  %v2891_v28 = vld [vmem:[%s4113_s2 + $0x134] ss:$8 sps:$4 sm:$0xff]  }
  0x38   :  { %270 = vmatprep.subr.bf16.mxu0 %v2856_v29  ;;  %v2894_v29 = vld [vmem:[%s4113_s2 + $0x144] ss:$8 sps:$4 sm:$0xff]  }
  0x3b   :  { %271 = vmatpush1.bf16.msra.mxu0 %v2858_v30  ;;  %v2892_v30 = vld [vmem:[%s4113_s2 + $0x140] ss:$8 sps:$4 sm:$0xff]  }
  0x3c   :  { %272 = vmatprep.subr.bf16.mxu0 %v2859_v31  ;;  %v2895_v31 = vld [vmem:[%s4113_s2 + $0x150] ss:$8 sps:$4 sm:$0xff]  }
  0x3f   :  { %273 = vmatpush1.bf16.msra.mxu0 %v2861_v32  ;;  %v2897_v32 = vld [vmem:[%s4113_s2 + $0x154] ss:$8 sps:$4 sm:$0xff]  }
  0x42   :  { %275 = vmatmul.mubr.bf16.vlgmr.msra.gmra.mrb[0].mxu0 %v2862_v33  ;;  %v2900_v33 = vld [vmem:[%s4113_s2 + $0x164] ss:$8 sps:$4 sm:$0xff]  }
  0x43   :  { %284 = vmatprep.mubr.bf16.mxu0 %v2865_v34  ;;  %v2898_v34 = vld [vmem:[%s4113_s2 + $0x160] ss:$8 sps:$4 sm:$0xff]  }
  0x4a   :  { %285 = vmatmul.mubr.bf16.gmra.mrb[4].mxu0 %v2867_v35  ;;  %v2901_v35 = vld [vmem:[%s4113_s2 + $0x170] ss:$8 sps:$4 sm:$0xff]  }
 0x115   :  { %v276_v45 = vpop.f32.mrb[0].mxu0 }
 0x116   :  { %v277_v46 = vadd.f32 %v276_v45, %v57_v43  ;;  %v278_v47 = vpop.f32.mrb[1].mxu0  ;;  %v2909_v45 = vld [vmem:[%s4113_s2 + $0x194] ss:$8 sps:$4 sm:$0xff]  }
 0x117   :  { %v279_v48 = vadd.f32 %v278_v47, %v61_v44  ;;  %v280_v49 = vpop.f32.mrb[2].mxu0  ;;  %v2910_v47 = vld [vmem:[%s4113_s2 + $0x1a0] ss:$8 sps:$4 sm:$0xff]  }
 0x118   :  { %v281_v50 = vadd.f32 %v280_v49, %v57_v43  ;;  %v282_v51 = vpop.f32.mrb[3].mxu0  ;;  %v295_v53 = vmax.f32 %v277_v46, 0.0  ;;  %v2912_v46 = vld [vmem:[%s4113_s2 + $0x1a4] ss:$8 sps:$4 sm:$0xff]   ;;  %v2915_v49 = vld [vmem:[%s4113_s2 + $0x1b4] ss:$8 sps:$4 sm:$0xff]  }
 0x119   :  { %v283_v52 = vadd.f32 %v282_v51, %v61_v44  ;;  %v296_v55 = vmax.f32 %v279_v48, 0.0  ;;  %v2913_v48 = vld [vmem:[%s4113_s2 + $0x1b0] ss:$8 sps:$4 sm:$0xff]   ;;  %v2916_v51 = vld [vmem:[%s4113_s2 + $0x1c0] ss:$8 sps:$4 sm:$0xff]  }
 0x11a   :  { %v297_v54 = vmax.f32 %v281_v50, 0.0  ;;  %v2918_v50 = vld [vmem:[%s4113_s2 + $0x1c4] ss:$8 sps:$4 sm:$0xff]  }
 0x11b   :  { %v298_v56 = vmax.f32 %v283_v52, 0.0  ;;  %v2919_v52 = vld [vmem:[%s4113_s2 + $0x1d0] ss:$8 sps:$4 sm:$0xff]  }
 0x11c   :  { %v303_v57 = vpack.c.bf16 %v297_v54, %v295_v53  ;;  %v2921_v53 = vld [vmem:[%s4113_s2 + $0x1d4] ss:$8 sps:$4 sm:$0xff]   ;;  %v2924_v54 = vld [vmem:[%s4113_s2 + $0x1e4] ss:$8 sps:$4 sm:$0xff]  }
 0x11d   :  { %v286_v58 = vpop.f32.mrb[4].mxu0  ;;  %v304_v59 = vpack.c.bf16 %v298_v56, %v296_v55  ;;  %v2922_v55 = vld [vmem:[%s4113_s2 + $0x1e0] ss:$8 sps:$4 sm:$0xff]   ;;  %v2927_v56 = vld [vmem:[%s4113_s2 + $0x1f4] ss:$8 sps:$4 sm:$0xff]  }
 0x11e   :  { %v287_v60 = vadd.f32 %v286_v58, %v57_v43  ;;  %v288_v61 = vpop.f32.mrb[5].mxu0  ;;  %v2928_v58 = vld [vmem:[%s4113_s2 + $0x200] ss:$8 sps:$4 sm:$0xff]  }
 0x11f   :  { %v289_v62 = vadd.f32 %v288_v61, %v61_v44  ;;  %v290_v63 = vpop.f32.mrb[6].mxu0  ;;  %428 = vmatprep.subr.bf16.mxu1 %v304_v59  ;;  %v2930_v59 = vld [vmem:[%s4113_s2 + $0x204] ss:$8 sps:$4 sm:$0xff]   ;;  %v2931_v61 = vld [vmem:[%s4113_s2 + $0x210] ss:$8 sps:$4 sm:$0xff]  }
 0x120   :  { %v291_v0 = vadd.f32 %v290_v63, %v57_v43  ;;  %v292_v1 = vpop.f32.mrb[7].mxu0  ;;  %429 = vmatpush1.bf16.msra.mxu1 %v303_v57  ;;  %v299_v3 = vmax.f32 %v287_v60, 0.0  ;;  %v2904_v43 = vld [vmem:[%s4113_s2 + $0x180] ss:$8 sps:$4 sm:$0xff]   ;;  %v2925_v57 = vld [vmem:[%s4113_s2 + $0x1f0] ss:$8 sps:$4 sm:$0xff]   ;;  %1216 = vmatprep.subr.bf16.mxu0 %v2930_v59 }
 0x121   :  { %v293_v2 = vadd.f32 %v292_v1, %v61_v44  ;;  %v300_v5 = vmax.f32 %v289_v62, 0.0  ;;  %v2907_v44 = vld [vmem:[%s4113_s2 + $0x190] ss:$8 sps:$4 sm:$0xff]   ;;  %v2933_v60 = vld [vmem:[%s4113_s2 + $0x214] ss:$8 sps:$4 sm:$0xff]   ;;  %1217 = vmatpush1.bf16.msra.mxu0 %v2928_v58 }
 0x122   :  { %v301_v4 = vmax.f32 %v291_v0, 0.0  ;;  %1218 = vmatprep.subr.bf16.mxu0 %v2933_v60  ;;  %v2936_v62 = vld [vmem:[%s4113_s2 + $0x224] ss:$8 sps:$4 sm:$0xff]   ;;  %v2934_v63 = vld [vmem:[%s4113_s2 + $0x220] ss:$8 sps:$4 sm:$0xff]  }
 0x123   :  { %v302_v6 = vmax.f32 %v293_v2, 0.0  ;;  %v2939_v0 = vld [vmem:[%s4113_s2 + $0x234] ss:$8 sps:$4 sm:$0xff]   ;;  %v2937_v1 = vld [vmem:[%s4113_s2 + $0x230] ss:$8 sps:$4 sm:$0xff]  }
 0x124   :  { %v305_v7 = vpack.c.bf16 %v301_v4, %v299_v3  ;;  %v2942_v2 = vld [vmem:[%s4113_s2 + $0x244] ss:$8 sps:$4 sm:$0xff]   ;;  %v2940_v3 = vld [vmem:[%s4113_s2 + $0x240] ss:$8 sps:$4 sm:$0xff]   ;;  %v2945_v4 = vld [vmem:[%s4113_s2 + $0x254] ss:$8 sps:$4 sm:$0xff]  }
 0x125   :  { %v306_v8 = vpack.c.bf16 %v302_v6, %v300_v5  ;;  %1219 = vmatpush1.bf16.msra.mxu0 %v2931_v61  ;;  %v2943_v5 = vld [vmem:[%s4113_s2 + $0x250] ss:$8 sps:$4 sm:$0xff]   ;;  %v2948_v6 = vld [vmem:[%s4113_s2 + $0x264] ss:$8 sps:$4 sm:$0xff]  }
 0x126   :  { %1220 = vmatprep.subr.bf16.mxu0 %v2936_v62 }
 0x127   :  { %430 = vmatprep.subr.bf16.mxu1 %v306_v8  ;;  %v2951_v8 = vld [vmem:[%s4113_s2 + $0x274] ss:$8 sps:$4 sm:$0xff]  }
 0x128   :  { %431 = vmatpush1.bf16.msra.mxu1 %v305_v7  ;;  %v2946_v7 = vld [vmem:[%s4113_s2 + $0x260] ss:$8 sps:$4 sm:$0xff]  }
 0x129   :  { %809 = vmatprep.subr.bf16.mxu1 %v2882_v9  ;;  %1221 = vmatpush1.bf16.msra.mxu0 %v2934_v63  ;;  %v2949_v9 = vld [vmem:[%s4113_s2 + $0x270] ss:$8 sps:$4 sm:$0xff]  }
 0x12a   :  { %1222 = vmatprep.subr.bf16.mxu0 %v2939_v0 }
 0x12b   :  { %2567 = vmatmul.mubr.msk.bf16.vlgmr.msra.gmra.mrb[0].mxu1 %vm391_vm0, %v2868_v10  ;;  %v2954_v10 = vld [vmem:[%s4113_s2 + $0x284] ss:$8 sps:$4 sm:$0xff]  }
 0x12c   :  { %470 = vmatprep.mubr.bf16.mxu1 %v3205_v36  ;;  %810 = vmatpush1.bf16.msra.mxu1 %v2880_v11 }
 0x12d   :  { %811 = vmatprep.subr.bf16.mxu1 %v2885_v12  ;;  %1223 = vmatpush1.bf16.msra.mxu0 %v2937_v1  ;;  %v2952_v12 = vld [vmem:[%s4113_s2 + $0x280] ss:$8 sps:$4 sm:$0xff]  }
 0x12e   :  { %1224 = vmatprep.subr.bf16.mxu0 %v2942_v2 }
 0x130   :  { %812 = vmatpush1.bf16.msra.mxu1 %v2883_v13 }
 0x131   :  { %813 = vmatprep.subr.bf16.mxu1 %v2888_v24  ;;  %1225 = vmatpush1.bf16.msra.mxu0 %v2940_v3 }
 0x132   :  { %1226 = vmatprep.subr.bf16.mxu0 %v2945_v4 }
 0x133   :  { %2568 = vmatmul.mubr.msk.bf16.gmra.mrb[4].mxu1 %vm391_vm0, %v2869_v14  ;;  %v2957_v14 = vld [vmem:[%s4113_s2 + $0x294] ss:$8 sps:$4 sm:$0xff]  }
 0x134   :  { %480 = vmatprep.mubr.bf16.mxu1 %v3205_v36  ;;  %814 = vmatpush1.bf16.msra.mxu1 %v2886_v25 }
 0x135   :  { %815 = vmatprep.subr.bf16.mxu1 %v2891_v28  ;;  %1227 = vmatpush1.bf16.msra.mxu0 %v2943_v5 }
 0x136   :  { %1228 = vmatprep.subr.bf16.mxu0 %v2948_v6 }
 0x138   :  { %816 = vmatpush1.bf16.msra.mxu1 %v2889_v27 }
 0x139   :  { %817 = vmatprep.subr.bf16.mxu1 %v2894_v29  ;;  %1229 = vmatpush1.bf16.msra.mxu0 %v2946_v7 }
 0x13a   :  { %1230 = vmatprep.subr.bf16.mxu0 %v2951_v8 }
 0x13b   :  { %2569 = vmatmul.mubr.msk.bf16.gmra.mrb[8].mxu1 %vm391_vm0, %v2870_v15 }
 0x13c   :  { %490 = vmatprep.mubr.bf16.mxu1 %v3205_v36  ;;  %818 = vmatpush1.bf16.msra.mxu1 %v2892_v30 }
 0x13d   :  { %819 = vmatprep.subr.bf16.mxu1 %v2897_v32  ;;  %1231 = vmatpush1.bf16.msra.mxu0 %v2949_v9 }
 0x13e   :  { %1232 = vmatprep.subr.bf16.mxu0 %v2954_v10 }
 0x140   :  { %820 = vmatpush1.bf16.msra.mxu1 %v2895_v31 }
 0x141   :  { %821 = vmatprep.subr.bf16.mxu1 %v2900_v33  ;;  %1233 = vmatpush1.bf16.msra.mxu0 %v2952_v12 }
 0x142   :  { %1234 = vmatprep.subr.bf16.mxu0 %v2957_v14 }
 0x143   :  { %2570 = vmatmul.mubr.msk.bf16.gmra.mrb[12].mxu1 %vm391_vm0, %v2871_v16 }
 0x144   :  { %500 = vmatprep.mubr.bf16.mxu1 %v3205_v36  ;;  %822 = vmatpush1.bf16.msra.mxu1 %v2898_v34 }
 0x145   :  { %823 = vmatprep.subr.bf16.mxu1 %v2903_v37 }
 0x148   :  { %824 = vmatpush1.bf16.msra.mxu1 %v2901_v35 }
 0x149   :  { %825 = vmatprep.subr.bf16.mxu1 %v2906_v41 }
 0x14b   :  { %2571 = vmatmul.mubr.msk.bf16.gmra.mrb[16].mxu1 %vm391_vm0, %v2872_v17  ;;  %v2955_v17 = vld [vmem:[%s4113_s2 + $0x290] ss:$8 sps:$4 sm:$0xff]  }
 0x14c   :  { %510 = vmatprep.mubr.bf16.mxu1 %v3205_v36  ;;  %826 = vmatpush1.bf16.msra.mxu1 %v2904_v43 }
 0x14d   :  { %827 = vmatprep.subr.bf16.mxu1 %v2909_v45  ;;  %1235 = vmatpush1.bf16.msra.mxu0 %v2955_v17 }
 0x150   :  { %828 = vmatpush1.bf16.msra.mxu1 %v2907_v44 }
 0x151   :  { %829 = vmatprep.subr.bf16.mxu1 %v2912_v46 }
 0x153   :  { %2572 = vmatmul.mubr.msk.bf16.gmra.mrb[20].mxu1 %vm391_vm0, %v2873_v18 }
 0x154   :  { %520 = vmatprep.mubr.bf16.mxu1 %v3205_v36  ;;  %830 = vmatpush1.bf16.msra.mxu1 %v2910_v47 }
 0x155   :  { %831 = vmatprep.subr.bf16.mxu1 %v2915_v49 }
 0x158   :  { %832 = vmatpush1.bf16.msra.mxu1 %v2913_v48 }
 0x159   :  { %833 = vmatprep.subr.bf16.mxu1 %v2918_v50 }
 0x15b   :  { %2573 = vmatmul.mubr.msk.bf16.gmra.mrb[24].mxu1 %vm391_vm0, %v2874_v19 }
 0x15c   :  { %530 = vmatprep.mubr.bf16.mxu1 %v3205_v36  ;;  %834 = vmatpush1.bf16.msra.mxu1 %v2916_v51 }
 0x15d   :  { %835 = vmatprep.subr.bf16.mxu1 %v2921_v53 }
 0x160   :  { %836 = vmatpush1.bf16.msra.mxu1 %v2919_v52 }
 0x161   :  { %837 = vmatprep.subr.bf16.mxu1 %v2924_v54 }
 0x163   :  { %2574 = vmatmul.mubr.msk.bf16.gmra.mrb[28].mxu1 %vm391_vm0, %v2875_v20 }
 0x164   :  { %540 = vmatprep.mubr.bf16.mxu1 %v3205_v36  ;;  %838 = vmatpush1.bf16.msra.mxu1 %v2922_v55 }
 0x165   :  { %839 = vmatprep.subr.bf16.mxu1 %v2927_v56 }
 0x168   :  { %840 = vmatpush1.bf16.msra.mxu1 %v2925_v57 }
 0x16b   :  { %2575 = vmatmul.mubr.msk.bf16.gmra.mrb[32].mxu1 %vm391_vm0, %v2876_v21 }
 0x16c   :  { %550 = vmatprep.mubr.bf16.mxu1 %v3205_v36 }
 0x173   :  { %2576 = vmatmul.mubr.msk.bf16.gmra.mrb[36].mxu1 %vm391_vm0, %v2877_v22 }
 0x174   :  { %560 = vmatprep.mubr.bf16.mxu1 %v3205_v36 }
 0x17b   :  { %2577 = vmatmul.mubr.msk.bf16.gmra.mrb[40].mxu1 %vm391_vm0, %v2878_v23 }
 0x17c   :  { %570 = vmatprep.mubr.bf16.mxu1 %v3205_v36 }
 0x183   :  { %2578 = vmatmul.mubr.msk.bf16.gmra.mrb[44].mxu1 %vm391_vm0, %v2879_v26 }
 0x1fe   :  { %v462_v11 = vpop.f32.mrb[0].mxu1 }
 0x1ff   :  { %v464_v13 = vpop.f32.mrb[1].mxu1 }
 0x200   :  { %v466_v15 = vpop.f32.mrb[2].mxu1 }
 0x201   :  { %v468_v16 = vpop.f32.mrb[3].mxu1 }
 0x206   :  { %v472_v18 = vpop.f32.mrb[4].mxu1 }
 0x207   :  { %v474_v19 = vpop.f32.mrb[5].mxu1 }
 0x208   :  { %v476_v20 = vpop.f32.mrb[6].mxu1 }
 0x209   :  { %v478_v21 = vpop.f32.mrb[7].mxu1 }
 0x20e   :  { %v482_v22 = vpop.f32.mrb[8].mxu1 }
 0x20f   :  { %v484_v23 = vpop.f32.mrb[9].mxu1 }
 0x210   :  { %v486_v24 = vpop.f32.mrb[10].mxu1 }
 0x211   :  { %v488_v25 = vpop.f32.mrb[11].mxu1 }
 0x216   :  { %v492_v26 = vpop.f32.mrb[12].mxu1 }
 0x217   :  { %v494_v27 = vpop.f32.mrb[13].mxu1 }
 0x218   :  { %v496_v28 = vpop.f32.mrb[14].mxu1 }
 0x219   :  { %v498_v29 = vpop.f32.mrb[15].mxu1 }
 0x21e   :  { %v3564_v30 = vpop.f32.mrb[16].mxu1 }
 0x21f   :  { %v3566_v31 = vpop.f32.mrb[17].mxu1 }
 0x220   :  { %v3568_v32 = vpop.f32.mrb[18].mxu1 }
 0x221   :  { %v3570_v33 = vpop.f32.mrb[19].mxu1 }
 0x226   :  { %v3572_v34 = vpop.f32.mrb[20].mxu1 }
 0x227   :  { %v3574_v35 = vpop.f32.mrb[21].mxu1 }
 0x228   :  { %v3576_v37 = vpop.f32.mrb[22].mxu1 }
 0x229   :  { %v3578_v41 = vpop.f32.mrb[23].mxu1 }
 0x22e   :  { %v522_v43 = vpop.f32.mrb[24].mxu1 }
 0x22f   :  { %v581_v44 = vmax.f32 %v462_v11, %v522_v43  ;;  %v524_v45 = vpop.f32.mrb[25].mxu1 }
 0x230   :  { %v582_v46 = vmax.f32 %v464_v13, %v524_v45  ;;  %v526_v47 = vpop.f32.mrb[26].mxu1 }
 0x231   :  { %v583_v48 = vmax.f32 %v466_v15, %v526_v47  ;;  %v528_v49 = vpop.f32.mrb[27].mxu1 }
 0x232   :  { %v584_v50 = vmax.f32 %v468_v16, %v528_v49  ;;  %v2964_v49 = vld [vmem:[%s4113_s2 + $0x2c0] ss:$8 sps:$4 sm:$0xff]  }
 0x233   :  { %v605_v51 = vpack.c.bf16 %v583_v48, %v581_v44 }
 0x234   :  { %v606_v52 = vpack.c.bf16 %v584_v50, %v582_v46  ;;  %v2969_v50 = vld [vmem:[%s4113_s2 + $0x2d4] ss:$8 sps:$4 sm:$0xff]  }
 0x236   :  { %v532_v53 = vpop.f32.mrb[28].mxu1  ;;  %841 = vmatprep.mubr.bf16.mxu1 %v606_v52  ;;  %v2972_v52 = vld [vmem:[%s4113_s2 + $0x2e4] ss:$8 sps:$4 sm:$0xff]  }
 0x237   :  { %v585_v54 = vmax.f32 %v472_v18, %v532_v53  ;;  %v534_v55 = vpop.f32.mrb[29].mxu1  ;;  %842 = vmatmul.mubr.bf16.vlgmr.msra.gmra.mrb[48].mxu1 %v605_v51  ;;  %v2967_v51 = vld [vmem:[%s4113_s2 + $0x2d0] ss:$8 sps:$4 sm:$0xff]   ;;  %v2970_v53 = vld [vmem:[%s4113_s2 + $0x2e0] ss:$8 sps:$4 sm:$0xff]  }
 0x238   :  { %v586_v56 = vmax.f32 %v474_v19, %v534_v55  ;;  %v536_v57 = vpop.f32.mrb[30].mxu1  ;;  %v2973_v55 = vld [vmem:[%s4113_s2 + $0x2f0] ss:$8 sps:$4 sm:$0xff]  }
 0x239   :  { %v587_v58 = vmax.f32 %v476_v20, %v536_v57  ;;  %v538_v59 = vpop.f32.mrb[31].mxu1 }
 0x23a   :  { %v588_v60 = vmax.f32 %v478_v21, %v538_v59 }
 0x23b   :  { %v607_v61 = vpack.c.bf16 %v587_v58, %v585_v54  ;;  %v2975_v54 = vld [vmem:[%s4113_s2 + $0x2f4] ss:$8 sps:$4 sm:$0xff]  }
 0x23c   :  { %v608_v62 = vpack.c.bf16 %v588_v60, %v586_v56  ;;  %v2978_v56 = vld [vmem:[%s4113_s2 + $0x304] ss:$8 sps:$4 sm:$0xff]  }
 0x23e   :  { %v542_v63 = vpop.f32.mrb[32].mxu1  ;;  %851 = vmatprep.mubr.bf16.mxu1 %v608_v62 }
 0x23f   :  { %v589_v0 = vmax.f32 %v482_v22, %v542_v63  ;;  %v544_v1 = vpop.f32.mrb[33].mxu1  ;;  %852 = vmatmul.mubr.bf16.gmra.mrb[52].mxu1 %v607_v61 }
 0x240   :  { %v590_v2 = vmax.f32 %v484_v23, %v544_v1  ;;  %v546_v3 = vpop.f32.mrb[34].mxu1 }
 0x241   :  { %v591_v4 = vmax.f32 %v486_v24, %v546_v3  ;;  %v548_v5 = vpop.f32.mrb[35].mxu1 }
 0x242   :  { %v592_v6 = vmax.f32 %v488_v25, %v548_v5 }
 0x243   :  { %v609_v7 = vpack.c.bf16 %v591_v4, %v589_v0 }
 0x244   :  { %v610_v8 = vpack.c.bf16 %v592_v6, %v590_v2 }
 0x246   :  { %v552_v9 = vpop.f32.mrb[36].mxu1  ;;  %861 = vmatprep.mubr.bf16.mxu1 %v610_v8 }
 0x247   :  { %v593_v10 = vmax.f32 %v492_v26, %v552_v9  ;;  %v554_v11 = vpop.f32.mrb[37].mxu1  ;;  %862 = vmatmul.mubr.bf16.gmra.mrb[56].mxu1 %v609_v7 }
 0x248   :  { %v594_v12 = vmax.f32 %v494_v27, %v554_v11  ;;  %v556_v13 = vpop.f32.mrb[38].mxu1 }
 0x249   :  { %v595_v14 = vmax.f32 %v496_v28, %v556_v13  ;;  %v558_v15 = vpop.f32.mrb[39].mxu1 }
 0x24a   :  { %v596_v16 = vmax.f32 %v498_v29, %v558_v15  ;;  %v2981_v15 = vld [vmem:[%s4113_s2 + $0x314] ss:$8 sps:$4 sm:$0xff]  }
 0x24b   :  { %v611_v17 = vpack.c.bf16 %v595_v14, %v593_v10  ;;  %v2976_v14 = vld [vmem:[%s4113_s2 + $0x300] ss:$8 sps:$4 sm:$0xff]  }
 0x24c   :  { %v612_v18 = vpack.c.bf16 %v596_v16, %v594_v12 }
 0x24e   :  { %v562_v19 = vpop.f32.mrb[40].mxu1  ;;  %871 = vmatprep.mubr.bf16.mxu1 %v612_v18 }
 0x24f   :  { %v597_v20 = vmax.f32 %v3564_v30, %v562_v19  ;;  %v564_v21 = vpop.f32.mrb[41].mxu1  ;;  %872 = vmatmul.mubr.bf16.gmra.mrb[60].mxu1 %v611_v17 }
 0x250   :  { %v598_v22 = vmax.f32 %v3566_v31, %v564_v21  ;;  %v566_v23 = vpop.f32.mrb[42].mxu1 }
 0x251   :  { %v599_v24 = vmax.f32 %v3568_v32, %v566_v23  ;;  %v568_v25 = vpop.f32.mrb[43].mxu1 }
 0x252   :  { %v600_v26 = vmax.f32 %v3570_v33, %v568_v25  ;;  %v2960_v33 = vld [vmem:[%s4113_s2 + $0x2a4] ss:$8 sps:$4 sm:$0xff]   ;;  %v2982_v25 = vld [vmem:[%s4113_s2 + $0x320] ss:$8 sps:$4 sm:$0xff]  }
 0x253   :  { %v613_v27 = vpack.c.bf16 %v599_v24, %v597_v20  ;;  %1236 = vmatprep.subr.bf16.mxu0 %v2960_v33  ;;  %v2979_v20 = vld [vmem:[%s4113_s2 + $0x310] ss:$8 sps:$4 sm:$0xff]  }
 0x254   :  { %v614_v28 = vpack.c.bf16 %v600_v26, %v598_v22  ;;  %v2984_v22 = vld [vmem:[%s4113_s2 + $0x324] ss:$8 sps:$4 sm:$0xff]   ;;  %v2987_v26 = vld [vmem:[%s4113_s2 + $0x334] ss:$8 sps:$4 sm:$0xff]  }
 0x256   :  { %v572_v43 = vpop.f32.mrb[44].mxu1  ;;  %881 = vmatprep.mubr.bf16.mxu1 %v614_v28 }
 0x257   :  { %v601_v29 = vmax.f32 %v3572_v34, %v572_v43  ;;  %v574_v44 = vpop.f32.mrb[45].mxu1  ;;  %882 = vmatmul.mubr.bf16.gmra.mrb[64].mxu1 %v613_v27  ;;  %v2958_v34 = vld [vmem:[%s4113_s2 + $0x2a0] ss:$8 sps:$4 sm:$0xff]  }
 0x258   :  { %v602_v30 = vmax.f32 %v3574_v35, %v574_v44  ;;  %v576_v45 = vpop.f32.mrb[46].mxu1  ;;  %1237 = vmatpush1.bf16.msra.mxu0 %v2958_v34  ;;  %v2963_v35 = vld [vmem:[%s4113_s2 + $0x2b4] ss:$8 sps:$4 sm:$0xff]   ;;  %v2985_v44 = vld [vmem:[%s4113_s2 + $0x330] ss:$8 sps:$4 sm:$0xff]  }
 0x259   :  { %v603_v46 = vmax.f32 %v3576_v37, %v576_v45  ;;  %v578_v31 = vpop.f32.mrb[47].mxu1  ;;  %v2961_v37 = vld [vmem:[%s4113_s2 + $0x2b0] ss:$8 sps:$4 sm:$0xff]   ;;  %1238 = vmatprep.subr.bf16.mxu0 %v2963_v35  ;;  %v2990_v45 = vld [vmem:[%s4113_s2 + $0x344] ss:$8 sps:$4 sm:$0xff]  }
 0x25a   :  { %v604_v47 = vmax.f32 %v3578_v41, %v578_v31  ;;  %v2966_v41 = vld [vmem:[%s4113_s2 + $0x2c4] ss:$8 sps:$4 sm:$0xff]  }
 0x25b   :  { %v615_v32 = vpack.c.bf16 %v603_v46, %v601_v29 }
 0x25c   :  { %v616_v48 = vpack.c.bf16 %v604_v47, %v602_v30  ;;  %1239 = vmatpush1.bf16.msra.mxu0 %v2961_v37  ;;  %v2988_v47 = vld [vmem:[%s4113_s2 + $0x340] ss:$8 sps:$4 sm:$0xff]   ;;  %v2991_v37 = vld [vmem:[%s4113_s2 + $0x350] ss:$8 sps:$4 sm:$0xff]  }
 0x25d   :  { %1240 = vmatprep.subr.bf16.mxu0 %v2966_v41 }
 0x25e   :  { %891 = vmatprep.mubr.bf16.mxu1 %v616_v48 }
 0x25f   :  { %892 = vmatmul.mubr.bf16.gmra.mrb[68].mxu1 %v615_v32  ;;  %v2993_v32 = vld [vmem:[%s4113_s2 + $0x354] ss:$8 sps:$4 sm:$0xff]  }
 0x260   :  { %1386 = vmatprep.mubr.bf16.mxu1 %v3205_v36  ;;  %1241 = vmatpush1.bf16.msra.mxu0 %v2964_v49  ;;  %v2996_v49 = vld [vmem:[%s4113_s2 + $0x364] ss:$8 sps:$4 sm:$0xff]  }
 0x261   :  { %1242 = vmatprep.subr.bf16.mxu0 %v2969_v50 }
 0x264   :  { %1243 = vmatpush1.bf16.msra.mxu0 %v2967_v51 }
 0x265   :  { %1244 = vmatprep.subr.bf16.mxu0 %v2972_v52  ;;  %v2994_v52 = vld [vmem:[%s4113_s2 + $0x360] ss:$8 sps:$4 sm:$0xff]  }
 0x268   :  { %1245 = vmatpush1.bf16.msra.mxu0 %v2970_v53  ;;  %v2999_v53 = vld [vmem:[%s4113_s2 + $0x374] ss:$8 sps:$4 sm:$0xff]  }
 0x269   :  { %1246 = vmatprep.subr.bf16.mxu0 %v2975_v54  ;;  %v2997_v54 = vld [vmem:[%s4113_s2 + $0x370] ss:$8 sps:$4 sm:$0xff]  }
 0x26c   :  { %1247 = vmatpush1.bf16.msra.mxu0 %v2973_v55  ;;  %v970_v55 = vsub.s32 1, %v3335_v38 }
 0x26d   :  { %1269 = vmatprep.subr.bf16.mxu0 %v2978_v56 }
 0x26e   :  { %v971_v56 = vrot.slane %v52_v40, %v970_v55 }
 0x30a   :  { %v843_v57 = vpop.f32.mrb[48].mxu1 }
 0x30b   :  { %v845_v58 = vpop.f32.mrb[49].mxu1 }
 0x30c   :  { %v902_v59 = vmax.f32 %v843_v57, %v845_v58  ;;  %v847_v60 = vpop.f32.mrb[50].mxu1  ;;  %v975_v57 = vrot.slane %v53_v42, %v970_v55  ;;  %v3044_v55 = vld [vmem:[%s4113_s2 + $0x460] ss:$8 sps:$4 sm:$0xff]  }
 0x30d   :  { %v849_v61 = vpop.f32.mrb[51].mxu1 }
 0x30e   :  { %v903_v62 = vmax.f32 %v847_v60, %v849_v61 }
 0x310   :  { %v914_v63 = vpack.c.bf16 %v903_v62, %v902_v59 }
 0x312   :  { %v853_v0 = vpop.f32.mrb[52].mxu1 }
 0x313   :  { %v855_v1 = vpop.f32.mrb[53].mxu1 }
 0x314   :  { %v904_v2 = vmax.f32 %v853_v0, %v855_v1  ;;  %v857_v3 = vpop.f32.mrb[54].mxu1 }
 0x315   :  { %v859_v4 = vpop.f32.mrb[55].mxu1 }
 0x316   :  { %v905_v5 = vmax.f32 %v857_v3, %v859_v4 }
 0x318   :  { %v917_v6 = vpack.c.bf16 %v905_v5, %v904_v2 }
 0x31a   :  { %v863_v7 = vpop.f32.mrb[56].mxu1 }
 0x31b   :  { %v865_v8 = vpop.f32.mrb[57].mxu1 }
 0x31c   :  { %v906_v9 = vmax.f32 %v863_v7, %v865_v8  ;;  %v867_v10 = vpop.f32.mrb[58].mxu1 }
 0x31d   :  { %v869_v11 = vpop.f32.mrb[59].mxu1 }
 0x31e   :  { %v907_v12 = vmax.f32 %v867_v10, %v869_v11 }
 0x320   :  { %v915_v13 = vpack.c.bf16 %v907_v12, %v906_v9 }
 0x322   :  { %v873_v16 = vpop.f32.mrb[60].mxu1  ;;  %1248 = vmatprep.mubr.bf16.mxu0 %v915_v13 }
 0x323   :  { %v875_v17 = vpop.f32.mrb[61].mxu1  ;;  %1249 = vmatmul.mubr.bf16.vlgmr.msra.gmra.mrb[8].mxu0 %v914_v63 }
 0x324   :  { %v908_v18 = vmax.f32 %v873_v16, %v875_v17  ;;  %1270 = vmatpush1.bf16.msra.mxu0 %v2976_v14  ;;  %v877_v19 = vpop.f32.mrb[62].mxu1 }
 0x325   :  { %v879_v21 = vpop.f32.mrb[63].mxu1  ;;  %1271 = vmatprep.subr.bf16.mxu0 %v2981_v15 }
 0x326   :  { %v909_v23 = vmax.f32 %v877_v19, %v879_v21  ;;  %v3004_v19 = vld [vmem:[%s4113_s2 + $0x384] ss:$8 sps:$4 sm:$0xff]   ;;  %v3002_v21 = vld [vmem:[%s4113_s2 + $0x380] ss:$8 sps:$4 sm:$0xff]  }
 0x328   :  { %v918_v24 = vpack.c.bf16 %v909_v23, %v908_v18  ;;  %1272 = vmatpush1.bf16.msra.mxu0 %v2979_v20  ;;  %v3000_v20 = vld [vmem:[%s4115_s1 + $0x60] sm:$0xff]   ;;  %v3005_v23 = vld [vmem:[%s4113_s2 + $0x390] ss:$8 sps:$4 sm:$0xff]  }
 0x329   :  { %1273 = vmatprep.subr.bf16.mxu0 %v2984_v22  ;;  %v3007_v22 = vld [vmem:[%s4113_s2 + $0x394] ss:$8 sps:$4 sm:$0xff]  }
 0x32a   :  { %v883_v27 = vpop.f32.mrb[64].mxu1  ;;  %1258 = vmatprep.mubr.bf16.mxu0 %v918_v24  ;;  %v3010_v24 = vld [vmem:[%s4113_s2 + $0x3a4] ss:$8 sps:$4 sm:$0xff]  }
 0x32b   :  { %v885_v28 = vpop.f32.mrb[65].mxu1  ;;  %1259 = vmatmul.mubr.bf16.gmra.mrb[12].mxu0 %v917_v6 }
 0x32c   :  { %v910_v43 = vmax.f32 %v883_v27, %v885_v28  ;;  %1274 = vmatpush1.bf16.msra.mxu0 %v2982_v25  ;;  %v887_v29 = vpop.f32.mrb[66].mxu1  ;;  %1301 = vmatprep.mubr.bf16.mxu0 %v3205_v36  ;;  %v3001_v25 = vld [vmem:[%s4115_s1 + $0x68] sm:$0xff]   ;;  %v3013_v27 = vld [vmem:[%s4113_s2 + $0x3b4] ss:$8 sps:$4 sm:$0xff]   ;;  %v3011_v28 = vld [vmem:[%s4113_s2 + $0x3b0] ss:$8 sps:$4 sm:$0xff]  }
 0x32d   :  { %v889_v30 = vpop.f32.mrb[67].mxu1  ;;  %1275 = vmatprep.subr.bf16.mxu0 %v2987_v26  ;;  %v3008_v26 = vld [vmem:[%s4113_s2 + $0x3a0] ss:$8 sps:$4 sm:$0xff]  }
 0x32e   :  { %v911_v46 = vmax.f32 %v887_v29, %v889_v30  ;;  %v3014_v29 = vld [vmem:[%s4113_s2 + $0x3c0] ss:$8 sps:$4 sm:$0xff]   ;;  %v3017_v30 = vld [vmem:[%s4113_s2 + $0x3d0] ss:$8 sps:$4 sm:$0xff]  }
 0x330   :  { %v916_v31 = vpack.c.bf16 %v911_v46, %v910_v43  ;;  %1276 = vmatpush1.bf16.msra.mxu0 %v2985_v44  ;;  %v3016_v43 = vld [vmem:[%s4113_s2 + $0x3c4] ss:$8 sps:$4 sm:$0xff]   ;;  %v3019_v44 = vld [vmem:[%s4113_s2 + $0x3d4] ss:$8 sps:$4 sm:$0xff]   ;;  %v3020_v46 = vld [vmem:[%s4113_s2 + $0x3e0] ss:$8 sps:$4 sm:$0xff]  }
 0x331   :  { %1277 = vmatprep.subr.bf16.mxu0 %v2990_v45  ;;  %v3022_v45 = vld [vmem:[%s4113_s2 + $0x3e4] ss:$8 sps:$4 sm:$0xff]  }
 0x332   :  { %v893_v48 = vpop.f32.mrb[68].mxu1 }
 0x333   :  { %v895_v33 = vpop.f32.mrb[69].mxu1 }
 0x334   :  { %v912_v34 = vmax.f32 %v893_v48, %v895_v33  ;;  %1278 = vmatpush1.bf16.msra.mxu0 %v2988_v47  ;;  %v897_v35 = vpop.f32.mrb[70].mxu1  ;;  %v3023_v47 = vld [vmem:[%s4113_s2 + $0x3f0] ss:$8 sps:$4 sm:$0xff]   ;;  %v3026_v48 = vld [vmem:[%s4113_s2 + $0x400] ss:$8 sps:$4 sm:$0xff]  }
 0x335   :  { %v899_v41 = vpop.f32.mrb[71].mxu1  ;;  %1279 = vmatprep.subr.bf16.mxu0 %v2993_v32  ;;  %v3028_v32 = vld [vmem:[%s4113_s2 + $0x404] ss:$8 sps:$4 sm:$0xff]   ;;  %v3031_v33 = vld [vmem:[%s4113_s2 + $0x414] ss:$8 sps:$4 sm:$0xff]  }
 0x336   :  { %v913_v50 = vmax.f32 %v897_v35, %v899_v41  ;;  %v3034_v35 = vld [vmem:[%s4113_s2 + $0x424] ss:$8 sps:$4 sm:$0xff]   ;;  %v3037_v41 = vld [vmem:[%s4113_s2 + $0x434] ss:$8 sps:$4 sm:$0xff]  }
 0x338   :  { %v919_v51 = vpack.c.bf16 %v913_v50, %v912_v34  ;;  %1280 = vmatpush1.bf16.msra.mxu0 %v2991_v37  ;;  %v3029_v34 = vld [vmem:[%s4113_s2 + $0x410] ss:$8 sps:$4 sm:$0xff]   ;;  %v3032_v37 = vld [vmem:[%s4113_s2 + $0x420] ss:$8 sps:$4 sm:$0xff]   ;;  %v3040_v50 = vld [vmem:[%s4113_s2 + $0x444] ss:$8 sps:$4 sm:$0xff]  }
 0x339   :  { %1281 = vmatprep.subr.bf16.mxu0 %v2996_v49  ;;  %v3035_v49 = vld [vmem:[%s4113_s2 + $0x430] ss:$8 sps:$4 sm:$0xff]  }
 0x33c   :  { %1282 = vmatpush1.bf16.msra.mxu0 %v2994_v52  ;;  %v3041_v52 = vld [vmem:[%s4113_s2 + $0x450] ss:$8 sps:$4 sm:$0xff]  }
 0x33d   :  { %1283 = vmatprep.subr.bf16.mxu0 %v2999_v53  ;;  %v3043_v53 = vld [vmem:[%s4113_s2 + $0x454] ss:$8 sps:$4 sm:$0xff]  }
 0x340   :  { %1284 = vmatpush1.bf16.msra.mxu0 %v2997_v54  ;;  %v3046_v54 = vld [vmem:[%s4113_s2 + $0x464] ss:$8 sps:$4 sm:$0xff]  }
 0x343   :  { %1302 = vmatmul.mubr.bf16.vlgmr.msra.gmra.mrb[8].mxu0 %v916_v31  ;;  %v3025_v31 = vld [vmem:[%s4113_s2 + $0x3f4] ss:$8 sps:$4 sm:$0xff]  }
 0x344   :  { %1311 = vmatprep.mubr.bf16.mxu0 %v3205_v36 }
 0x34b   :  { %1312 = vmatmul.mubr.bf16.gmra.mrb[12].mxu0 %v919_v51  ;;  %v3038_v51 = vld [vmem:[%s4113_s2 + $0x440] ss:$8 sps:$4 sm:$0xff]  }
 0x34c   :  { %1796 = vmatprep.mubr.bf16.mxu0 %v3205_v36 }
 0x416   :  { %v1303_v58 = vpop.f32.mrb[8].mxu0 }
 0x417   :  { %v2797_v59 = vadd.f32 %v1303_v58, %v971_v56  ;;  %v1305_v60 = vpop.f32.mrb[9].mxu0  ;;  %v3050_v58 = vld [vmem:[%s4113_s2 + $0x500] ss:$8 sps:$4 sm:$0xff]  }
 0x418   :  { %v2798_v61 = vadd.f32 %v1305_v60, %v975_v57  ;;  %v1307_v62 = vpop.f32.mrb[10].mxu0  ;;  %v3055_v60 = vld [vmem:[%s4113_s2 + $0x514] ss:$8 sps:$4 sm:$0xff]  }
 0x419   :  { %v2799_v63 = vadd.f32 %v1307_v62, %v971_v56  ;;  %v1309_v0 = vpop.f32.mrb[11].mxu0  ;;  %v1322_v2 = vmax.f32 %v2797_v59, 0.0  ;;  %v3052_v59 = vld [vmem:[%s4113_s2 + $0x504] ss:$8 sps:$4 sm:$0xff]  }
 0x41a   :  { %v2800_v1 = vadd.f32 %v1309_v0, %v975_v57  ;;  %v1323_v4 = vmax.f32 %v2798_v61, 0.0  ;;  %1764 = vmatprep.subr.bf16.mxu0 %v3052_v59  ;;  %v3053_v61 = vld [vmem:[%s4113_s2 + $0x510] ss:$8 sps:$4 sm:$0xff]   ;;  %v3058_v62 = vld [vmem:[%s4113_s2 + $0x524] ss:$8 sps:$4 sm:$0xff]  }
 0x41b   :  { %v1324_v3 = vmax.f32 %v2799_v63, 0.0  ;;  %1765 = vmatpush1.bf16.msra.mxu0 %v3050_v58  ;;  %v3056_v63 = vld [vmem:[%s4113_s2 + $0x520] ss:$8 sps:$4 sm:$0xff]   ;;  %v3061_v0 = vld [vmem:[%s4113_s2 + $0x534] ss:$8 sps:$4 sm:$0xff]  }
 0x41c   :  { %v1325_v5 = vmax.f32 %v2800_v1, 0.0  ;;  %1766 = vmatprep.subr.bf16.mxu0 %v3055_v60  ;;  %v3059_v1 = vld [vmem:[%s4113_s2 + $0x530] ss:$8 sps:$4 sm:$0xff]   ;;  %v3113_v58 = vld [vmem:[%s4113_s2 + $0x5c4] ss:$8 sps:$4 sm:$0xff]  }
 0x41d   :  { %v1330_v6 = vpack.c.bf16 %v1324_v3, %v1322_v2  ;;  %v3064_v2 = vld [vmem:[%s4113_s2 + $0x544] ss:$8 sps:$4 sm:$0xff]   ;;  %v3062_v3 = vld [vmem:[%s4113_s2 + $0x540] ss:$8 sps:$4 sm:$0xff]   ;;  %v3116_v60 = vld [vmem:[%s4113_s2 + $0x5d4] ss:$8 sps:$4 sm:$0xff]  }
 0x41e   :  { %v1331_v7 = vpack.c.bf16 %v1325_v5, %v1323_v4  ;;  %v1313_v8 = vpop.f32.mrb[12].mxu0  ;;  %v3067_v4 = vld [vmem:[%s4113_s2 + $0x554] ss:$8 sps:$4 sm:$0xff]   ;;  %v3065_v5 = vld [vmem:[%s4113_s2 + $0x550] ss:$8 sps:$4 sm:$0xff]  }
 0x41f   :  { %v2801_v9 = vadd.f32 %v1313_v8, %v971_v56  ;;  %v1315_v40 = vpop.f32.mrb[13].mxu0  ;;  %1767 = vmatpush1.bf16.msra.mxu0 %v3053_v61  ;;  %v3111_v59 = vld [vmem:[%s4113_s2 + $0x5c0] ss:$8 sps:$4 sm:$0xff]   ;;  %v3114_v61 = vld [vmem:[%s4113_s2 + $0x5d0] ss:$8 sps:$4 sm:$0xff]  }
 0x420   :  { %v2802_v10 = vadd.f32 %v1315_v40, %v975_v57  ;;  %v1317_v39 = vpop.f32.mrb[14].mxu0  ;;  %1354 = vmatprep.subr.bf16.mxu1 %v1331_v7  ;;  %1768 = vmatprep.subr.bf16.mxu0 %v3058_v62  ;;  %v3068_v7 = vld [vmem:[%s4113_s2 + $0x560] ss:$8 sps:$4 sm:$0xff]   ;;  %v3119_v62 = vld [vmem:[%s4113_s2 + $0x5e4] ss:$8 sps:$4 sm:$0xff]  }
 0x421   :  { %v2803_v42 = vadd.f32 %v1317_v39, %v971_v56  ;;  %v1319_v11 = vpop.f32.mrb[15].mxu0  ;;  %1355 = vmatpush1.bf16.msra.mxu1 %v1330_v6  ;;  %v1326_v13 = vmax.f32 %v2801_v9, 0.0  ;;  %v3049_v56 = vld [vmem:[%s4113_s2 + $0x474] ss:$8 sps:$4 sm:$0xff]   ;;  %v3070_v6 = vld [vmem:[%s4113_s2 + $0x564] ss:$8 sps:$4 sm:$0xff]  }
 0x422   :  { %v2804_v12 = vadd.f32 %v1319_v11, %v975_v57  ;;  %v1327_v15 = vmax.f32 %v2802_v10, 0.0  ;;  %v3047_v57 = vld [vmem:[%s4113_s2 + $0x470] ss:$8 sps:$4 sm:$0xff]  }
 0x423   :  { %v1328_v14 = vmax.f32 %v2803_v42, 0.0  ;;  %1769 = vmatpush1.bf16.msra.mxu0 %v3056_v63  ;;  %v3117_v63 = vld [vmem:[%s4113_s2 + $0x5e0] ss:$8 sps:$4 sm:$0xff]  }
 0x424   :  { %v1329_v16 = vmax.f32 %v2804_v12, 0.0  ;;  %1770 = vmatprep.subr.bf16.mxu0 %v3061_v0  ;;  %v3122_v0 = vld [vmem:[%s4113_s2 + $0x5f4] ss:$8 sps:$4 sm:$0xff]  }
 0x425   :  { %v1332_v17 = vpack.c.bf16 %v1328_v14, %v1326_v13 }
 0x426   :  { %v1333_v18 = vpack.c.bf16 %v1329_v16, %v1327_v15 }
 0x427   :  { %1771 = vmatpush1.bf16.msra.mxu0 %v3059_v1  ;;  %v3120_v1 = vld [vmem:[%s4113_s2 + $0x5f0] ss:$8 sps:$4 sm:$0xff]  }
 0x428   :  { %1356 = vmatprep.subr.bf16.mxu1 %v1333_v18  ;;  %1772 = vmatprep.subr.bf16.mxu0 %v3064_v2  ;;  %v3125_v2 = vld [vmem:[%s4113_s2 + $0x604] ss:$8 sps:$4 sm:$0xff]  }
 0x429   :  { %1357 = vmatpush1.bf16.msra.mxu1 %v1332_v17 }
 0x42a   :  { %1605 = vmatprep.subr.bf16.mxu1 %v3004_v19  ;;  %v3073_v19 = vld [vmem:[%s4113_s2 + $0x574] ss:$8 sps:$4 sm:$0xff]  }
 0x42b   :  { %1773 = vmatpush1.bf16.msra.mxu0 %v3062_v3  ;;  %v3123_v3 = vld [vmem:[%s4113_s2 + $0x600] ss:$8 sps:$4 sm:$0xff]  }
 0x42c   :  { %2661 = vmatmul.mubr.msk.bf16.vlgmr.msra.gmra.mrb[72].mxu1 %vm391_vm0, %v3000_v20  ;;  %1774 = vmatprep.subr.bf16.mxu0 %v3067_v4  ;;  %v3071_v20 = vld [vmem:[%s4113_s2 + $0x570] ss:$8 sps:$4 sm:$0xff]   ;;  %v3128_v4 = vld [vmem:[%s4113_s2 + $0x614] ss:$8 sps:$4 sm:$0xff]  }
 0x42d   :  { %1396 = vmatprep.mubr.bf16.mxu1 %v3205_v36  ;;  %1606 = vmatpush1.bf16.msra.mxu1 %v3002_v21  ;;  %v3076_v21 = vld [vmem:[%s4113_s2 + $0x484] ss:$8 sps:$4 sm:$0xff]  }
 0x42e   :  { %1607 = vmatprep.subr.bf16.mxu1 %v3007_v22  ;;  %v3097_v22 = vld [vmem:[%s4113_s2 + $0x584] ss:$8 sps:$4 sm:$0xff]  }
 0x42f   :  { %1775 = vmatpush1.bf16.msra.mxu0 %v3065_v5  ;;  %v3126_v5 = vld [vmem:[%s4113_s2 + $0x610] ss:$8 sps:$4 sm:$0xff]  }
 0x430   :  { %1776 = vmatprep.subr.bf16.mxu0 %v3070_v6  ;;  %v3131_v6 = vld [vmem:[%s4113_s2 + $0x624] ss:$8 sps:$4 sm:$0xff]  }
 0x431   :  { %1608 = vmatpush1.bf16.msra.mxu1 %v3005_v23  ;;  %v3095_v23 = vld [vmem:[%s4113_s2 + $0x580] ss:$8 sps:$4 sm:$0xff]  }
 0x432   :  { %1609 = vmatprep.subr.bf16.mxu1 %v3010_v24  ;;  %v3103_v24 = vld [vmem:[%s4113_s2 + $0x594] ss:$8 sps:$4 sm:$0xff]  }
 0x433   :  { %1777 = vmatpush1.bf16.msra.mxu0 %v3068_v7  ;;  %v3129_v7 = vld [vmem:[%s4113_s2 + $0x620] ss:$8 sps:$4 sm:$0xff]  }
 0x434   :  { %2662 = vmatmul.mubr.msk.bf16.gmra.mrb[76].mxu1 %vm391_vm0, %v3001_v25  ;;  %1778 = vmatprep.subr.bf16.mxu0 %v3073_v19  ;;  %v3101_v25 = vld [vmem:[%s4113_s2 + $0x590] ss:$8 sps:$4 sm:$0xff]   ;;  %v3149_v19 = vld [vmem:[%s4113_s2 + $0x684] ss:$8 sps:$4 sm:$0xff]  }
 0x435   :  { %1610 = vmatpush1.bf16.msra.mxu1 %v3008_v26  ;;  %v3104_v26 = vld [vmem:[%s4115_s1 + $0x70] sm:$0xff]  }
 0x436   :  { %1611 = vmatprep.subr.bf16.mxu1 %v3013_v27 }
 0x437   :  { %1779 = vmatpush1.bf16.msra.mxu0 %v3071_v20  ;;  %v3147_v20 = vld [vmem:[%s4113_s2 + $0x680] ss:$8 sps:$4 sm:$0xff]  }
 0x438   :  { %1885 = vmatprep.subr.bf16.mxu0 %v3076_v21  ;;  %v3152_v21 = vld [vmem:[%s4113_s2 + $0x694] ss:$8 sps:$4 sm:$0xff]  }
 0x439   :  { %1612 = vmatpush1.bf16.msra.mxu1 %v3011_v28 }
 0x43a   :  { %1613 = vmatprep.subr.bf16.mxu1 %v3016_v43 }
 0x43d   :  { %1614 = vmatpush1.bf16.msra.mxu1 %v3014_v29 }
 0x43e   :  { %1615 = vmatprep.subr.bf16.mxu1 %v3019_v44 }
 0x441   :  { %1616 = vmatpush1.bf16.msra.mxu1 %v3017_v30 }
 0x442   :  { %1617 = vmatprep.subr.bf16.mxu1 %v3022_v45  ;;  %v3074_v45 = vld [vmem:[%s4113_s2 + $0x480] ss:$8 sps:$4 sm:$0xff]  }
 0x445   :  { %1618 = vmatpush1.bf16.msra.mxu1 %v3020_v46 }
 0x446   :  { %1619 = vmatprep.subr.bf16.mxu1 %v3025_v31  ;;  %v3079_v31 = vld [vmem:[%s4113_s2 + $0x494] ss:$8 sps:$4 sm:$0xff]  }
 0x449   :  { %1620 = vmatpush1.bf16.msra.mxu1 %v3023_v47  ;;  %v3077_v47 = vld [vmem:[%s4113_s2 + $0x490] ss:$8 sps:$4 sm:$0xff]  }
 0x44a   :  { %1621 = vmatprep.subr.bf16.mxu1 %v3028_v32  ;;  %v3082_v32 = vld [vmem:[%s4113_s2 + $0x4a4] ss:$8 sps:$4 sm:$0xff]  }
 0x44d   :  { %1622 = vmatpush1.bf16.msra.mxu1 %v3026_v48  ;;  %v3080_v48 = vld [vmem:[%s4113_s2 + $0x4a0] ss:$8 sps:$4 sm:$0xff]  }
 0x44e   :  { %1623 = vmatprep.subr.bf16.mxu1 %v3031_v33  ;;  %v3085_v33 = vld [vmem:[%s4113_s2 + $0x4b4] ss:$8 sps:$4 sm:$0xff]  }
 0x451   :  { %1624 = vmatpush1.bf16.msra.mxu1 %v3029_v34  ;;  %v3088_v34 = vld [vmem:[%s4113_s2 + $0x4c4] ss:$8 sps:$4 sm:$0xff]  }
 0x452   :  { %1625 = vmatprep.subr.bf16.mxu1 %v3034_v35  ;;  %v3086_v35 = vld [vmem:[%s4113_s2 + $0x4c0] ss:$8 sps:$4 sm:$0xff]  }
 0x455   :  { %1626 = vmatpush1.bf16.msra.mxu1 %v3032_v37  ;;  %v3091_v37 = vld [vmem:[%s4113_s2 + $0x4d4] ss:$8 sps:$4 sm:$0xff]  }
 0x456   :  { %1627 = vmatprep.subr.bf16.mxu1 %v3037_v41  ;;  %v3089_v41 = vld [vmem:[%s4113_s2 + $0x4d0] ss:$8 sps:$4 sm:$0xff]  }
 0x459   :  { %1628 = vmatpush1.bf16.msra.mxu1 %v3035_v49  ;;  %v3094_v49 = vld [vmem:[%s4113_s2 + $0x4e4] ss:$8 sps:$4 sm:$0xff]  }
 0x45a   :  { %1629 = vmatprep.subr.bf16.mxu1 %v3040_v50  ;;  %v3092_v50 = vld [vmem:[%s4113_s2 + $0x4e0] ss:$8 sps:$4 sm:$0xff]  }
 0x45d   :  { %1630 = vmatpush1.bf16.msra.mxu1 %v3038_v51  ;;  %v3100_v51 = vld [vmem:[%s4113_s2 + $0x4f4] ss:$8 sps:$4 sm:$0xff]  }
 0x45e   :  { %1631 = vmatprep.subr.bf16.mxu1 %v3043_v53  ;;  %v3107_v53 = vld [vmem:[%s4113_s2 + $0x5a4] ss:$8 sps:$4 sm:$0xff]  }
 0x461   :  { %1632 = vmatpush1.bf16.msra.mxu1 %v3041_v52  ;;  %v3098_v52 = vld [vmem:[%s4113_s2 + $0x4f0] ss:$8 sps:$4 sm:$0xff]  }
 0x462   :  { %1633 = vmatprep.subr.bf16.mxu1 %v3046_v54  ;;  %v3105_v54 = vld [vmem:[%s4113_s2 + $0x5a0] ss:$8 sps:$4 sm:$0xff]  }
 0x465   :  { %1634 = vmatpush1.bf16.msra.mxu1 %v3044_v55 }
 0x466   :  { %1635 = vmatprep.subr.bf16.mxu1 %v3049_v56  ;;  %v3110_v56 = vld [vmem:[%s4113_s2 + $0x5b4] ss:$8 sps:$4 sm:$0xff]  }
 0x469   :  { %1636 = vmatpush1.bf16.msra.mxu1 %v3047_v57  ;;  %v3108_v57 = vld [vmem:[%s4113_s2 + $0x5b0] ss:$8 sps:$4 sm:$0xff]  }
 0x46a   :  { %1960 = vmatprep.subr.bf16.mxu1 %v3097_v22  ;;  %v3150_v22 = vld [vmem:[%s4113_s2 + $0x690] ss:$8 sps:$4 sm:$0xff]  }
 0x4ff   :  { %v1388_v8 = vpop.f32.mrb[72].mxu1 }
 0x500   :  { %v1390_v9 = vpop.f32.mrb[73].mxu1 }
 0x501   :  { %v1392_v40 = vpop.f32.mrb[74].mxu1 }
 0x502   :  { %v1394_v10 = vpop.f32.mrb[75].mxu1 }
 0x507   :  { %v1398_v39 = vpop.f32.mrb[76].mxu1 }
 0x508   :  { %v1407_v42 = vmax.f32 %v1388_v8, %v1398_v39  ;;  %v1400_v11 = vpop.f32.mrb[77].mxu1  ;;  %v3134_v8 = vld [vmem:[%s4113_s2 + $0x634] ss:$8 sps:$4 sm:$0xff]  }
 0x509   :  { %v1408_v12 = vmax.f32 %v1390_v9, %v1400_v11  ;;  %v1402_v13 = vpop.f32.mrb[78].mxu1  ;;  %v3132_v9 = vld [vmem:[%s4113_s2 + $0x630] ss:$8 sps:$4 sm:$0xff]   ;;  %v3140_v39 = vld [vmem:[%s4113_s2 + $0x654] ss:$8 sps:$4 sm:$0xff]  }
 0x50a   :  { %v1409_v14 = vmax.f32 %v1392_v40, %v1402_v13  ;;  %v1404_v15 = vpop.f32.mrb[79].mxu1  ;;  %v3135_v40 = vld [vmem:[%s4113_s2 + $0x640] ss:$8 sps:$4 sm:$0xff]   ;;  %v3143_v11 = vld [vmem:[%s4113_s2 + $0x664] ss:$8 sps:$4 sm:$0xff]  }
 0x50b   :  { %v1410_v16 = vmax.f32 %v1394_v10, %v1404_v15  ;;  %v3137_v10 = vld [vmem:[%s4113_s2 + $0x644] ss:$8 sps:$4 sm:$0xff]   ;;  %v3146_v13 = vld [vmem:[%s4113_s2 + $0x674] ss:$8 sps:$4 sm:$0xff]   ;;  %v3144_v15 = vld [vmem:[%s4113_s2 + $0x670] ss:$8 sps:$4 sm:$0xff]  }
 0x50c   :  { %v1411_v17 = vpack.c.bf16 %v1409_v14, %v1407_v42  ;;  %v3138_v42 = vld [vmem:[%s4113_s2 + $0x650] ss:$8 sps:$4 sm:$0xff]  }
 0x50d   :  { %v1412_v18 = vpack.c.bf16 %v1410_v16, %v1408_v12  ;;  %v3141_v12 = vld [vmem:[%s4113_s2 + $0x660] ss:$8 sps:$4 sm:$0xff]  }
 0x50f   :  { %1637 = vmatprep.mubr.bf16.mxu1 %v1412_v18 }
 0x510   :  { %1638 = vmatmul.mubr.bf16.vlgmr.msra.gmra.mrb[80].mxu1 %v1411_v17 }
 0x511   :  { %1992 = vmatprep.mubr.bf16.mxu1 %v3205_v36  ;;  %1961 = vmatpush1.bf16.msra.mxu1 %v3095_v23  ;;  %v3153_v23 = vld [vmem:[%s4113_s2 + $0x6a0] ss:$8 sps:$4 sm:$0xff]  }
 0x512   :  { %1962 = vmatprep.subr.bf16.mxu1 %v3103_v24  ;;  %v3155_v24 = vld [vmem:[%s4113_s2 + $0x6a4] ss:$8 sps:$4 sm:$0xff]  }
 0x515   :  { %1963 = vmatpush1.bf16.msra.mxu1 %v3101_v25  ;;  %v3158_v25 = vld [vmem:[%s4113_s2 + $0x6b4] ss:$8 sps:$4 sm:$0xff]  }
 0x516   :  { %2468 = vmatprep.subr.bf16.mxu1 %v3155_v24 }
 0x518   :  { %2732 = vmatmul.mubr.msk.bf16.vlgmr.msra.gmra.mrb[84].mxu1 %vm391_vm0, %v3104_v26  ;;  %v3156_v26 = vld [vmem:[%s4113_s2 + $0x6b0] ss:$8 sps:$4 sm:$0xff]  }
 0x519   :  { %2469 = vmatpush1.bf16.msra.mxu1 %v3153_v23 }
 0x51a   :  { %2470 = vmatprep.subr.bf16.mxu1 %v3158_v25 }
 0x51d   :  { %2471 = vmatpush1.bf16.msra.mxu1 %v3156_v26 }
 0x5e3   :  { %v1639_v27 = vpop.f32.mrb[80].mxu1 }
 0x5e4   :  { %v1641_v28 = vpop.f32.mrb[81].mxu1 }
 0x5e5   :  { %v1648_v43 = vmax.f32 %v1639_v27, %v1641_v28  ;;  %v1643_v29 = vpop.f32.mrb[82].mxu1  ;;  %v3161_v27 = vld [vmem:[%s4113_s2 + $0x6c4] ss:$8 sps:$4 sm:$0xff]   ;;  %v3159_v28 = vld [vmem:[%s4113_s2 + $0x6c0] ss:$8 sps:$4 sm:$0xff]  }
 0x5e6   :  { %v1645_v44 = vpop.f32.mrb[83].mxu1  ;;  %2472 = vmatprep.subr.bf16.mxu1 %v3161_v27 }
 0x5e7   :  { %v1649_v30 = vmax.f32 %v1643_v29, %v1645_v44  ;;  %v1650_v55 = vpack.c.bf16 %v1648_v43, %v1648_v43  ;;  %v3164_v43 = vld [vmem:[%s4113_s2 + $0x6d4] ss:$8 sps:$4 sm:$0xff]   ;;  %2473 = vmatpush1.bf16.msra.mxu1 %v3159_v28  ;;  %v3162_v29 = vld [vmem:[%s4113_s2 + $0x6d0] ss:$8 sps:$4 sm:$0xff]   ;;  %v3167_v44 = vld [vmem:[%s4113_s2 + $0x6e4] ss:$8 sps:$4 sm:$0xff]  }
 0x5e8   :  { %2474 = vmatprep.subr.bf16.mxu1 %v3164_v43  ;;  %v2297_v43 = vld [vmem:[%s4113_s2 + $0x7a0] sm:$0x44] }
 0x5e9   :  { %v1667_v46 = vpack.c.bf16 %v1649_v30, %v1649_v30  ;;  %v3165_v30 = vld [vmem:[%s4113_s2 + $0x6e0] ss:$8 sps:$4 sm:$0xff]  }
 0x5eb   :  { %1797 = vmatmul.mubr.bf16.vlgmr.msra.gmra.mrb[16].mxu0 %v1667_v46  ;;  %v3981_v14 = vpop.f32.mrb[84].mxu1  ;;  %2475 = vmatpush1.bf16.msra.mxu1 %v3162_v29  ;;  %v3168_v46 = vld [vmem:[%s4113_s2 + $0x6f0] ss:$8 sps:$4 sm:$0xff]   ;;  %v2298_v29 = vunpack.c.l.bf16 %v2297_v43 }
 0x5ec   :  { %1886 = vmatpush1.bf16.msra.mxu0 %v3074_v45  ;;  %1917 = vmatprep.mubr.bf16.mxu0 %v3205_v36  ;;  %v3083_v36 = vld [vmem:[%s4113_s2 + $0x4b0] ss:$8 sps:$4 sm:$0xff]   ;;  %v3986_v16 = vpop.f32.mrb[85].mxu1  ;;  %v3170_v45 = vld [vmem:[%s4113_s2 + $0x6f4] ss:$8 sps:$4 sm:$0xff]  }
 0x5ed   :  { %1887 = vmatprep.subr.bf16.mxu0 %v3079_v31  ;;  %v1998_v17 = vpop.f32.mrb[86].mxu1  ;;  %2476 = vmatprep.subr.bf16.mxu1 %v3167_v44  ;;  %v3173_v31 = vld [vmem:[%s4113_s2 + $0x704] ss:$8 sps:$4 sm:$0xff]   ;;  %v2302_v44 = vsub.s32 4, %v3335_v38 }
 0x5ee   :  { %v1999_v18 = vpop.f32.mrb[87].mxu1 }
 0x5ef   :  { %2477 = vmatpush1.bf16.msra.mxu1 %v3165_v30  ;;  %v2299_v30 = vunpack.c.h.bf16 %v2297_v43 }
 0x5f0   :  { %1888 = vmatpush1.bf16.msra.mxu0 %v3077_v47  ;;  %2478 = vmatprep.subr.bf16.mxu1 %v3170_v45  ;;  %v3171_v47 = vld [vmem:[%s4113_s2 + $0x700] ss:$8 sps:$4 sm:$0xff]   ;;  %v2303_v45 = vrot.slane %v2298_v29, %v2302_v44 }
 0x5f1   :  { %1889 = vmatprep.subr.bf16.mxu0 %v3082_v32  ;;  %v3176_v32 = vld [vmem:[%s4113_s2 + $0x714] ss:$8 sps:$4 sm:$0xff]  }
 0x5f3   :  { %2479 = vmatpush1.bf16.msra.mxu1 %v3168_v46  ;;  %v2307_v46 = vrot.slane %v2299_v30, %v2302_v44 }
 0x5f4   :  { %1890 = vmatpush1.bf16.msra.mxu0 %v3080_v48  ;;  %2480 = vmatprep.subr.bf16.mxu1 %v3173_v31  ;;  %v3174_v48 = vld [vmem:[%s4113_s2 + $0x710] ss:$8 sps:$4 sm:$0xff]  }
 0x5f5   :  { %1891 = vmatprep.subr.bf16.mxu0 %v3085_v33  ;;  %v3179_v33 = vld [vmem:[%s4113_s2 + $0x724] ss:$8 sps:$4 sm:$0xff]  }
 0x5f7   :  { %2481 = vmatpush1.bf16.msra.mxu1 %v3171_v47 }
 0x5f8   :  { %1892 = vmatpush1.bf16.msra.mxu0 %v3083_v36  ;;  %2482 = vmatprep.subr.bf16.mxu1 %v3176_v32  ;;  %v3177_v36 = vld [vmem:[%s4113_s2 + $0x720] ss:$8 sps:$4 sm:$0xff]  }
 0x5f9   :  { %1893 = vmatprep.subr.bf16.mxu0 %v3088_v34  ;;  %v3182_v34 = vld [vmem:[%s4113_s2 + $0x734] ss:$8 sps:$4 sm:$0xff]  }
 0x5fb   :  { %2483 = vmatpush1.bf16.msra.mxu1 %v3174_v48 }
 0x5fc   :  { %1894 = vmatpush1.bf16.msra.mxu0 %v3086_v35  ;;  %2484 = vmatprep.subr.bf16.mxu1 %v3179_v33  ;;  %v3180_v35 = vld [vmem:[%s4113_s2 + $0x730] ss:$8 sps:$4 sm:$0xff]  }
 0x5fd   :  { %1895 = vmatprep.subr.bf16.mxu0 %v3091_v37  ;;  %v3185_v37 = vld [vmem:[%s4113_s2 + $0x744] ss:$8 sps:$4 sm:$0xff]  }
 0x5ff   :  { %2485 = vmatpush1.bf16.msra.mxu1 %v3177_v36 }
 0x600   :  { %1896 = vmatpush1.bf16.msra.mxu0 %v3089_v41  ;;  %2486 = vmatprep.subr.bf16.mxu1 %v3182_v34  ;;  %v3183_v41 = vld [vmem:[%s4113_s2 + $0x740] ss:$8 sps:$4 sm:$0xff]  }
 0x601   :  { %1897 = vmatprep.subr.bf16.mxu0 %v3094_v49  ;;  %v3188_v49 = vld [vmem:[%s4113_s2 + $0x754] ss:$8 sps:$4 sm:$0xff]  }
 0x603   :  { %2487 = vmatpush1.bf16.msra.mxu1 %v3180_v35 }
 0x604   :  { %1898 = vmatpush1.bf16.msra.mxu0 %v3092_v50  ;;  %2488 = vmatprep.subr.bf16.mxu1 %v3185_v37  ;;  %v3186_v50 = vld [vmem:[%s4113_s2 + $0x750] ss:$8 sps:$4 sm:$0xff]  }
 0x605   :  { %1899 = vmatprep.subr.bf16.mxu0 %v3100_v51  ;;  %v3191_v51 = vld [vmem:[%s4113_s2 + $0x764] ss:$8 sps:$4 sm:$0xff]  }
 0x607   :  { %2489 = vmatpush1.bf16.msra.mxu1 %v3183_v41 }
 0x608   :  { %1900 = vmatpush1.bf16.msra.mxu0 %v3098_v52  ;;  %2490 = vmatprep.subr.bf16.mxu1 %v3188_v49  ;;  %v3189_v52 = vld [vmem:[%s4113_s2 + $0x760] ss:$8 sps:$4 sm:$0xff]  }
 0x609   :  { %2220 = vmatprep.subr.bf16.mxu0 %v3107_v53  ;;  %v3194_v53 = vld [vmem:[%s4113_s2 + $0x774] ss:$8 sps:$4 sm:$0xff]  }
 0x60b   :  { %1918 = vmatmul.mubr.bf16.vlgmr.msra.gmra.mrb[20].mxu0 %v1650_v55  ;;  %2491 = vmatpush1.bf16.msra.mxu1 %v3186_v50 }
 0x60c   :  { %2221 = vmatpush1.bf16.msra.mxu0 %v3105_v54  ;;  %2492 = vmatprep.subr.bf16.mxu1 %v3191_v51  ;;  %v3192_v54 = vld [vmem:[%s4113_s2 + $0x770] ss:$8 sps:$4 sm:$0xff]  }
 0x60d   :  { %2222 = vmatprep.subr.bf16.mxu0 %v3110_v56 }
 0x60f   :  { %2493 = vmatpush1.bf16.msra.mxu1 %v3189_v52 }
 0x610   :  { %2223 = vmatpush1.bf16.msra.mxu0 %v3108_v57  ;;  %2494 = vmatprep.subr.bf16.mxu1 %v3194_v53 }
 0x611   :  { %2224 = vmatprep.subr.bf16.mxu0 %v3113_v58 }
 0x613   :  { %2495 = vmatpush1.bf16.msra.mxu1 %v3192_v54 }
 0x614   :  { %2225 = vmatpush1.bf16.msra.mxu0 %v3111_v59  ;;  %v2003_v59 = vld [vmem:[%s4113_s2 + $0x7a0] sm:$0x22] }
 0x615   :  { %2226 = vmatprep.subr.bf16.mxu0 %v3116_v60  ;;  %v2004_v60 = vunpack.c.l.bf16 %v2003_v59 }
 0x618   :  { %2227 = vmatpush1.bf16.msra.mxu0 %v3114_v61  ;;  %v2008_v61 = vsub.s32 2, %v3335_v38 }
 0x619   :  { %2228 = vmatprep.subr.bf16.mxu0 %v3119_v62  ;;  %v2005_v62 = vunpack.c.h.bf16 %v2003_v59 }
 0x61c   :  { %2229 = vmatpush1.bf16.msra.mxu0 %v3117_v63 }
 0x61d   :  { %2230 = vmatprep.subr.bf16.mxu0 %v3122_v0 }
 0x620   :  { %2231 = vmatpush1.bf16.msra.mxu0 %v3120_v1 }
 0x621   :  { %2232 = vmatprep.subr.bf16.mxu0 %v3125_v2  ;;  %v2009_v2 = vrot.slane %v2004_v60, %v2008_v61 }
 0x624   :  { %2233 = vmatpush1.bf16.msra.mxu0 %v3123_v3 }
 0x625   :  { %2234 = vmatprep.subr.bf16.mxu0 %v3128_v4 }
 0x628   :  { %2235 = vmatpush1.bf16.msra.mxu0 %v3126_v5  ;;  %v2013_v5 = vrot.slane %v2005_v62, %v2008_v61 }
 0x629   :  { %2236 = vmatprep.subr.bf16.mxu0 %v3131_v6 }
 0x62c   :  { %2237 = vmatpush1.bf16.msra.mxu0 %v3129_v7 }
 0x62d   :  { %2238 = vmatprep.subr.bf16.mxu0 %v3134_v8 }
 0x630   :  { %2239 = vmatpush1.bf16.msra.mxu0 %v3132_v9 }
 0x631   :  { %2240 = vmatprep.subr.bf16.mxu0 %v3137_v10 }
 0x634   :  { %2241 = vmatpush1.bf16.msra.mxu0 %v3135_v40 }
 0x635   :  { %2242 = vmatprep.subr.bf16.mxu0 %v3140_v39 }
 0x638   :  { %2243 = vmatpush1.bf16.msra.mxu0 %v3138_v42 }
 0x639   :  { %2244 = vmatprep.subr.bf16.mxu0 %v3143_v11 }
 0x63c   :  { %2245 = vmatpush1.bf16.msra.mxu0 %v3141_v12  ;;  %v3197_v12 = vld [vmem:[%s4113_s2 + $0x784] ss:$8 sps:$4 sm:$0xff]  }
 0x63d   :  { %2246 = vmatprep.subr.bf16.mxu0 %v3146_v13  ;;  %v3195_v13 = vld [vmem:[%s4113_s2 + $0x780] ss:$8 sps:$4 sm:$0xff]   ;;  %2496 = vmatprep.subr.bf16.mxu1 %v3197_v12 }
 0x63e   :  { %2497 = vmatpush1.bf16.msra.mxu1 %v3195_v13 }
 0x640   :  { %2247 = vmatpush1.bf16.msra.mxu0 %v3144_v15  ;;  %v3198_v15 = vld [vmem:[%s4113_s2 + $0x790] ss:$8 sps:$4 sm:$0xff]  }
 0x641   :  { %2248 = vmatprep.subr.bf16.mxu0 %v3149_v19 }
 0x644   :  { %2249 = vmatpush1.bf16.msra.mxu0 %v3147_v20 }
 0x645   :  { %2250 = vmatprep.subr.bf16.mxu0 %v3152_v21 }
 0x648   :  { %2251 = vmatpush1.bf16.msra.mxu0 %v3150_v22 }
 0x6be   :  { %v1798_v55 = vpop.f32.mrb[16].mxu0 }
 0x6bf   :  { %v1800_v56 = vpop.f32.mrb[17].mxu0 }
 0x6c0   :  { %v1802_v57 = vpop.f32.mrb[18].mxu0 }
 0x6c1   :  { %v1803_v58 = vpop.f32.mrb[19].mxu0 }
 0x6de   :  { %v1919_v63 = vpop.f32.mrb[20].mxu0 }
 0x6df   :  { %v1920_v0 = vadd.f32 %v1919_v63, %v1798_v55  ;;  %v1921_v1 = vpop.f32.mrb[21].mxu0 }
 0x6e0   :  { %v1922_v3 = vadd.f32 %v1921_v1, %v1800_v56  ;;  %v1923_v4 = vpop.f32.mrb[22].mxu0 }
 0x6e1   :  { %v2001_v6 = vadd.f32 %v3981_v14, %v1920_v0  ;;  %v1924_v7 = vpop.f32.mrb[23].mxu0  ;;  %v3200_v14 = vld [vmem:[%s4113_s2 + $0x794] ss:$8 sps:$4 sm:$0xff]  }
 0x6e2   :  { %v2002_v8 = vadd.f32 %v3986_v16, %v1922_v3  ;;  %2498 = vmatprep.subr.bf16.mxu1 %v3200_v14  ;;  %v2054_v16 = vsub.s32 3, %v3335_v38 }
 0x6e3   :  { %v2014_v9 = vadd.f32 %v2009_v2, %v2001_v6  ;;  %2499 = vmatpush1.bf16.msra.mxu1 %v3198_v15 }
 0x6e4   :  { %v2015_v40 = vadd.f32 %v2013_v5, %v2002_v8  ;;  %v2055_v17 = vrot.slane %v2004_v60, %v2054_v16  ;;  %v2059_v18 = vrot.slane %v2005_v62, %v2054_v16 }
 0x6e5   :  { %v2016_v10 = vmax.f32 %v2014_v9, 0.0 }
 0x6e6   :  { %v2017_v39 = vmax.f32 %v2015_v40, 0.0 }
 0x6e7   :  { %v2018_v11 = vpack.c.bf16 %v2016_v10, %v2016_v10 }
 0x6e8   :  { %v2019_v42 = vpack.c.bf16 %v2017_v39, %v2017_v39 }
 0x6ea   :  { %2252 = vmatprep.mubr.bf16.mxu0 %v2019_v42 }
 0x6eb   :  { %2253 = vmatmul.mubr.bf16.vlgmr.msra.gmra.mrb[24].mxu0 %v2018_v11 }
 0x7be   :  { %v2254_v19 = vpop.f32.mrb[24].mxu0 }
 0x7bf   :  { %v2255_v20 = vadd.f32 %v2254_v19, %v2055_v17  ;;  %v2256_v21 = vpop.f32.mrb[25].mxu0 }
 0x7c0   :  { %v2257_v22 = vadd.f32 %v2256_v21, %v2059_v18  ;;  %v2258_v23 = vpop.f32.mrb[26].mxu0 }
 0x7c1   :  { %v2261_v24 = vmax.f32 %v2255_v20, 0.0  ;;  %v2259_v25 = vpop.f32.mrb[27].mxu0 }
 0x7c2   :  { %v2262_v26 = vmax.f32 %v2257_v22, 0.0 }
 0x7c3   :  { %v2263_v28 = vpack.c.bf16 %v2261_v24, %v2261_v24 }
 0x7c4   :  { %v2264_v27 = vpack.c.bf16 %v2262_v26, %v2262_v26 }
 0x7c6   :  { %2500 = vmatprep.mubr.bf16.mxu1 %v2264_v27 }
 0x7c7   :  { %2501 = vmatmul.mubr.bf16.vlgmr.msra.gmra.mrb[88].mxu1 %v2263_v28 }
 0x89a   :  { %v2502_v31 = vpop.f32.mrb[88].mxu1 }
 0x89b   :  { %v2503_v47 = vadd.f32 %v2502_v31, %v2303_v45  ;;  %v2504_v32 = vpop.f32.mrb[89].mxu1 }
 0x89c   :  { %v2505_v48 = vadd.f32 %v2504_v32, %v2307_v46  ;;  %v2506_v33 = vpop.f32.mrb[90].mxu1 }
 0x89d   :  { %3201 = vtanh.f32 %v2503_v47  ;;  %v2507_v36 = vpop.f32.mrb[91].mxu1 }
 0x89e   :  { %3203 = vtanh.f32 %v2505_v48 }
 0x8a7   :  { %v3202_v34 = vpop.eup %3201 }
 0x8a8   :  { %v3204_v35 = vpop.eup %3203  ;;  %v2511_v37 = vmul.f32 2.0, %v3202_v34 }
 0x8a9   :  { %v2512_v41 = vmul.f32 2.0, %v3204_v35 }
 0x8aa   :  { %2513 = vst [vmem:[%s4116_s3] sm:$0xff] %v2511_v37 }
 0x8ab   :  { %2514 = vst [vmem:[%s4116_s3 + $0x8] sm:$0xff] %v2512_v41 }

</bundles_post_ra>
